<compile_context>
chip_gen: v7x
topology: tpu7x:2x2x1
jax: 0.10.0
libtpu: 0.0.40
codegen_flags: <defaults>
</compile_context>

<pallas_src>
import functools

import jax
import jax.numpy as jnp
from jax.experimental import pallas as pl
from jax.experimental.pallas import tpu as pltpu

BN_EPS = 1e-5
LEAKY_SLOPE = 0.2


# ----------------------------------------------------------------------------
# Per-generation tiling parameters (v5e/v6e: 128 MiB VMEM, v7x: 64 MiB per TC)
# ----------------------------------------------------------------------------
def _vmem_capacity_bytes():
    try:
        return int(pltpu.get_tpu_info().vmem_capacity_bytes)
    except Exception:
        return 64 * 1024 * 1024      # conservative fallback (works everywhere)


_VMEM_CAP = _vmem_capacity_bytes()
if _VMEM_CAP >= 100 * 1024 * 1024:   # v5e / v6e
    _TM_TARGET = 512
    _VMEM_LIMIT = 96 * 1024 * 1024
else:                                # v7x (64 MiB per TensorCore)
    _TM_TARGET = 256
    _VMEM_LIMIT = 40 * 1024 * 1024


def _pick_tile(n, target):
    """Full extent if n <= target, else the largest multiple-of-8 divisor."""
    if n <= target:
        return n
    for d in range(target, 7, -1):
        if n % d == 0 and d % 8 == 0:
            return d
    raise ValueError(f"cannot tile axis of size {n}: pad to a multiple of 8")


# ----------------------------------------------------------------------------
# Kernel 1: edge-conv stats.
#   y[k] = diff[k] @ W_top + ctr @ W_bot   (bf16 MXU, f32 accumulation)
# Running (TM, Dout) accumulators over K (no (K,TM,Dout) intermediate).
# Emits bf16 per-point [max | min] (lane-dense) and f32 [sum | sumsq] partials.
# ----------------------------------------------------------------------------
def _edge_stats_kernel(diff_ref, ctr_ref, wt_ref, wb_ref, mm_ref, st_ref):
    knn_k = diff_ref.shape[0]
    dout = wt_ref.shape[1]

    # Center contribution, shared by all K edges of a point.
    yc = jnp.dot(ctr_ref[...], wb_ref[...], preferred_element_type=jnp.float32)

    mx = mn = s = q = None
    for kk in range(knn_k):                       # static K -> fully unrolled
        y = jnp.dot(diff_ref[kk], wt_ref[...],
                    preferred_element_type=jnp.float32) + yc
        if mx is None:
            mx, mn, s, q = y, y, y, y * y
        else:
            mx = jnp.maximum(mx, y)
            mn = jnp.minimum(mn, y)
            s = s + y
            q = q + y * y

    mm_ref[...] = jnp.concatenate([mx, mn], axis=-1).astype(mm_ref.dtype)
    st = jnp.concatenate(
        [jnp.sum(s, axis=0, keepdims=True), jnp.sum(q, axis=0, keepdims=True)],
        axis=-1,
    )
    st_ref[...] = st.reshape(1, 1, 2 * dout)


# ----------------------------------------------------------------------------
# Kernel 2: global stats.  y = x_cat @ W5; per-tile max/min over points (tiles
# never straddle a batch) + BN partial sums, packed into one lane-dense store.
# ----------------------------------------------------------------------------
def _global_stats_kernel(x_ref, w_ref, st_ref):
    dout = w_ref.shape[1]
    y = jnp.dot(x_ref[...], w_ref[...], preferred_element_type=jnp.float32)
    st = jnp.concatenate(
        [jnp.max(y, axis=0, keepdims=True),
         jnp.min(y, axis=0, keepdims=True),
         jnp.sum(y, axis=0, keepdims=True),
         jnp.sum(y * y, axis=0, keepdims=True)],
        axis=-1,
    )
    st_ref[...] = st.reshape(1, 1, 4 * dout)


# ----------------------------------------------------------------------------
# Kernel 3: finalize.  Select raw max or min by sign of the BN scale (exact:
# affine + LeakyReLU are monotone), apply scale/shift, LeakyReLU.
# TODO(synk): pack the Dout=64 layers two-points-per-row for lane-dense stores.
# ----------------------------------------------------------------------------
def _finalize_kernel(mm_ref, scale_ref, shift_ref, o_ref):
    dout = scale_ref.shape[-1]
    s = scale_ref[...]                                   # (1, Dout) f32
    y = jnp.where(s >= 0.0, mm_ref[:, :dout], mm_ref[:, dout:]).astype(jnp.float32)
    yn = y * s + shift_ref[...]
    o_ref[...] = jnp.where(yn >= 0.0, yn, LEAKY_SLOPE * yn).astype(o_ref.dtype)


# ----------------------------------------------------------------------------
# Wrappers
# ----------------------------------------------------------------------------
def _bn_scale_shift(st_packed, count, gamma, beta):
    """BN batch stats (biased var, training mode) from packed tile partials."""
    tot = jnp.sum(st_packed, axis=0)                     # (2*Dout,)
    dout = tot.shape[0] // 2
    mean = tot[:dout] / count
    var = jnp.maximum(tot[dout:] / count - mean * mean, 0.0)
    scale = gamma * jax.lax.rsqrt(var + BN_EPS)
    shift = beta - mean * scale
    return scale, shift


def _finalize(mm, scale, shift, *, out_dtype):
    r, two_d = mm.shape
    dout = two_d // 2
    tr = _pick_tile(r, 2 * _TM_TARGET)
    nt = r // tr
    return pl.pallas_call(
        _finalize_kernel,
        out_shape=jax.ShapeDtypeStruct((r, dout), out_dtype),
        grid=(nt,),
        in_specs=[
            pl.BlockSpec((tr, two_d), lambda i: (i, 0)),
            pl.BlockSpec((1, dout), lambda i: (0, 0)),
            pl.BlockSpec((1, dout), lambda i: (0, 0)),
        ],
        out_specs=pl.BlockSpec((tr, dout), lambda i: (i, 0)),
        compiler_params=pltpu.CompilerParams(
            dimension_semantics=("parallel",),
            vmem_limit_bytes=_VMEM_LIMIT,
        ),
    )(
        mm,
        scale.reshape(1, dout).astype(jnp.float32),
        shift.reshape(1, dout).astype(jnp.float32),
    )


def edge_conv_block(diff_kmd, ctr_md, w, gamma, beta):
    """diff_kmd: (K, M, D) = nbr - ctr;  ctr_md: (M, D);  w: (2D, Dout)."""
    knn_k, m, d = diff_kmd.shape
    dout = w.shape[1]
    w_top, w_bot = w[:d], w[d:]

    # Layer 0 (D=3): pad channels to 8 (zero W rows keep the math exact) so the
    # streamed block is not 3 lanes wide and the MXU contraction not 3/128.
    if d < 8:
        pad = 8 - d
        diff_kmd = jnp.pad(diff_kmd, ((0, 0), (0, 0), (0, pad)))
        ctr_md = jnp.pad(ctr_md, ((0, 0), (0, pad)))
        w_top = jnp.pad(w_top, ((0, pad), (0, 0)))
        w_bot = jnp.pad(w_bot, ((0, pad), (0, 0)))
        d = 8

    tm = _pick_tile(m, _TM_TARGET)
    nt = m // tm

    mm, st = pl.pallas_call(
        _edge_stats_kernel,
        out_shape=(
            jax.ShapeDtypeStruct((m, 2 * dout), jnp.bfloat16),
            jax.ShapeDtypeStruct((nt, 1, 2 * dout), jnp.float32),
        ),
        grid=(nt,),
        in_specs=[
            pl.BlockSpec((knn_k, tm, d), lambda i: (0, i, 0)),
            pl.BlockSpec((tm, d), lambda i: (i, 0)),
            pl.BlockSpec((d, dout), lambda i: (0, 0)),
            pl.BlockSpec((d, dout), lambda i: (0, 0)),
        ],
        out_specs=(
            pl.BlockSpec((tm, 2 * dout), lambda i: (i, 0)),
            pl.BlockSpec((1, 1, 2 * dout), lambda i: (i, 0, 0)),
        ),
        compiler_params=pltpu.CompilerParams(
            dimension_semantics=("parallel",),
            vmem_limit_bytes=_VMEM_LIMIT,
        ),
        cost_estimate=pl.CostEstimate(
            flops=2 * knn_k * m * d * dout + 2 * m * d * dout,
            transcendentals=0,
            bytes_accessed=(knn_k * m * d + m * d + 2 * d * dout) * 2
            + m * 2 * dout * 2 + nt * 2 * dout * 4,
        ),
    )(
        diff_kmd.astype(jnp.bfloat16),
        ctr_md.astype(jnp.bfloat16),
        w_top.astype(jnp.bfloat16),   # applied to (nbr - ctr)
        w_bot.astype(jnp.bfloat16),   # applied to ctr
    )

    scale, shift = _bn_scale_shift(st[:, 0, :], float(m) * float(knn_k), gamma, beta)
    return _finalize(mm, scale, shift, out_dtype=jnp.bfloat16)   # (M, Dout) bf16


def global_block(x_flat, batch, num_points, w, gamma, beta):
    """x_flat: (B*N, 512) bf16, w: (512, L) -> (B, L) f32."""
    m, din = x_flat.shape
    dout = w.shape[1]
    tn = _pick_tile(num_points, _TM_TARGET)          # tiles never straddle a batch
    assert num_points % tn == 0
    nt_per_b = num_points // tn
    nt = batch * nt_per_b

    st = pl.pallas_call(
        _global_stats_kernel,
        out_shape=jax.ShapeDtypeStruct((nt, 1, 4 * dout), jnp.float32),
        grid=(nt,),
        in_specs=[
            pl.BlockSpec((tn, din), lambda i: (i, 0)),
            pl.BlockSpec((din, dout), lambda i: (0, 0)),
        ],
        out_specs=pl.BlockSpec((1, 1, 4 * dout), lambda i: (i, 0, 0)),
        compiler_params=pltpu.CompilerParams(
            dimension_semantics=("parallel",),
            vmem_limit_bytes=_VMEM_LIMIT,
        ),
        cost_estimate=pl.CostEstimate(
            flops=2 * m * din * dout,
            transcendentals=0,
            bytes_accessed=(m * din + din * dout) * 2 + nt * 4 * dout * 4,
        ),
    )(x_flat.astype(jnp.bfloat16), w.astype(jnp.bfloat16))

    st = st[:, 0, :].reshape(batch, nt_per_b, 4 * dout)
    raw_max = jnp.max(st[..., 0 * dout:1 * dout], axis=1)          # (B, Dout)
    raw_min = jnp.min(st[..., 1 * dout:2 * dout], axis=1)
    tot_sum = jnp.sum(st[..., 2 * dout:3 * dout], axis=(0, 1))
    tot_sq = jnp.sum(st[..., 3 * dout:4 * dout], axis=(0, 1))
    mean = tot_sum / float(m)
    var = jnp.maximum(tot_sq / float(m) - mean * mean, 0.0)
    scale = gamma * jax.lax.rsqrt(var + BN_EPS)
    shift = beta - mean * scale
    mm = jnp.concatenate([raw_max, raw_min], axis=-1)               # (B, 2*Dout)
    return _finalize(mm, scale, shift, out_dtype=jnp.float32)


# ----------------------------------------------------------------------------
# Plain-JAX glue: knn (Gram-matrix distances) + neighbor gather
# ----------------------------------------------------------------------------
def knn(x, k):
    """x: (B, N, D) -> (B, N, K) k-nearest-neighbor indices (incl. self)."""
    # TODO(synk): top-k / sort has no clean Pallas TPU equivalent; stays in JAX.
    sq = jnp.sum(x * x, axis=-1)
    gram = jnp.einsum("bnd,bmd->bnm", x, x)
    dist2 = sq[:, :, None] + sq[:, None, :] - 2.0 * gram
    _, idx = jax.lax.top_k(-dist2, k)
    return idx.astype(jnp.int32)


# ----------------------------------------------------------------------------
# Parameters (Linear layers bias-free; random BN affine exercises both the max
# and min branches of the monotone aggregation trick)
# ----------------------------------------------------------------------------
def init_params(key, size_latent):
    dims = [(3 * 2, 64), (64 * 2, 64), (64 * 2, 128), (128 * 2, 256),
            (512, size_latent)]
    ws, bns = [], []
    for i, (din, dout) in enumerate(dims):
        kw, kg, kb = jax.random.split(jax.random.fold_in(key, i), 3)
        bound = 1.0 / (din ** 0.5)
        ws.append(jax.random.uniform(kw, (din, dout), jnp.float32, -bound, bound))
        bns.append(
            (jax.random.uniform(kg, (dout,), jnp.float32, -1.25, 1.25),   # gamma
             jax.random.uniform(kb, (dout,), jnp.float32, -0.5, 0.5))     # beta
        )
    return ws, bns


# ----------------------------------------------------------------------------
# Full forward
# ----------------------------------------------------------------------------
@functools.partial(jax.jit, static_argnames=("k",))
def dgcnn_forward(x, ws, bns, *, k):
    batch, num_points, _ = x.shape
    m = batch * num_points

    idx = knn(x, k)                                                    # (B,N,K)
    idx_flat = idx + (jnp.arange(batch, dtype=jnp.int32) * num_points)[:, None, None]
    idx_km = idx_flat.reshape(m, k).T                                  # (K, M)

    # TODO(synk): fuse the neighbor gather into the edge kernel (scalar-
    # prefetched indices + in-kernel DMA / dynamic_gather).  Per-row DMAs make
    # the kernel descriptor-bound (K*TM tiny copies per tile), so the gather +
    # diff stays as one bf16 XLA fusion feeding the kernel for now.
    feats = x.reshape(m, 3).astype(jnp.bfloat16)
    outs = []
    for i in range(4):
        nbr = jnp.take(feats, idx_km, axis=0)                          # (K,M,D) bf16
        diff = nbr - feats[None, :, :]
        feats = edge_conv_block(diff, feats, ws[i], bns[i][0], bns[i][1])
        outs.append(feats)

    x_cat = jnp.concatenate(outs, axis=-1)                             # (M,512) bf16
    return global_block(x_cat, batch, num_points, ws[4], bns[4][0], bns[4][1])


# ----------------------------------------------------------------------------
# Pure-JAX f32 reference mirroring the PyTorch module (training-mode BN)
# ----------------------------------------------------------------------------
def ref_forward(x, ws, bns, *, k):
    idx = knn(x, k)

    def bn_lrelu(y, gamma, beta, axes):
        mean = jnp.mean(y, axis=axes, keepdims=True)
        var = jnp.mean((y - mean) ** 2, axis=axes, keepdims=True)
        yn = (y - mean) / jnp.sqrt(var + BN_EPS) * gamma + beta
        return jnp.where(yn >= 0.0, yn, LEAKY_SLOPE * yn)

    feats = x
    outs = []
    for i in range(4):
        nbrs = jax.vmap(lambda xb, ib: xb[ib])(feats, idx)             # (B,N,K,D)
        ctr = jnp.broadcast_to(feats[:, :, None, :], nbrs.shape)
        edge = jnp.concatenate([nbrs - ctr, ctr], axis=-1)
        y = edge @ ws[i]
        yn = bn_lrelu(y, bns[i][0], bns[i][1], axes=(0, 1, 2))
        feats = jnp.max(yn, axis=2)
        outs.append(feats)
    y = jnp.concatenate(outs, axis=-1) @ ws[4]
    yn = bn_lrelu(y, bns[4][0], bns[4][1], axes=(0, 1))
    return jnp.max(yn, axis=1)


if __name__ == "__main__":
    B, N, K, SIZE_LATENT = 2, 16, 4, 32

    key = jax.random.PRNGKey(0)
    kx, kp = jax.random.split(key)
    x = jax.random.normal(kx, (B, N, 3), dtype=jnp.float32)
    ws, bns = init_params(kp, SIZE_LATENT)

    out = jax.block_until_ready(dgcnn_forward(x, ws, bns, k=K))
    assert out.shape == (B, SIZE_LATENT), out.shape

    ref = ref_forward(x, ws, bns, k=K)
    max_err = float(jnp.max(jnp.abs(out - ref)))
    # bf16 activations / intermediates end-to-end vs f32 reference.
    assert jnp.allclose(out, ref, atol=1e-1, rtol=1e-1), max_err

    print("KERNEL_OK")
</pallas_src>

<mosaic_0001>
module attributes {stable_mosaic.version = 11 : i64} {
  func.func @_finalize_kernel(%arg0: i32, %arg1: memref<32x128xbf16, #tpu.memory_space<vmem>>, %arg2: memref<1x64xf32, #tpu.memory_space<vmem>>, %arg3: memref<1x64xf32, #tpu.memory_space<vmem>>, %arg4: memref<32x64xbf16, #tpu.memory_space<vmem>>) attributes {dimension_semantics = [#tpu.dimension_semantics<parallel>], iteration_bounds = array<i64: 1>, scalar_prefetch = 0 : i64, scratch_operands = 0 : i64, tpu.core_type = #tpu.core_type<tc>, window_params = [{transform_indices = @transform_0, window_bounds = array<i64: 32, 128>}, {pipeline_mode = #tpu.pipeline_mode<synchronous>, transform_indices = @transform_1, window_bounds = array<i64: 1, 64>}, {pipeline_mode = #tpu.pipeline_mode<synchronous>, transform_indices = @transform_2, window_bounds = array<i64: 1, 64>}, {transform_indices = @transform_3, window_bounds = array<i64: 32, 64>}]} {
    %c0 = arith.constant 0 : index
    %c0_0 = arith.constant 0 : index
    %0 = vector.load %arg2[%c0, %c0_0] : memref<1x64xf32, #tpu.memory_space<vmem>>, vector<1x64xf32>
    %cst = arith.constant 0.000000e+00 : f32
    %1 = vector.broadcast %cst : f32 to vector<1x64xf32>
    %2 = arith.cmpf oge, %0, %1 : vector<1x64xf32>
    %c0_1 = arith.constant 0 : index
    %c0_2 = arith.constant 0 : index
    %3 = vector.load %arg1[%c0_1, %c0_2] : memref<32x128xbf16, #tpu.memory_space<vmem>>, vector<32x64xbf16>
    %c0_3 = arith.constant 0 : index
    %c64 = arith.constant 64 : index
    %4 = vector.load %arg1[%c0_3, %c64] : memref<32x128xbf16, #tpu.memory_space<vmem>>, vector<32x64xbf16>
    %5 = vector.shape_cast %2 : vector<1x64xi1> to vector<1x64xi1>
    %6 = vector.broadcast %5 : vector<1x64xi1> to vector<32x64xi1>
    %7 = arith.select %6, %3, %4 : vector<32x64xi1>, vector<32x64xbf16>
    %8 = arith.extf %7 : vector<32x64xbf16> to vector<32x64xf32>
    %9 = vector.broadcast %0 : vector<1x64xf32> to vector<32x64xf32>
    %10 = arith.mulf %8, %9 : vector<32x64xf32>
    %c0_4 = arith.constant 0 : index
    %c0_5 = arith.constant 0 : index
    %11 = vector.load %arg3[%c0_4, %c0_5] : memref<1x64xf32, #tpu.memory_space<vmem>>, vector<1x64xf32>
    %12 = vector.broadcast %11 : vector<1x64xf32> to vector<32x64xf32>
    %13 = arith.addf %10, %12 : vector<32x64xf32>
    %cst_6 = arith.constant 0.000000e+00 : f32
    %14 = vector.broadcast %cst_6 : f32 to vector<32x64xf32>
    %15 = arith.cmpf oge, %13, %14 : vector<32x64xf32>
    %cst_7 = arith.constant 2.000000e-01 : f32
    %16 = vector.broadcast %cst_7 : f32 to vector<32x64xf32>
    %17 = arith.mulf %16, %13 : vector<32x64xf32>
    %18 = arith.select %15, %13, %17 : vector<32x64xi1>, vector<32x64xf32>
    %19 = arith.truncf %18 : vector<32x64xf32> to vector<32x64xbf16>
    %c0_8 = arith.constant 0 : index
    %c0_9 = arith.constant 0 : index
    %20 = vector.load %arg4[%c0_8, %c0_9] : memref<32x64xbf16, #tpu.memory_space<vmem>>, vector<32x64xbf16>
    tpu.vector_store %arg4[%c0_8, %c0_9], %19 {strides = array<i32>} : memref<32x64xbf16, #tpu.memory_space<vmem>>, vector<32x64xbf16>,
    return
  }
  func.func @transform_0(%arg0: i32) -> (i32, i32) {
    %c0_i32 = arith.constant 0 : i32
    %c0_i32_0 = arith.constant 0 : i32
    return %arg0, %c0_i32 : i32, i32
  }
  func.func @transform_1(%arg0: i32) -> (i32, i32) {
    %c0_i32 = arith.constant 0 : i32
    %c0_i32_0 = arith.constant 0 : i32
    %c0_i32_1 = arith.constant 0 : i32
    return %c0_i32, %c0_i32_0 : i32, i32
  }
  func.func @transform_2(%arg0: i32) -> (i32, i32) {
    %c0_i32 = arith.constant 0 : i32
    %c0_i32_0 = arith.constant 0 : i32
    %c0_i32_1 = arith.constant 0 : i32
    return %c0_i32, %c0_i32_0 : i32, i32
  }
  func.func @transform_3(%arg0: i32) -> (i32, i32) {
    %c0_i32 = arith.constant 0 : i32
    %c0_i32_0 = arith.constant 0 : i32
    return %arg0, %c0_i32 : i32, i32
  }
}

module attributes {stable_mosaic.version = 11 : i64} {
  func.func @_edge_stats_kernel(%arg0: i32, %arg1: memref<4x32x8xbf16, #tpu.memory_space<vmem>>, %arg2: memref<32x8xbf16, #tpu.memory_space<vmem>>, %arg3: memref<8x64xbf16, #tpu.memory_space<vmem>>, %arg4: memref<8x64xbf16, #tpu.memory_space<vmem>>, %arg5: memref<32x128xbf16, #tpu.memory_space<vmem>>, %arg6: memref<1x1x128xf32, #tpu.memory_space<vmem>>) attributes {dimension_semantics = [#tpu.dimension_semantics<parallel>], iteration_bounds = array<i64: 1>, scalar_prefetch = 0 : i64, scratch_operands = 0 : i64, tpu.core_type = #tpu.core_type<tc>, window_params = [{transform_indices = @transform_0, window_bounds = array<i64: 4, 32, 8>}, {transform_indices = @transform_1, window_bounds = array<i64: 32, 8>}, {pipeline_mode = #tpu.pipeline_mode<synchronous>, transform_indices = @transform_2, window_bounds = array<i64: 8, 64>}, {pipeline_mode = #tpu.pipeline_mode<synchronous>, transform_indices = @transform_3, window_bounds = array<i64: 8, 64>}, {transform_indices = @transform_4, window_bounds = array<i64: 32, 128>}, {transform_indices = @transform_5, window_bounds = array<i64: 1, 1, 128>}]} {
    %c0 = arith.constant 0 : index
    %c0_0 = arith.constant 0 : index
    %0 = vector.load %arg2[%c0, %c0_0] : memref<32x8xbf16, #tpu.memory_space<vmem>>, vector<32x8xbf16>
    %c0_1 = arith.constant 0 : index
    %c0_2 = arith.constant 0 : index
    %1 = vector.load %arg4[%c0_1, %c0_2] : memref<8x64xbf16, #tpu.memory_space<vmem>>, vector<8x64xbf16>
    %cst = arith.constant dense<0.000000e+00> : vector<32x64xf32>
    %2 = tpu.matmul %0, %1, %cst {dimension_numbers = #tpu.dot_dimension_numbers<[1], [0], [0], [1], [0, 0, 1, 1], [], []>} : vector<32x8xbf16>, vector<8x64xbf16>, vector<32x64xf32> -> vector<32x64xf32>
    %c0_3 = arith.constant 0 : index
    %c0_4 = arith.constant 0 : index
    %c0_5 = arith.constant 0 : index
    %3 = vector.load %arg1[%c0_3, %c0_4, %c0_5] : memref<4x32x8xbf16, #tpu.memory_space<vmem>>, vector<1x32x8xbf16>
    %4 = vector.shape_cast %3 : vector<1x32x8xbf16> to vector<32x8xbf16>
    %c0_6 = arith.constant 0 : index
    %c0_7 = arith.constant 0 : index
    %5 = vector.load %arg3[%c0_6, %c0_7] : memref<8x64xbf16, #tpu.memory_space<vmem>>, vector<8x64xbf16>
    %cst_8 = arith.constant dense<0.000000e+00> : vector<32x64xf32>
    %6 = tpu.matmul %4, %5, %cst_8 {dimension_numbers = #tpu.dot_dimension_numbers<[1], [0], [0], [1], [0, 0, 1, 1], [], []>} : vector<32x8xbf16>, vector<8x64xbf16>, vector<32x64xf32> -> vector<32x64xf32>
    %7 = arith.addf %6, %2 : vector<32x64xf32>
    %8 = arith.mulf %7, %7 : vector<32x64xf32>
    %c1 = arith.constant 1 : index
    %c0_9 = arith.constant 0 : index
    %c0_10 = arith.constant 0 : index
    %9 = vector.load %arg1[%c1, %c0_9, %c0_10] : memref<4x32x8xbf16, #tpu.memory_space<vmem>>, vector<1x32x8xbf16>
    %10 = vector.shape_cast %9 : vector<1x32x8xbf16> to vector<32x8xbf16>
    %c0_11 = arith.constant 0 : index
    %c0_12 = arith.constant 0 : index
    %11 = vector.load %arg3[%c0_11, %c0_12] : memref<8x64xbf16, #tpu.memory_space<vmem>>, vector<8x64xbf16>
    %cst_13 = arith.constant dense<0.000000e+00> : vector<32x64xf32>
    %12 = tpu.matmul %10, %11, %cst_13 {dimension_numbers = #tpu.dot_dimension_numbers<[1], [0], [0], [1], [0, 0, 1, 1], [], []>} : vector<32x8xbf16>, vector<8x64xbf16>, vector<32x64xf32> -> vector<32x64xf32>
    %13 = arith.addf %12, %2 : vector<32x64xf32>
    %14 = arith.maximumf %7, %13 : vector<32x64xf32>
    %15 = arith.minimumf %7, %13 : vector<32x64xf32>
    %16 = arith.addf %7, %13 : vector<32x64xf32>
    %17 = arith.mulf %13, %13 : vector<32x64xf32>
    %18 = arith.addf %8, %17 : vector<32x64xf32>
    %c2 = arith.constant 2 : index
    %c0_14 = arith.constant 0 : index
    %c0_15 = arith.constant 0 : index
    %19 = vector.load %arg1[%c2, %c0_14, %c0_15] : memref<4x32x8xbf16, #tpu.memory_space<vmem>>, vector<1x32x8xbf16>
    %20 = vector.shape_cast %19 : vector<1x32x8xbf16> to vector<32x8xbf16>
    %c0_16 = arith.constant 0 : index
    %c0_17 = arith.constant 0 : index
    %21 = vector.load %arg3[%c0_16, %c0_17] : memref<8x64xbf16, #tpu.memory_space<vmem>>, vector<8x64xbf16>
    %cst_18 = arith.constant dense<0.000000e+00> : vector<32x64xf32>
    %22 = tpu.matmul %20, %21, %cst_18 {dimension_numbers = #tpu.dot_dimension_numbers<[1], [0], [0], [1], [0, 0, 1, 1], [], []>} : vector<32x8xbf16>, vector<8x64xbf16>, vector<32x64xf32> -> vector<32x64xf32>
    %23 = arith.addf %22, %2 : vector<32x64xf32>
    %24 = arith.maximumf %14, %23 : vector<32x64xf32>
    %25 = arith.minimumf %15, %23 : vector<32x64xf32>
    %26 = arith.addf %16, %23 : vector<32x64xf32>
    %27 = arith.mulf %23, %23 : vector<32x64xf32>
    %28 = arith.addf %18, %27 : vector<32x64xf32>
    %c3 = arith.constant 3 : index
    %c0_19 = arith.constant 0 : index
    %c0_20 = arith.constant 0 : index
    %29 = vector.load %arg1[%c3, %c0_19, %c0_20] : memref<4x32x8xbf16, #tpu.memory_space<vmem>>, vector<1x32x8xbf16>
    %30 = vector.shape_cast %29 : vector<1x32x8xbf16> to vector<32x8xbf16>
    %c0_21 = arith.constant 0 : index
    %c0_22 = arith.constant 0 : index
    %31 = vector.load %arg3[%c0_21, %c0_22] : memref<8x64xbf16, #tpu.memory_space<vmem>>, vector<8x64xbf16>
    %cst_23 = arith.constant dense<0.000000e+00> : vector<32x64xf32>
    %32 = tpu.matmul %30, %31, %cst_23 {dimension_numbers = #tpu.dot_dimension_numbers<[1], [0], [0], [1], [0, 0, 1, 1], [], []>} : vector<32x8xbf16>, vector<8x64xbf16>, vector<32x64xf32> -> vector<32x64xf32>
    %33 = arith.addf %32, %2 : vector<32x64xf32>
    %34 = arith.maximumf %24, %33 : vector<32x64xf32>
    %35 = arith.minimumf %25, %33 : vector<32x64xf32>
    %36 = arith.addf %26, %33 : vector<32x64xf32>
    %37 = arith.mulf %33, %33 : vector<32x64xf32>
    %38 = arith.addf %28, %37 : vector<32x64xf32>
    %39 = tpu.concatenate %34, %35 in 1 : vector<32x64xf32>, vector<32x64xf32> -> vector<32x128xf32>
    %40 = arith.truncf %39 : vector<32x128xf32> to vector<32x128xbf16>
    %c0_24 = arith.constant 0 : index
    %c0_25 = arith.constant 0 : index
    %41 = vector.load %arg5[%c0_24, %c0_25] : memref<32x128xbf16, #tpu.memory_space<vmem>>, vector<32x128xbf16>
    tpu.vector_store %arg5[%c0_24, %c0_25], %40 {strides = array<i32>} : memref<32x128xbf16, #tpu.memory_space<vmem>>, vector<32x128xbf16>,
    %cst_26 = arith.constant dense<0.000000e+00> : vector<64xf32>
    %42 = vector.multi_reduction <add>, %36, %cst_26 [0] : vector<32x64xf32> to vector<64xf32>
    %43 = vector.shape_cast %42 : vector<64xf32> to vector<1x64xf32>
    %cst_27 = arith.constant dense<0.000000e+00> : vector<64xf32>
    %44 = vector.multi_reduction <add>, %38, %cst_27 [0] : vector<32x64xf32> to vector<64xf32>
    %45 = vector.shape_cast %44 : vector<64xf32> to vector<1x64xf32>
    %46 = tpu.concatenate %43, %45 in 1 : vector<1x64xf32>, vector<1x64xf32> -> vector<1x128xf32>
    %47 = vector.shape_cast %46 : vector<1x128xf32> to vector<1x1x128xf32>
    %c0_28 = arith.constant 0 : index
    %c0_29 = arith.constant 0 : index
    %c0_30 = arith.constant 0 : index
    %48 = vector.load %arg6[%c0_28, %c0_29, %c0_30] : memref<1x1x128xf32, #tpu.memory_space<vmem>>, vector<1x1x128xf32>
    tpu.vector_store %arg6[%c0_28, %c0_29, %c0_30], %47 {strides = array<i32>} : memref<1x1x128xf32, #tpu.memory_space<vmem>>, vector<1x1x128xf32>,
    return
  }
  func.func @transform_0(%arg0: i32) -> (i32, i32, i32) {
    %c0_i32 = arith.constant 0 : i32
    %c0_i32_0 = arith.constant 0 : i32
    %c0_i32_1 = arith.constant 0 : i32
    return %c0_i32, %arg0, %c0_i32_0 : i32, i32, i32
  }
  func.func @transform_1(%arg0: i32) -> (i32, i32) {
    %c0_i32 = arith.constant 0 : i32
    %c0_i32_0 = arith.constant 0 : i32
    return %arg0, %c0_i32 : i32, i32
  }
  func.func @transform_2(%arg0: i32) -> (i32, i32) {
    %c0_i32 = arith.constant 0 : i32
    %c0_i32_0 = arith.constant 0 : i32
    %c0_i32_1 = arith.constant 0 : i32
    return %c0_i32, %c0_i32_0 : i32, i32
  }
  func.func @transform_3(%arg0: i32) -> (i32, i32) {
    %c0_i32 = arith.constant 0 : i32
    %c0_i32_0 = arith.constant 0 : i32
    %c0_i32_1 = arith.constant 0 : i32
    return %c0_i32, %c0_i32_0 : i32, i32
  }
  func.func @transform_4(%arg0: i32) -> (i32, i32) {
    %c0_i32 = arith.constant 0 : i32
    %c0_i32_0 = arith.constant 0 : i32
    return %arg0, %c0_i32 : i32, i32
  }
  func.func @transform_5(%arg0: i32) -> (i32, i32, i32) {
    %c0_i32 = arith.constant 0 : i32
    %c0_i32_0 = arith.constant 0 : i32
    %c0_i32_1 = arith.constant 0 : i32
    return %arg0, %c0_i32, %c0_i32_0 : i32, i32, i32
  }
}

module attributes {stable_mosaic.version = 11 : i64} {
  func.func @_edge_stats_kernel(%arg0: i32, %arg1: memref<4x32x64xbf16, #tpu.memory_space<vmem>>, %arg2: memref<32x64xbf16, #tpu.memory_space<vmem>>, %arg3: memref<64x64xbf16, #tpu.memory_space<vmem>>, %arg4: memref<64x64xbf16, #tpu.memory_space<vmem>>, %arg5: memref<32x128xbf16, #tpu.memory_space<vmem>>, %arg6: memref<1x1x128xf32, #tpu.memory_space<vmem>>) attributes {dimension_semantics = [#tpu.dimension_semantics<parallel>], iteration_bounds = array<i64: 1>, scalar_prefetch = 0 : i64, scratch_operands = 0 : i64, tpu.core_type = #tpu.core_type<tc>, window_params = [{transform_indices = @transform_0, window_bounds = array<i64: 4, 32, 64>}, {transform_indices = @transform_1, window_bounds = array<i64: 32, 64>}, {pipeline_mode = #tpu.pipeline_mode<synchronous>, transform_indices = @transform_2, window_bounds = array<i64: 64, 64>}, {pipeline_mode = #tpu.pipeline_mode<synchronous>, transform_indices = @transform_3, window_bounds = array<i64: 64, 64>}, {transform_indices = @transform_4, window_bounds = array<i64: 32, 128>}, {transform_indices = @transform_5, window_bounds = array<i64: 1, 1, 128>}]} {
    %c0 = arith.constant 0 : index
    %c0_0 = arith.constant 0 : index
    %0 = vector.load %arg2[%c0, %c0_0] : memref<32x64xbf16, #tpu.memory_space<vmem>>, vector<32x64xbf16>
    %c0_1 = arith.constant 0 : index
    %c0_2 = arith.constant 0 : index
    %1 = vector.load %arg4[%c0_1, %c0_2] : memref<64x64xbf16, #tpu.memory_space<vmem>>, vector<64x64xbf16>
    %cst = arith.constant dense<0.000000e+00> : vector<32x64xf32>
    %2 = tpu.matmul %0, %1, %cst {dimension_numbers = #tpu.dot_dimension_numbers<[1], [0], [0], [1], [0, 0, 1, 1], [], []>} : vector<32x64xbf16>, vector<64x64xbf16>, vector<32x64xf32> -> vector<32x64xf32>
    %c0_3 = arith.constant 0 : index
    %c0_4 = arith.constant 0 : index
    %c0_5 = arith.constant 0 : index
    %3 = vector.load %arg1[%c0_3, %c0_4, %c0_5] : memref<4x32x64xbf16, #tpu.memory_space<vmem>>, vector<1x32x64xbf16>
    %4 = vector.shape_cast %3 : vector<1x32x64xbf16> to vector<32x64xbf16>
    %c0_6 = arith.constant 0 : index
    %c0_7 = arith.constant 0 : index
    %5 = vector.load %arg3[%c0_6, %c0_7] : memref<64x64xbf16, #tpu.memory_space<vmem>>, vector<64x64xbf16>
    %cst_8 = arith.constant dense<0.000000e+00> : vector<32x64xf32>
    %6 = tpu.matmul %4, %5, %cst_8 {dimension_numbers = #tpu.dot_dimension_numbers<[1], [0], [0], [1], [0, 0, 1, 1], [], []>} : vector<32x64xbf16>, vector<64x64xbf16>, vector<32x64xf32> -> vector<32x64xf32>
    %7 = arith.addf %6, %2 : vector<32x64xf32>
    %8 = arith.mulf %7, %7 : vector<32x64xf32>
    %c1 = arith.constant 1 : index
    %c0_9 = arith.constant 0 : index
    %c0_10 = arith.constant 0 : index
    %9 = vector.load %arg1[%c1, %c0_9, %c0_10] : memref<4x32x64xbf16, #tpu.memory_space<vmem>>, vector<1x32x64xbf16>
    %10 = vector.shape_cast %9 : vector<1x32x64xbf16> to vector<32x64xbf16>
    %c0_11 = arith.constant 0 : index
    %c0_12 = arith.constant 0 : index
    %11 = vector.load %arg3[%c0_11, %c0_12] : memref<64x64xbf16, #tpu.memory_space<vmem>>, vector<64x64xbf16>
    %cst_13 = arith.constant dense<0.000000e+00> : vector<32x64xf32>
    %12 = tpu.matmul %10, %11, %cst_13 {dimension_numbers = #tpu.dot_dimension_numbers<[1], [0], [0], [1], [0, 0, 1, 1], [], []>} : vector<32x64xbf16>, vector<64x64xbf16>, vector<32x64xf32> -> vector<32x64xf32>
    %13 = arith.addf %12, %2 : vector<32x64xf32>
    %14 = arith.maximumf %7, %13 : vector<32x64xf32>
    %15 = arith.minimumf %7, %13 : vector<32x64xf32>
    %16 = arith.addf %7, %13 : vector<32x64xf32>
    %17 = arith.mulf %13, %13 : vector<32x64xf32>
    %18 = arith.addf %8, %17 : vector<32x64xf32>
    %c2 = arith.constant 2 : index
    %c0_14 = arith.constant 0 : index
    %c0_15 = arith.constant 0 : index
    %19 = vector.load %arg1[%c2, %c0_14, %c0_15] : memref<4x32x64xbf16, #tpu.memory_space<vmem>>, vector<1x32x64xbf16>
    %20 = vector.shape_cast %19 : vector<1x32x64xbf16> to vector<32x64xbf16>
    %c0_16 = arith.constant 0 : index
    %c0_17 = arith.constant 0 : index
    %21 = vector.load %arg3[%c0_16, %c0_17] : memref<64x64xbf16, #tpu.memory_space<vmem>>, vector<64x64xbf16>
    %cst_18 = arith.constant dense<0.000000e+00> : vector<32x64xf32>
    %22 = tpu.matmul %20, %21, %cst_18 {dimension_numbers = #tpu.dot_dimension_numbers<[1], [0], [0], [1], [0, 0, 1, 1], [], []>} : vector<32x64xbf16>, vector<64x64xbf16>, vector<32x64xf32> -> vector<32x64xf32>
    %23 = arith.addf %22, %2 : vector<32x64xf32>
    %24 = arith.maximumf %14, %23 : vector<32x64xf32>
    %25 = arith.minimumf %15, %23 : vector<32x64xf32>
    %26 = arith.addf %16, %23 : vector<32x64xf32>
    %27 = arith.mulf %23, %23 : vector<32x64xf32>
    %28 = arith.addf %18, %27 : vector<32x64xf32>
    %c3 = arith.constant 3 : index
    %c0_19 = arith.constant 0 : index
    %c0_20 = arith.constant 0 : index
    %29 = vector.load %arg1[%c3, %c0_19, %c0_20] : memref<4x32x64xbf16, #tpu.memory_space<vmem>>, vector<1x32x64xbf16>
    %30 = vector.shape_cast %29 : vector<1x32x64xbf16> to vector<32x64xbf16>
    %c0_21 = arith.constant 0 : index
    %c0_22 = arith.constant 0 : index
    %31 = vector.load %arg3[%c0_21, %c0_22] : memref<64x64xbf16, #tpu.memory_space<vmem>>, vector<64x64xbf16>
    %cst_23 = arith.constant dense<0.000000e+00> : vector<32x64xf32>
    %32 = tpu.matmul %30, %31, %cst_23 {dimension_numbers = #tpu.dot_dimension_numbers<[1], [0], [0], [1], [0, 0, 1, 1], [], []>} : vector<32x64xbf16>, vector<64x64xbf16>, vector<32x64xf32> -> vector<32x64xf32>
    %33 = arith.addf %32, %2 : vector<32x64xf32>
    %34 = arith.maximumf %24, %33 : vector<32x64xf32>
    %35 = arith.minimumf %25, %33 : vector<32x64xf32>
    %36 = arith.addf %26, %33 : vector<32x64xf32>
    %37 = arith.mulf %33, %33 : vector<32x64xf32>
    %38 = arith.addf %28, %37 : vector<32x64xf32>
    %39 = tpu.concatenate %34, %35 in 1 : vector<32x64xf32>, vector<32x64xf32> -> vector<32x128xf32>
    %40 = arith.truncf %39 : vector<32x128xf32> to vector<32x128xbf16>
    %c0_24 = arith.constant 0 : index
    %c0_25 = arith.constant 0 : index
    %41 = vector.load %arg5[%c0_24, %c0_25] : memref<32x128xbf16, #tpu.memory_space<vmem>>, vector<32x128xbf16>
    tpu.vector_store %arg5[%c0_24, %c0_25], %40 {strides = array<i32>} : memref<32x128xbf16, #tpu.memory_space<vmem>>, vector<32x128xbf16>,
    %cst_26 = arith.constant dense<0.000000e+00> : vector<64xf32>
    %42 = vector.multi_reduction <add>, %36, %cst_26 [0] : vector<32x64xf32> to vector<64xf32>
    %43 = vector.shape_cast %42 : vector<64xf32> to vector<1x64xf32>
    %cst_27 = arith.constant dense<0.000000e+00> : vector<64xf32>
    %44 = vector.multi_reduction <add>, %38, %cst_27 [0] : vector<32x64xf32> to vector<64xf32>
    %45 = vector.shape_cast %44 : vector<64xf32> to vector<1x64xf32>
    %46 = tpu.concatenate %43, %45 in 1 : vector<1x64xf32>, vector<1x64xf32> -> vector<1x128xf32>
    %47 = vector.shape_cast %46 : vector<1x128xf32> to vector<1x1x128xf32>
    %c0_28 = arith.constant 0 : index
    %c0_29 = arith.constant 0 : index
    %c0_30 = arith.constant 0 : index
    %48 = vector.load %arg6[%c0_28, %c0_29, %c0_30] : memref<1x1x128xf32, #tpu.memory_space<vmem>>, vector<1x1x128xf32>
    tpu.vector_store %arg6[%c0_28, %c0_29, %c0_30], %47 {strides = array<i32>} : memref<1x1x128xf32, #tpu.memory_space<vmem>>, vector<1x1x128xf32>,
    return
  }
  func.func @transform_0(%arg0: i32) -> (i32, i32, i32) {
    %c0_i32 = arith.constant 0 : i32
    %c0_i32_0 = arith.constant 0 : i32
    %c0_i32_1 = arith.constant 0 : i32
    return %c0_i32, %arg0, %c0_i32_0 : i32, i32, i32
  }
  func.func @transform_1(%arg0: i32) -> (i32, i32) {
    %c0_i32 = arith.constant 0 : i32
    %c0_i32_0 = arith.constant 0 : i32
    return %arg0, %c0_i32 : i32, i32
  }
  func.func @transform_2(%arg0: i32) -> (i32, i32) {
    %c0_i32 = arith.constant 0 : i32
    %c0_i32_0 = arith.constant 0 : i32
    %c0_i32_1 = arith.constant 0 : i32
    return %c0_i32, %c0_i32_0 : i32, i32
  }
  func.func @transform_3(%arg0: i32) -> (i32, i32) {
    %c0_i32 = arith.constant 0 : i32
    %c0_i32_0 = arith.constant 0 : i32
    %c0_i32_1 = arith.constant 0 : i32
    return %c0_i32, %c0_i32_0 : i32, i32
  }
  func.func @transform_4(%arg0: i32) -> (i32, i32) {
    %c0_i32 = arith.constant 0 : i32
    %c0_i32_0 = arith.constant 0 : i32
    return %arg0, %c0_i32 : i32, i32
  }
  func.func @transform_5(%arg0: i32) -> (i32, i32, i32) {
    %c0_i32 = arith.constant 0 : i32
    %c0_i32_0 = arith.constant 0 : i32
    %c0_i32_1 = arith.constant 0 : i32
    return %arg0, %c0_i32, %c0_i32_0 : i32, i32, i32
  }
}

module attributes {stable_mosaic.version = 11 : i64} {
  func.func @_edge_stats_kernel(%arg0: i32, %arg1: memref<4x32x64xbf16, #tpu.memory_space<vmem>>, %arg2: memref<32x64xbf16, #tpu.memory_space<vmem>>, %arg3: memref<64x128xbf16, #tpu.memory_space<vmem>>, %arg4: memref<64x128xbf16, #tpu.memory_space<vmem>>, %arg5: memref<32x256xbf16, #tpu.memory_space<vmem>>, %arg6: memref<1x1x256xf32, #tpu.memory_space<vmem>>) attributes {dimension_semantics = [#tpu.dimension_semantics<parallel>], iteration_bounds = array<i64: 1>, scalar_prefetch = 0 : i64, scratch_operands = 0 : i64, tpu.core_type = #tpu.core_type<tc>, window_params = [{transform_indices = @transform_0, window_bounds = array<i64: 4, 32, 64>}, {transform_indices = @transform_1, window_bounds = array<i64: 32, 64>}, {pipeline_mode = #tpu.pipeline_mode<synchronous>, transform_indices = @transform_2, window_bounds = array<i64: 64, 128>}, {pipeline_mode = #tpu.pipeline_mode<synchronous>, transform_indices = @transform_3, window_bounds = array<i64: 64, 128>}, {transform_indices = @transform_4, window_bounds = array<i64: 32, 256>}, {transform_indices = @transform_5, window_bounds = array<i64: 1, 1, 256>}]} {
    %c0 = arith.constant 0 : index
    %c0_0 = arith.constant 0 : index
    %0 = vector.load %arg2[%c0, %c0_0] : memref<32x64xbf16, #tpu.memory_space<vmem>>, vector<32x64xbf16>
    %c0_1 = arith.constant 0 : index
    %c0_2 = arith.constant 0 : index
    %1 = vector.load %arg4[%c0_1, %c0_2] : memref<64x128xbf16, #tpu.memory_space<vmem>>, vector<64x128xbf16>
    %cst = arith.constant dense<0.000000e+00> : vector<32x128xf32>
    %2 = tpu.matmul %0, %1, %cst {dimension_numbers = #tpu.dot_dimension_numbers<[1], [0], [0], [1], [0, 0, 1, 1], [], []>} : vector<32x64xbf16>, vector<64x128xbf16>, vector<32x128xf32> -> vector<32x128xf32>
    %c0_3 = arith.constant 0 : index
    %c0_4 = arith.constant 0 : index
    %c0_5 = arith.constant 0 : index
    %3 = vector.load %arg1[%c0_3, %c0_4, %c0_5] : memref<4x32x64xbf16, #tpu.memory_space<vmem>>, vector<1x32x64xbf16>
    %4 = vector.shape_cast %3 : vector<1x32x64xbf16> to vector<32x64xbf16>
    %c0_6 = arith.constant 0 : index
    %c0_7 = arith.constant 0 : index
    %5 = vector.load %arg3[%c0_6, %c0_7] : memref<64x128xbf16, #tpu.memory_space<vmem>>, vector<64x128xbf16>
    %cst_8 = arith.constant dense<0.000000e+00> : vector<32x128xf32>
    %6 = tpu.matmul %4, %5, %cst_8 {dimension_numbers = #tpu.dot_dimension_numbers<[1], [0], [0], [1], [0, 0, 1, 1], [], []>} : vector<32x64xbf16>, vector<64x128xbf16>, vector<32x128xf32> -> vector<32x128xf32>
    %7 = arith.addf %6, %2 : vector<32x128xf32>
    %8 = arith.mulf %7, %7 : vector<32x128xf32>
    %c1 = arith.constant 1 : index
    %c0_9 = arith.constant 0 : index
    %c0_10 = arith.constant 0 : index
    %9 = vector.load %arg1[%c1, %c0_9, %c0_10] : memref<4x32x64xbf16, #tpu.memory_space<vmem>>, vector<1x32x64xbf16>
    %10 = vector.shape_cast %9 : vector<1x32x64xbf16> to vector<32x64xbf16>
    %c0_11 = arith.constant 0 : index
    %c0_12 = arith.constant 0 : index
    %11 = vector.load %arg3[%c0_11, %c0_12] : memref<64x128xbf16, #tpu.memory_space<vmem>>, vector<64x128xbf16>
    %cst_13 = arith.constant dense<0.000000e+00> : vector<32x128xf32>
    %12 = tpu.matmul %10, %11, %cst_13 {dimension_numbers = #tpu.dot_dimension_numbers<[1], [0], [0], [1], [0, 0, 1, 1], [], []>} : vector<32x64xbf16>, vector<64x128xbf16>, vector<32x128xf32> -> vector<32x128xf32>
    %13 = arith.addf %12, %2 : vector<32x128xf32>
    %14 = arith.maximumf %7, %13 : vector<32x128xf32>
    %15 = arith.minimumf %7, %13 : vector<32x128xf32>
    %16 = arith.addf %7, %13 : vector<32x128xf32>
    %17 = arith.mulf %13, %13 : vector<32x128xf32>
    %18 = arith.addf %8, %17 : vector<32x128xf32>
    %c2 = arith.constant 2 : index
    %c0_14 = arith.constant 0 : index
    %c0_15 = arith.constant 0 : index
    %19 = vector.load %arg1[%c2, %c0_14, %c0_15] : memref<4x32x64xbf16, #tpu.memory_space<vmem>>, vector<1x32x64xbf16>
    %20 = vector.shape_cast %19 : vector<1x32x64xbf16> to vector<32x64xbf16>
    %c0_16 = arith.constant 0 : index
    %c0_17 = arith.constant 0 : index
    %21 = vector.load %arg3[%c0_16, %c0_17] : memref<64x128xbf16, #tpu.memory_space<vmem>>, vector<64x128xbf16>
    %cst_18 = arith.constant dense<0.000000e+00> : vector<32x128xf32>
    %22 = tpu.matmul %20, %21, %cst_18 {dimension_numbers = #tpu.dot_dimension_numbers<[1], [0], [0], [1], [0, 0, 1, 1], [], []>} : vector<32x64xbf16>, vector<64x128xbf16>, vector<32x128xf32> -> vector<32x128xf32>
    %23 = arith.addf %22, %2 : vector<32x128xf32>
    %24 = arith.maximumf %14, %23 : vector<32x128xf32>
    %25 = arith.minimumf %15, %23 : vector<32x128xf32>
    %26 = arith.addf %16, %23 : vector<32x128xf32>
    %27 = arith.mulf %23, %23 : vector<32x128xf32>
    %28 = arith.addf %18, %27 : vector<32x128xf32>
    %c3 = arith.constant 3 : index
    %c0_19 = arith.constant 0 : index
    %c0_20 = arith.constant 0 : index
    %29 = vector.load %arg1[%c3, %c0_19, %c0_20] : memref<4x32x64xbf16, #tpu.memory_space<vmem>>, vector<1x32x64xbf16>
    %30 = vector.shape_cast %29 : vector<1x32x64xbf16> to vector<32x64xbf16>
    %c0_21 = arith.constant 0 : index
    %c0_22 = arith.constant 0 : index
    %31 = vector.load %arg3[%c0_21, %c0_22] : memref<64x128xbf16, #tpu.memory_space<vmem>>, vector<64x128xbf16>
    %cst_23 = arith.constant dense<0.000000e+00> : vector<32x128xf32>
    %32 = tpu.matmul %30, %31, %cst_23 {dimension_numbers = #tpu.dot_dimension_numbers<[1], [0], [0], [1], [0, 0, 1, 1], [], []>} : vector<32x64xbf16>, vector<64x128xbf16>, vector<32x128xf32> -> vector<32x128xf32>
    %33 = arith.addf %32, %2 : vector<32x128xf32>
    %34 = arith.maximumf %24, %33 : vector<32x128xf32>
    %35 = arith.minimumf %25, %33 : vector<32x128xf32>
    %36 = arith.addf %26, %33 : vector<32x128xf32>
    %37 = arith.mulf %33, %33 : vector<32x128xf32>
    %38 = arith.addf %28, %37 : vector<32x128xf32>
    %39 = tpu.concatenate %34, %35 in 1 : vector<32x128xf32>, vector<32x128xf32> -> vector<32x256xf32>
    %40 = arith.truncf %39 : vector<32x256xf32> to vector<32x256xbf16>
    %c0_24 = arith.constant 0 : index
    %c0_25 = arith.constant 0 : index
    %41 = vector.load %arg5[%c0_24, %c0_25] : memref<32x256xbf16, #tpu.memory_space<vmem>>, vector<32x256xbf16>
    tpu.vector_store %arg5[%c0_24, %c0_25], %40 {strides = array<i32>} : memref<32x256xbf16, #tpu.memory_space<vmem>>, vector<32x256xbf16>,
    %cst_26 = arith.constant dense<0.000000e+00> : vector<128xf32>
    %42 = vector.multi_reduction <add>, %36, %cst_26 [0] : vector<32x128xf32> to vector<128xf32>
    %43 = vector.shape_cast %42 : vector<128xf32> to vector<1x128xf32>
    %cst_27 = arith.constant dense<0.000000e+00> : vector<128xf32>
    %44 = vector.multi_reduction <add>, %38, %cst_27 [0] : vector<32x128xf32> to vector<128xf32>
    %45 = vector.shape_cast %44 : vector<128xf32> to vector<1x128xf32>
    %46 = tpu.concatenate %43, %45 in 1 : vector<1x128xf32>, vector<1x128xf32> -> vector<1x256xf32>
    %47 = vector.shape_cast %46 : vector<1x256xf32> to vector<1x1x256xf32>
    %c0_28 = arith.constant 0 : index
    %c0_29 = arith.constant 0 : index
    %c0_30 = arith.constant 0 : index
    %48 = vector.load %arg6[%c0_28, %c0_29, %c0_30] : memref<1x1x256xf32, #tpu.memory_space<vmem>>, vector<1x1x256xf32>
    tpu.vector_store %arg6[%c0_28, %c0_29, %c0_30], %47 {strides = array<i32>} : memref<1x1x256xf32, #tpu.memory_space<vmem>>, vector<1x1x256xf32>,
    return
  }
  func.func @transform_0(%arg0: i32) -> (i32, i32, i32) {
    %c0_i32 = arith.constant 0 : i32
    %c0_i32_0 = arith.constant 0 : i32
    %c0_i32_1 = arith.constant 0 : i32
    return %c0_i32, %arg0, %c0_i32_0 : i32, i32, i32
  }
  func.func @transform_1(%arg0: i32) -> (i32, i32) {
    %c0_i32 = arith.constant 0 : i32
    %c0_i32_0 = arith.constant 0 : i32
    return %arg0, %c0_i32 : i32, i32
  }
  func.func @transform_2(%arg0: i32) -> (i32, i32) {
    %c0_i32 = arith.constant 0 : i32
    %c0_i32_0 = arith.constant 0 : i32
    %c0_i32_1 = arith.constant 0 : i32
    return %c0_i32, %c0_i32_0 : i32, i32
  }
  func.func @transform_3(%arg0: i32) -> (i32, i32) {
    %c0_i32 = arith.constant 0 : i32
    %c0_i32_0 = arith.constant 0 : i32
    %c0_i32_1 = arith.constant 0 : i32
    return %c0_i32, %c0_i32_0 : i32, i32
  }
  func.func @transform_4(%arg0: i32) -> (i32, i32) {
    %c0_i32 = arith.constant 0 : i32
    %c0_i32_0 = arith.constant 0 : i32
    return %arg0, %c0_i32 : i32, i32
  }
  func.func @transform_5(%arg0: i32) -> (i32, i32, i32) {
    %c0_i32 = arith.constant 0 : i32
    %c0_i32_0 = arith.constant 0 : i32
    %c0_i32_1 = arith.constant 0 : i32
    return %arg0, %c0_i32, %c0_i32_0 : i32, i32, i32
  }
}

module attributes {stable_mosaic.version = 11 : i64} {
  func.func @_finalize_kernel(%arg0: i32, %arg1: memref<32x256xbf16, #tpu.memory_space<vmem>>, %arg2: memref<1x128xf32, #tpu.memory_space<vmem>>, %arg3: memref<1x128xf32, #tpu.memory_space<vmem>>, %arg4: memref<32x128xbf16, #tpu.memory_space<vmem>>) attributes {dimension_semantics = [#tpu.dimension_semantics<parallel>], iteration_bounds = array<i64: 1>, scalar_prefetch = 0 : i64, scratch_operands = 0 : i64, tpu.core_type = #tpu.core_type<tc>, window_params = [{transform_indices = @transform_0, window_bounds = array<i64: 32, 256>}, {pipeline_mode = #tpu.pipeline_mode<synchronous>, transform_indices = @transform_1, window_bounds = array<i64: 1, 128>}, {pipeline_mode = #tpu.pipeline_mode<synchronous>, transform_indices = @transform_2, window_bounds = array<i64: 1, 128>}, {transform_indices = @transform_3, window_bounds = array<i64: 32, 128>}]} {
    %c0 = arith.constant 0 : index
    %c0_0 = arith.constant 0 : index
    %0 = vector.load %arg2[%c0, %c0_0] : memref<1x128xf32, #tpu.memory_space<vmem>>, vector<1x128xf32>
    %cst = arith.constant 0.000000e+00 : f32
    %1 = vector.broadcast %cst : f32 to vector<1x128xf32>
    %2 = arith.cmpf oge, %0, %1 : vector<1x128xf32>
    %c0_1 = arith.constant 0 : index
    %c0_2 = arith.constant 0 : index
    %3 = vector.load %arg1[%c0_1, %c0_2] : memref<32x256xbf16, #tpu.memory_space<vmem>>, vector<32x128xbf16>
    %c0_3 = arith.constant 0 : index
    %c128 = arith.constant 128 : index
    %4 = vector.load %arg1[%c0_3, %c128] : memref<32x256xbf16, #tpu.memory_space<vmem>>, vector<32x128xbf16>
    %5 = vector.shape_cast %2 : vector<1x128xi1> to vector<1x128xi1>
    %6 = vector.broadcast %5 : vector<1x128xi1> to vector<32x128xi1>
    %7 = arith.select %6, %3, %4 : vector<32x128xi1>, vector<32x128xbf16>
    %8 = arith.extf %7 : vector<32x128xbf16> to vector<32x128xf32>
    %9 = vector.broadcast %0 : vector<1x128xf32> to vector<32x128xf32>
    %10 = arith.mulf %8, %9 : vector<32x128xf32>
    %c0_4 = arith.constant 0 : index
    %c0_5 = arith.constant 0 : index
    %11 = vector.load %arg3[%c0_4, %c0_5] : memref<1x128xf32, #tpu.memory_space<vmem>>, vector<1x128xf32>
    %12 = vector.broadcast %11 : vector<1x128xf32> to vector<32x128xf32>
    %13 = arith.addf %10, %12 : vector<32x128xf32>
    %cst_6 = arith.constant 0.000000e+00 : f32
    %14 = vector.broadcast %cst_6 : f32 to vector<32x128xf32>
    %15 = arith.cmpf oge, %13, %14 : vector<32x128xf32>
    %cst_7 = arith.constant 2.000000e-01 : f32
    %16 = vector.broadcast %cst_7 : f32 to vector<32x128xf32>
    %17 = arith.mulf %16, %13 : vector<32x128xf32>
    %18 = arith.select %15, %13, %17 : vector<32x128xi1>, vector<32x128xf32>
    %19 = arith.truncf %18 : vector<32x128xf32> to vector<32x128xbf16>
    %c0_8 = arith.constant 0 : index
    %c0_9 = arith.constant 0 : index
    %20 = vector.load %arg4[%c0_8, %c0_9] : memref<32x128xbf16, #tpu.memory_space<vmem>>, vector<32x128xbf16>
    tpu.vector_store %arg4[%c0_8, %c0_9], %19 {strides = array<i32>} : memref<32x128xbf16, #tpu.memory_space<vmem>>, vector<32x128xbf16>,
    return
  }
  func.func @transform_0(%arg0: i32) -> (i32, i32) {
    %c0_i32 = arith.constant 0 : i32
    %c0_i32_0 = arith.constant 0 : i32
    return %arg0, %c0_i32 : i32, i32
  }
  func.func @transform_1(%arg0: i32) -> (i32, i32) {
    %c0_i32 = arith.constant 0 : i32
    %c0_i32_0 = arith.constant 0 : i32
    %c0_i32_1 = arith.constant 0 : i32
    return %c0_i32, %c0_i32_0 : i32, i32
  }
  func.func @transform_2(%arg0: i32) -> (i32, i32) {
    %c0_i32 = arith.constant 0 : i32
    %c0_i32_0 = arith.constant 0 : i32
    %c0_i32_1 = arith.constant 0 : i32
    return %c0_i32, %c0_i32_0 : i32, i32
  }
  func.func @transform_3(%arg0: i32) -> (i32, i32) {
    %c0_i32 = arith.constant 0 : i32
    %c0_i32_0 = arith.constant 0 : i32
    return %arg0, %c0_i32 : i32, i32
  }
}

module attributes {stable_mosaic.version = 11 : i64} {
  func.func @_edge_stats_kernel(%arg0: i32, %arg1: memref<4x32x128xbf16, #tpu.memory_space<vmem>>, %arg2: memref<32x128xbf16, #tpu.memory_space<vmem>>, %arg3: memref<128x256xbf16, #tpu.memory_space<vmem>>, %arg4: memref<128x256xbf16, #tpu.memory_space<vmem>>, %arg5: memref<32x512xbf16, #tpu.memory_space<vmem>>, %arg6: memref<1x1x512xf32, #tpu.memory_space<vmem>>) attributes {dimension_semantics = [#tpu.dimension_semantics<parallel>], iteration_bounds = array<i64: 1>, scalar_prefetch = 0 : i64, scratch_operands = 0 : i64, tpu.core_type = #tpu.core_type<tc>, window_params = [{transform_indices = @transform_0, window_bounds = array<i64: 4, 32, 128>}, {transform_indices = @transform_1, window_bounds = array<i64: 32, 128>}, {pipeline_mode = #tpu.pipeline_mode<synchronous>, transform_indices = @transform_2, window_bounds = array<i64: 128, 256>}, {pipeline_mode = #tpu.pipeline_mode<synchronous>, transform_indices = @transform_3, window_bounds = array<i64: 128, 256>}, {transform_indices = @transform_4, window_bounds = array<i64: 32, 512>}, {transform_indices = @transform_5, window_bounds = array<i64: 1, 1, 512>}]} {
    %c0 = arith.constant 0 : index
    %c0_0 = arith.constant 0 : index
    %0 = vector.load %arg2[%c0, %c0_0] : memref<32x128xbf16, #tpu.memory_space<vmem>>, vector<32x128xbf16>
    %c0_1 = arith.constant 0 : index
    %c0_2 = arith.constant 0 : index
    %1 = vector.load %arg4[%c0_1, %c0_2] : memref<128x256xbf16, #tpu.memory_space<vmem>>, vector<128x256xbf16>
    %cst = arith.constant dense<0.000000e+00> : vector<32x256xf32>
    %2 = tpu.matmul %0, %1, %cst {dimension_numbers = #tpu.dot_dimension_numbers<[1], [0], [0], [1], [0, 0, 1, 1], [], []>} : vector<32x128xbf16>, vector<128x256xbf16>, vector<32x256xf32> -> vector<32x256xf32>
    %c0_3 = arith.constant 0 : index
    %c0_4 = arith.constant 0 : index
    %c0_5 = arith.constant 0 : index
    %3 = vector.load %arg1[%c0_3, %c0_4, %c0_5] : memref<4x32x128xbf16, #tpu.memory_space<vmem>>, vector<1x32x128xbf16>
    %4 = vector.shape_cast %3 : vector<1x32x128xbf16> to vector<32x128xbf16>
    %c0_6 = arith.constant 0 : index
    %c0_7 = arith.constant 0 : index
    %5 = vector.load %arg3[%c0_6, %c0_7] : memref<128x256xbf16, #tpu.memory_space<vmem>>, vector<128x256xbf16>
    %cst_8 = arith.constant dense<0.000000e+00> : vector<32x256xf32>
    %6 = tpu.matmul %4, %5, %cst_8 {dimension_numbers = #tpu.dot_dimension_numbers<[1], [0], [0], [1], [0, 0, 1, 1], [], []>} : vector<32x128xbf16>, vector<128x256xbf16>, vector<32x256xf32> -> vector<32x256xf32>
    %7 = arith.addf %6, %2 : vector<32x256xf32>
    %8 = arith.mulf %7, %7 : vector<32x256xf32>
    %c1 = arith.constant 1 : index
    %c0_9 = arith.constant 0 : index
    %c0_10 = arith.constant 0 : index
    %9 = vector.load %arg1[%c1, %c0_9, %c0_10] : memref<4x32x128xbf16, #tpu.memory_space<vmem>>, vector<1x32x128xbf16>
    %10 = vector.shape_cast %9 : vector<1x32x128xbf16> to vector<32x128xbf16>
    %c0_11 = arith.constant 0 : index
    %c0_12 = arith.constant 0 : index
    %11 = vector.load %arg3[%c0_11, %c0_12] : memref<128x256xbf16, #tpu.memory_space<vmem>>, vector<128x256xbf16>
    %cst_13 = arith.constant dense<0.000000e+00> : vector<32x256xf32>
    %12 = tpu.matmul %10, %11, %cst_13 {dimension_numbers = #tpu.dot_dimension_numbers<[1], [0], [0], [1], [0, 0, 1, 1], [], []>} : vector<32x128xbf16>, vector<128x256xbf16>, vector<32x256xf32> -> vector<32x256xf32>
    %13 = arith.addf %12, %2 : vector<32x256xf32>
    %14 = arith.maximumf %7, %13 : vector<32x256xf32>
    %15 = arith.minimumf %7, %13 : vector<32x256xf32>
    %16 = arith.addf %7, %13 : vector<32x256xf32>
    %17 = arith.mulf %13, %13 : vector<32x256xf32>
    %18 = arith.addf %8, %17 : vector<32x256xf32>
    %c2 = arith.constant 2 : index
    %c0_14 = arith.constant 0 : index
    %c0_15 = arith.constant 0 : index
    %19 = vector.load %arg1[%c2, %c0_14, %c0_15] : memref<4x32x128xbf16, #tpu.memory_space<vmem>>, vector<1x32x128xbf16>
    %20 = vector.shape_cast %19 : vector<1x32x128xbf16> to vector<32x128xbf16>
    %c0_16 = arith.constant 0 : index
    %c0_17 = arith.constant 0 : index
    %21 = vector.load %arg3[%c0_16, %c0_17] : memref<128x256xbf16, #tpu.memory_space<vmem>>, vector<128x256xbf16>
    %cst_18 = arith.constant dense<0.000000e+00> : vector<32x256xf32>
    %22 = tpu.matmul %20, %21, %cst_18 {dimension_numbers = #tpu.dot_dimension_numbers<[1], [0], [0], [1], [0, 0, 1, 1], [], []>} : vector<32x128xbf16>, vector<128x256xbf16>, vector<32x256xf32> -> vector<32x256xf32>
    %23 = arith.addf %22, %2 : vector<32x256xf32>
    %24 = arith.maximumf %14, %23 : vector<32x256xf32>
    %25 = arith.minimumf %15, %23 : vector<32x256xf32>
    %26 = arith.addf %16, %23 : vector<32x256xf32>
    %27 = arith.mulf %23, %23 : vector<32x256xf32>
    %28 = arith.addf %18, %27 : vector<32x256xf32>
    %c3 = arith.constant 3 : index
    %c0_19 = arith.constant 0 : index
    %c0_20 = arith.constant 0 : index
    %29 = vector.load %arg1[%c3, %c0_19, %c0_20] : memref<4x32x128xbf16, #tpu.memory_space<vmem>>, vector<1x32x128xbf16>
    %30 = vector.shape_cast %29 : vector<1x32x128xbf16> to vector<32x128xbf16>
    %c0_21 = arith.constant 0 : index
    %c0_22 = arith.constant 0 : index
    %31 = vector.load %arg3[%c0_21, %c0_22] : memref<128x256xbf16, #tpu.memory_space<vmem>>, vector<128x256xbf16>
    %cst_23 = arith.constant dense<0.000000e+00> : vector<32x256xf32>
    %32 = tpu.matmul %30, %31, %cst_23 {dimension_numbers = #tpu.dot_dimension_numbers<[1], [0], [0], [1], [0, 0, 1, 1], [], []>} : vector<32x128xbf16>, vector<128x256xbf16>, vector<32x256xf32> -> vector<32x256xf32>
    %33 = arith.addf %32, %2 : vector<32x256xf32>
    %34 = arith.maximumf %24, %33 : vector<32x256xf32>
    %35 = arith.minimumf %25, %33 : vector<32x256xf32>
    %36 = arith.addf %26, %33 : vector<32x256xf32>
    %37 = arith.mulf %33, %33 : vector<32x256xf32>
    %38 = arith.addf %28, %37 : vector<32x256xf32>
    %39 = tpu.concatenate %34, %35 in 1 : vector<32x256xf32>, vector<32x256xf32> -> vector<32x512xf32>
    %40 = arith.truncf %39 : vector<32x512xf32> to vector<32x512xbf16>
    %c0_24 = arith.constant 0 : index
    %c0_25 = arith.constant 0 : index
    %41 = vector.load %arg5[%c0_24, %c0_25] : memref<32x512xbf16, #tpu.memory_space<vmem>>, vector<32x512xbf16>
    tpu.vector_store %arg5[%c0_24, %c0_25], %40 {strides = array<i32>} : memref<32x512xbf16, #tpu.memory_space<vmem>>, vector<32x512xbf16>,
    %cst_26 = arith.constant dense<0.000000e+00> : vector<256xf32>
    %42 = vector.multi_reduction <add>, %36, %cst_26 [0] : vector<32x256xf32> to vector<256xf32>
    %43 = vector.shape_cast %42 : vector<256xf32> to vector<1x256xf32>
    %cst_27 = arith.constant dense<0.000000e+00> : vector<256xf32>
    %44 = vector.multi_reduction <add>, %38, %cst_27 [0] : vector<32x256xf32> to vector<256xf32>
    %45 = vector.shape_cast %44 : vector<256xf32> to vector<1x256xf32>
    %46 = tpu.concatenate %43, %45 in 1 : vector<1x256xf32>, vector<1x256xf32> -> vector<1x512xf32>
    %47 = vector.shape_cast %46 : vector<1x512xf32> to vector<1x1x512xf32>
    %c0_28 = arith.constant 0 : index
    %c0_29 = arith.constant 0 : index
    %c0_30 = arith.constant 0 : index
    %48 = vector.load %arg6[%c0_28, %c0_29, %c0_30] : memref<1x1x512xf32, #tpu.memory_space<vmem>>, vector<1x1x512xf32>
    tpu.vector_store %arg6[%c0_28, %c0_29, %c0_30], %47 {strides = array<i32>} : memref<1x1x512xf32, #tpu.memory_space<vmem>>, vector<1x1x512xf32>,
    return
  }
  func.func @transform_0(%arg0: i32) -> (i32, i32, i32) {
    %c0_i32 = arith.constant 0 : i32
    %c0_i32_0 = arith.constant 0 : i32
    %c0_i32_1 = arith.constant 0 : i32
    return %c0_i32, %arg0, %c0_i32_0 : i32, i32, i32
  }
  func.func @transform_1(%arg0: i32) -> (i32, i32) {
    %c0_i32 = arith.constant 0 : i32
    %c0_i32_0 = arith.constant 0 : i32
    return %arg0, %c0_i32 : i32, i32
  }
  func.func @transform_2(%arg0: i32) -> (i32, i32) {
    %c0_i32 = arith.constant 0 : i32
    %c0_i32_0 = arith.constant 0 : i32
    %c0_i32_1 = arith.constant 0 : i32
    return %c0_i32, %c0_i32_0 : i32, i32
  }
  func.func @transform_3(%arg0: i32) -> (i32, i32) {
    %c0_i32 = arith.constant 0 : i32
    %c0_i32_0 = arith.constant 0 : i32
    %c0_i32_1 = arith.constant 0 : i32
    return %c0_i32, %c0_i32_0 : i32, i32
  }
  func.func @transform_4(%arg0: i32) -> (i32, i32) {
    %c0_i32 = arith.constant 0 : i32
    %c0_i32_0 = arith.constant 0 : i32
    return %arg0, %c0_i32 : i32, i32
  }
  func.func @transform_5(%arg0: i32) -> (i32, i32, i32) {
    %c0_i32 = arith.constant 0 : i32
    %c0_i32_0 = arith.constant 0 : i32
    %c0_i32_1 = arith.constant 0 : i32
    return %arg0, %c0_i32, %c0_i32_0 : i32, i32, i32
  }
}

module attributes {stable_mosaic.version = 11 : i64} {
  func.func @_finalize_kernel(%arg0: i32, %arg1: memref<32x512xbf16, #tpu.memory_space<vmem>>, %arg2: memref<1x256xf32, #tpu.memory_space<vmem>>, %arg3: memref<1x256xf32, #tpu.memory_space<vmem>>, %arg4: memref<32x256xbf16, #tpu.memory_space<vmem>>) attributes {dimension_semantics = [#tpu.dimension_semantics<parallel>], iteration_bounds = array<i64: 1>, scalar_prefetch = 0 : i64, scratch_operands = 0 : i64, tpu.core_type = #tpu.core_type<tc>, window_params = [{transform_indices = @transform_0, window_bounds = array<i64: 32, 512>}, {pipeline_mode = #tpu.pipeline_mode<synchronous>, transform_indices = @transform_1, window_bounds = array<i64: 1, 256>}, {pipeline_mode = #tpu.pipeline_mode<synchronous>, transform_indices = @transform_2, window_bounds = array<i64: 1, 256>}, {transform_indices = @transform_3, window_bounds = array<i64: 32, 256>}]} {
    %c0 = arith.constant 0 : index
    %c0_0 = arith.constant 0 : index
    %0 = vector.load %arg2[%c0, %c0_0] : memref<1x256xf32, #tpu.memory_space<vmem>>, vector<1x256xf32>
    %cst = arith.constant 0.000000e+00 : f32
    %1 = vector.broadcast %cst : f32 to vector<1x256xf32>
    %2 = arith.cmpf oge, %0, %1 : vector<1x256xf32>
    %c0_1 = arith.constant 0 : index
    %c0_2 = arith.constant 0 : index
    %3 = vector.load %arg1[%c0_1, %c0_2] : memref<32x512xbf16, #tpu.memory_space<vmem>>, vector<32x256xbf16>
    %c0_3 = arith.constant 0 : index
    %c256 = arith.constant 256 : index
    %4 = vector.load %arg1[%c0_3, %c256] : memref<32x512xbf16, #tpu.memory_space<vmem>>, vector<32x256xbf16>
    %5 = vector.shape_cast %2 : vector<1x256xi1> to vector<1x256xi1>
    %6 = vector.broadcast %5 : vector<1x256xi1> to vector<32x256xi1>
    %7 = arith.select %6, %3, %4 : vector<32x256xi1>, vector<32x256xbf16>
    %8 = arith.extf %7 : vector<32x256xbf16> to vector<32x256xf32>
    %9 = vector.broadcast %0 : vector<1x256xf32> to vector<32x256xf32>
    %10 = arith.mulf %8, %9 : vector<32x256xf32>
    %c0_4 = arith.constant 0 : index
    %c0_5 = arith.constant 0 : index
    %11 = vector.load %arg3[%c0_4, %c0_5] : memref<1x256xf32, #tpu.memory_space<vmem>>, vector<1x256xf32>
    %12 = vector.broadcast %11 : vector<1x256xf32> to vector<32x256xf32>
    %13 = arith.addf %10, %12 : vector<32x256xf32>
    %cst_6 = arith.constant 0.000000e+00 : f32
    %14 = vector.broadcast %cst_6 : f32 to vector<32x256xf32>
    %15 = arith.cmpf oge, %13, %14 : vector<32x256xf32>
    %cst_7 = arith.constant 2.000000e-01 : f32
    %16 = vector.broadcast %cst_7 : f32 to vector<32x256xf32>
    %17 = arith.mulf %16, %13 : vector<32x256xf32>
    %18 = arith.select %15, %13, %17 : vector<32x256xi1>, vector<32x256xf32>
    %19 = arith.truncf %18 : vector<32x256xf32> to vector<32x256xbf16>
    %c0_8 = arith.constant 0 : index
    %c0_9 = arith.constant 0 : index
    %20 = vector.load %arg4[%c0_8, %c0_9] : memref<32x256xbf16, #tpu.memory_space<vmem>>, vector<32x256xbf16>
    tpu.vector_store %arg4[%c0_8, %c0_9], %19 {strides = array<i32>} : memref<32x256xbf16, #tpu.memory_space<vmem>>, vector<32x256xbf16>,
    return
  }
  func.func @transform_0(%arg0: i32) -> (i32, i32) {
    %c0_i32 = arith.constant 0 : i32
    %c0_i32_0 = arith.constant 0 : i32
    return %arg0, %c0_i32 : i32, i32
  }
  func.func @transform_1(%arg0: i32) -> (i32, i32) {
    %c0_i32 = arith.constant 0 : i32
    %c0_i32_0 = arith.constant 0 : i32
    %c0_i32_1 = arith.constant 0 : i32
    return %c0_i32, %c0_i32_0 : i32, i32
  }
  func.func @transform_2(%arg0: i32) -> (i32, i32) {
    %c0_i32 = arith.constant 0 : i32
    %c0_i32_0 = arith.constant 0 : i32
    %c0_i32_1 = arith.constant 0 : i32
    return %c0_i32, %c0_i32_0 : i32, i32
  }
  func.func @transform_3(%arg0: i32) -> (i32, i32) {
    %c0_i32 = arith.constant 0 : i32
    %c0_i32_0 = arith.constant 0 : i32
    return %arg0, %c0_i32 : i32, i32
  }
}

module attributes {stable_mosaic.version = 11 : i64} {
  func.func @_global_stats_kernel(%arg0: i32, %arg1: memref<16x512xbf16, #tpu.memory_space<vmem>>, %arg2: memref<512x32xbf16, #tpu.memory_space<vmem>>, %arg3: memref<1x1x128xf32, #tpu.memory_space<vmem>>) attributes {dimension_semantics = [#tpu.dimension_semantics<parallel>], iteration_bounds = array<i64: 2>, scalar_prefetch = 0 : i64, scratch_operands = 0 : i64, tpu.core_type = #tpu.core_type<tc>, window_params = [{transform_indices = @transform_0, window_bounds = array<i64: 16, 512>}, {pipeline_mode = #tpu.pipeline_mode<synchronous>, transform_indices = @transform_1, window_bounds = array<i64: 512, 32>}, {transform_indices = @transform_2, window_bounds = array<i64: 1, 1, 128>}]} {
    %c0 = arith.constant 0 : index
    %c0_0 = arith.constant 0 : index
    %0 = vector.load %arg1[%c0, %c0_0] : memref<16x512xbf16, #tpu.memory_space<vmem>>, vector<16x512xbf16>
    %c0_1 = arith.constant 0 : index
    %c0_2 = arith.constant 0 : index
    %1 = vector.load %arg2[%c0_1, %c0_2] : memref<512x32xbf16, #tpu.memory_space<vmem>>, vector<512x32xbf16>
    %cst = arith.constant dense<0.000000e+00> : vector<16x32xf32>
    %2 = tpu.matmul %0, %1, %cst {dimension_numbers = #tpu.dot_dimension_numbers<[1], [0], [0], [1], [0, 0, 1, 1], [], []>} : vector<16x512xbf16>, vector<512x32xbf16>, vector<16x32xf32> -> vector<16x32xf32>
    %cst_3 = arith.constant dense<0xFF800000> : vector<32xf32>
    %3 = vector.multi_reduction <maximumf>, %2, %cst_3 [0] : vector<16x32xf32> to vector<32xf32>
    %4 = vector.shape_cast %3 : vector<32xf32> to vector<1x32xf32>
    %cst_4 = arith.constant dense<0x7F800000> : vector<32xf32>
    %5 = vector.multi_reduction <minimumf>, %2, %cst_4 [0] : vector<16x32xf32> to vector<32xf32>
    %6 = vector.shape_cast %5 : vector<32xf32> to vector<1x32xf32>
    %cst_5 = arith.constant dense<0.000000e+00> : vector<32xf32>
    %7 = vector.multi_reduction <add>, %2, %cst_5 [0] : vector<16x32xf32> to vector<32xf32>
    %8 = vector.shape_cast %7 : vector<32xf32> to vector<1x32xf32>
    %9 = arith.mulf %2, %2 : vector<16x32xf32>
    %cst_6 = arith.constant dense<0.000000e+00> : vector<32xf32>
    %10 = vector.multi_reduction <add>, %9, %cst_6 [0] : vector<16x32xf32> to vector<32xf32>
    %11 = vector.shape_cast %10 : vector<32xf32> to vector<1x32xf32>
    %12 = tpu.concatenate %4, %6, %8, %11 in 1 : vector<1x32xf32>, vector<1x32xf32>, vector<1x32xf32>, vector<1x32xf32> -> vector<1x128xf32>
    %13 = vector.shape_cast %12 : vector<1x128xf32> to vector<1x1x128xf32>
    %c0_7 = arith.constant 0 : index
    %c0_8 = arith.constant 0 : index
    %c0_9 = arith.constant 0 : index
    %14 = vector.load %arg3[%c0_7, %c0_8, %c0_9] : memref<1x1x128xf32, #tpu.memory_space<vmem>>, vector<1x1x128xf32>
    tpu.vector_store %arg3[%c0_7, %c0_8, %c0_9], %13 {strides = array<i32>} : memref<1x1x128xf32, #tpu.memory_space<vmem>>, vector<1x1x128xf32>,
    return
  }
  func.func @transform_0(%arg0: i32) -> (i32, i32) {
    %c0_i32 = arith.constant 0 : i32
    %c0_i32_0 = arith.constant 0 : i32
    return %arg0, %c0_i32 : i32, i32
  }
  func.func @transform_1(%arg0: i32) -> (i32, i32) {
    %c0_i32 = arith.constant 0 : i32
    %c0_i32_0 = arith.constant 0 : i32
    %c0_i32_1 = arith.constant 0 : i32
    return %c0_i32, %c0_i32_0 : i32, i32
  }
  func.func @transform_2(%arg0: i32) -> (i32, i32, i32) {
    %c0_i32 = arith.constant 0 : i32
    %c0_i32_0 = arith.constant 0 : i32
    %c0_i32_1 = arith.constant 0 : i32
    return %arg0, %c0_i32, %c0_i32_0 : i32, i32, i32
  }
}

module attributes {stable_mosaic.version = 11 : i64} {
  func.func @_finalize_kernel(%arg0: i32, %arg1: memref<2x64xf32, #tpu.memory_space<vmem>>, %arg2: memref<1x32xf32, #tpu.memory_space<vmem>>, %arg3: memref<1x32xf32, #tpu.memory_space<vmem>>, %arg4: memref<2x32xf32, #tpu.memory_space<vmem>>) attributes {dimension_semantics = [#tpu.dimension_semantics<parallel>], iteration_bounds = array<i64: 1>, scalar_prefetch = 0 : i64, scratch_operands = 0 : i64, tpu.core_type = #tpu.core_type<tc>, window_params = [{transform_indices = @transform_0, window_bounds = array<i64: 2, 64>}, {pipeline_mode = #tpu.pipeline_mode<synchronous>, transform_indices = @transform_1, window_bounds = array<i64: 1, 32>}, {pipeline_mode = #tpu.pipeline_mode<synchronous>, transform_indices = @transform_2, window_bounds = array<i64: 1, 32>}, {transform_indices = @transform_3, window_bounds = array<i64: 2, 32>}]} {
    %c0 = arith.constant 0 : index
    %c0_0 = arith.constant 0 : index
    %0 = vector.load %arg2[%c0, %c0_0] : memref<1x32xf32, #tpu.memory_space<vmem>>, vector<1x32xf32>
    %cst = arith.constant 0.000000e+00 : f32
    %1 = vector.broadcast %cst : f32 to vector<1x32xf32>
    %2 = arith.cmpf oge, %0, %1 : vector<1x32xf32>
    %c0_1 = arith.constant 0 : index
    %c0_2 = arith.constant 0 : index
    %3 = vector.load %arg1[%c0_1, %c0_2] : memref<2x64xf32, #tpu.memory_space<vmem>>, vector<2x32xf32>
    %c0_3 = arith.constant 0 : index
    %c32 = arith.constant 32 : index
    %4 = vector.load %arg1[%c0_3, %c32] : memref<2x64xf32, #tpu.memory_space<vmem>>, vector<2x32xf32>
    %5 = vector.shape_cast %2 : vector<1x32xi1> to vector<1x32xi1>
    %6 = vector.broadcast %5 : vector<1x32xi1> to vector<2x32xi1>
    %7 = arith.select %6, %3, %4 : vector<2x32xi1>, vector<2x32xf32>
    %8 = vector.broadcast %0 : vector<1x32xf32> to vector<2x32xf32>
    %9 = arith.mulf %7, %8 : vector<2x32xf32>
    %c0_4 = arith.constant 0 : index
    %c0_5 = arith.constant 0 : index
    %10 = vector.load %arg3[%c0_4, %c0_5] : memref<1x32xf32, #tpu.memory_space<vmem>>, vector<1x32xf32>
    %11 = vector.broadcast %10 : vector<1x32xf32> to vector<2x32xf32>
    %12 = arith.addf %9, %11 : vector<2x32xf32>
    %cst_6 = arith.constant 0.000000e+00 : f32
    %13 = vector.broadcast %cst_6 : f32 to vector<2x32xf32>
    %14 = arith.cmpf oge, %12, %13 : vector<2x32xf32>
    %cst_7 = arith.constant 2.000000e-01 : f32
    %15 = vector.broadcast %cst_7 : f32 to vector<2x32xf32>
    %16 = arith.mulf %15, %12 : vector<2x32xf32>
    %17 = arith.select %14, %12, %16 : vector<2x32xi1>, vector<2x32xf32>
    %c0_8 = arith.constant 0 : index
    %c0_9 = arith.constant 0 : index
    %18 = vector.load %arg4[%c0_8, %c0_9] : memref<2x32xf32, #tpu.memory_space<vmem>>, vector<2x32xf32>
    tpu.vector_store %arg4[%c0_8, %c0_9], %17 {strides = array<i32>} : memref<2x32xf32, #tpu.memory_space<vmem>>, vector<2x32xf32>,
    return
  }
  func.func @transform_0(%arg0: i32) -> (i32, i32) {
    %c0_i32 = arith.constant 0 : i32
    %c0_i32_0 = arith.constant 0 : i32
    return %arg0, %c0_i32 : i32, i32
  }
  func.func @transform_1(%arg0: i32) -> (i32, i32) {
    %c0_i32 = arith.constant 0 : i32
    %c0_i32_0 = arith.constant 0 : i32
    %c0_i32_1 = arith.constant 0 : i32
    return %c0_i32, %c0_i32_0 : i32, i32
  }
  func.func @transform_2(%arg0: i32) -> (i32, i32) {
    %c0_i32 = arith.constant 0 : i32
    %c0_i32_0 = arith.constant 0 : i32
    %c0_i32_1 = arith.constant 0 : i32
    return %c0_i32, %c0_i32_0 : i32, i32
  }
  func.func @transform_3(%arg0: i32) -> (i32, i32) {
    %c0_i32 = arith.constant 0 : i32
    %c0_i32_0 = arith.constant 0 : i32
    return %arg0, %c0_i32 : i32, i32
  }
}

</mosaic_0001>

<bundles_post_ra>
// kernel: dgcnn_forward.11
= control target key start
LH: loop header
LB: loop body
LE: loop exit
PB: predicated region body
PF: predicated region fallthrough
CT: control target
= control target key end

     0   :  { %s120_s16 = smov 64   ;;  %v21_v4 = vlaneseq  ;;  %v121_v8 = vmov 0   ;;  %vm100_vm5 = vcmask 519168   ;;  %s188_s0 = inlined_call_operand.vmem [shape: bf16[32,128], index: 0, kind: input, shape index: {}]   ;;  %s189_s1 = inlined_call_operand.vmem [shape: f32[1,64], index: 1, kind: input, shape index: {}]   ;;  %s190_s2 = inlined_call_operand.vmem [shape: f32[1,64], index: 2, kind: input, shape index: {}]   ;;  %s191_s3 = inlined_call_operand.vmem [shape: bf16[32,64], index: 3, kind: output, shape index: {}]  }
   0x1   :  { %v18_v0 = vld [vmem:[%s188_s0 + $0x8] sm:$0xf]  ;;  %v16_v1 = vld [vmem:[%s188_s0] sm:$0xf]  ;;  %v19_v2 = vld [vmem:[%s188_s0 + $0xc] sm:$0xf] }
   0x2   :  { %35 = vrot.lane.b32.xlu1 %v18_v0, %s120_s16  ;;  %31 = vrot.lane.b32.xlu0 %v16_v1, %s120_s16  ;;  %v17_v3 = vld [vmem:[%s188_s0 + $0x4] sm:$0xf]  ;;  %v14_v5 = vld [vmem:[%s189_s1] sm:$0x1]  ;;  %v22_v6 = vshrl.u32 %v21_v4, 7 }
   0x3   :  { %vm15_vm0 = vcmp.ge.f32.partialorder %v14_v5, 0.0  ;;  %v109_v19 = vld [vmem:[%s190_s2] ss:$0 sm:$0xff] }
   0x4   :  { %v23_v7 = vsub.s32 0, %v22_v6  ;;  %v20_v9 = vsel %vm15_vm0, 1, %v121_v8 }
   0x6   :  { %37 = vrot.lane.b32.xlu1 %v19_v2, %s120_s16  ;;  %33 = vrot.lane.b32.xlu0 %v17_v3, %s120_s16  ;;  %v24_v10 = vrot.slane %v20_v9, %v23_v7  ;;  %v55_v12 = vrot.slane %v14_v5, %v23_v7 }
   0x8   :  { %vm25_vm1 = vcmp.eq.s32.totalorder %v24_v10, 1 }
   0x9   :  { %vm157_vm2 = vmpackc.low %vm25_vm1, %vm25_vm1 }
  0x74   :  { %v36_v13 = vpop.permute.xlu1 %35  ;;  %v32_v14 = vpop.permute.xlu0 %31 }
  0x75   :  { %v45_v15 = vsel %vm157_vm2, %v18_v0, %v36_v13  ;;  %v43_v16 = vsel %vm157_vm2, %v16_v1, %v32_v14 }
  0x76   :  { %v49_v17 = vunpack.c.l.bf16 %v45_v15  ;;  %v47_v18 = vunpack.c.l.bf16 %v43_v16 }
  0x78   :  { %v59_v20 = vmul.f32 %v55_v12, %v49_v17  ;;  %v57_v21 = vmul.f32 %v55_v12, %v47_v18  ;;  %v38_v22 = vpop.permute.xlu1 %37  ;;  %v34_v23 = vpop.permute.xlu0 %33 }
  0x79   :  { %v46_v24 = vsel %vm157_vm2, %v19_v2, %v38_v22  ;;  %v44_v25 = vsel %vm157_vm2, %v17_v3, %v34_v23 }
  0x7a   :  { %v70_v26 = vadd.f32 %v109_v19, %v59_v20  ;;  %v68_v27 = vadd.f32 %v109_v19, %v57_v21  ;;  %v50_v28 = vunpack.c.l.bf16 %v46_v24  ;;  %v48_v29 = vunpack.c.l.bf16 %v44_v25 }
  0x7c   :  { %vm74_vm3 = vcmp.ge.f32.partialorder %v70_v26, 0.0  ;;  %v78_v30 = vmul.f32 0.2, %v70_v26  ;;  %vm72_vm4 = vcmp.ge.f32.partialorder %v68_v27, 0.0  ;;  %v76_v31 = vmul.f32 0.2, %v68_v27 }
  0x7d   :  { %v60_v32 = vmul.f32 %v55_v12, %v50_v28  ;;  %v58_v33 = vmul.f32 %v55_v12, %v48_v29 }
  0x7e   :  { %v82_v34 = vsel %vm74_vm3, %v70_v26, %v78_v30  ;;  %v80_v35 = vsel %vm72_vm4, %v68_v27, %v76_v31 }
  0x7f   :  { %v116_v36 = vpack.c.bf16 %v82_v34, %v82_v34  ;;  %v114_v37 = vpack.c.bf16 %v80_v35, %v80_v35  ;;  %v71_v38 = vadd.f32 %v109_v19, %v60_v32  ;;  %v69_v39 = vadd.f32 %v109_v19, %v58_v33 }
  0x81   :  { %103 = vst.msk [vmem:[%s191_s3 + $0x8] sm:$0xf] %vm100_vm5, %v116_v36  ;;  %101 = vst.msk [vmem:[%s191_s3] sm:$0xf] %vm100_vm5, %v114_v37  ;;  %vm75_vm6 = vcmp.ge.f32.partialorder %v71_v38, 0.0  ;;  %vm73_vm7 = vcmp.ge.f32.partialorder %v69_v39, 0.0 }
  0x82   :  { %v79_v40 = vmul.f32 0.2, %v71_v38  ;;  %v77_v41 = vmul.f32 0.2, %v69_v39 }
  0x84   :  { %v83_v42 = vsel %vm75_vm6, %v71_v38, %v79_v40  ;;  %v81_v43 = vsel %vm73_vm7, %v69_v39, %v77_v41 }
  0x85   :  { %v117_v44 = vpack.c.bf16 %v83_v42, %v83_v42  ;;  %v115_v45 = vpack.c.bf16 %v81_v43, %v81_v43 }
  0x87   :  { %104 = vst.msk [vmem:[%s191_s3 + $0xc] sm:$0xf] %vm100_vm5, %v117_v44  ;;  %102 = vst.msk [vmem:[%s191_s3 + $0x4] sm:$0xf] %vm100_vm5, %v115_v45 }

// kernel: dgcnn_forward.10
= control target key start
LH: loop header
LB: loop body
LE: loop exit
PB: predicated region body
PF: predicated region fallthrough
CT: control target
= control target key end

     0   :  { %vm42_vm0 = vcmask 1043456   ;;  %vm35_vm1 = vcmask 64512   ;;  %vm458_vm2 = vcmask 523264   ;;  %s852_s3 = inlined_call_operand.vmem [shape: bf16[8,64], index: 3, kind: input, shape index: {}]   ;;  %s853_s2 = inlined_call_operand.vmem [shape: bf16[8,64], index: 2, kind: input, shape index: {}]   ;;  %s854_s1 = inlined_call_operand.vmem [shape: bf16[32,8], index: 1, kind: input, shape index: {}]   ;;  %s855_s0 = inlined_call_operand.vmem [shape: bf16[4,32,8], index: 0, kind: input, shape index: {}]   ;;  %s856_s4 = inlined_call_operand.vmem [shape: bf16[32,128], index: 4, kind: output, shape index: {0}]   ;;  %s857_s5 = inlined_call_operand.vmem [shape: f32[1,1,128], index: 5, kind: output, shape index: {1}]  }
   0x1   :  { %v24_v0 = vld [vmem:[%s852_s3] sm:$0xf]  ;;  %v637_v6 = vld [vmem:[%s854_s1 + $0x8] sm:$0xff]   ;;  %v639_v8 = vld [vmem:[%s855_s0 + $0x10] sm:$0xff]  }
   0x2   :  { %v99_v1 = vld [vmem:[%s853_s2] sm:$0xf]  ;;  %619 = vmatprep.subr.msk.bf16.mxu0 %vm42_vm0, %v24_v0  ;;  %v44_v2 = vsel %vm42_vm0, %v24_v0, 0  ;;  %v638_v7 = vld [vmem:[%s855_s0 + $0x8] sm:$0xff]   ;;  %v641_v10 = vld [vmem:[%s855_s0 + $0x18] sm:$0xff]  }
   0x3   :  { %620 = vmatprep.subr.msk.bf16.mxu1 %vm42_vm0, %v99_v1  ;;  %v117_v3 = vsel %vm42_vm0, %v99_v1, 0  ;;  %v635_v4 = vld [vmem:[%s854_s1] sm:$0xff]   ;;  %590 = vmatpush3.bf16.msra.mxu0 %v44_v2  ;;  %v642_v11 = vld [vmem:[%s855_s0 + $0x28] sm:$0xff]   ;;  %v643_v12 = vld [vmem:[%s855_s0 + $0x30] sm:$0xff]  }
   0x4   :  { %v636_v5 = vld [vmem:[%s855_s0] sm:$0xff]   ;;  %596 = vmatpush3.bf16.msra.mxu1 %v117_v3  ;;  %591 = vmatprep.mubr.msk.bf16.mxu0 %vm35_vm1, %v635_v4  ;;  %v644_v13 = vld [vmem:[%s855_s0 + $0x38] sm:$0xff]  }
   0x5   :  { %597 = vmatprep.mubr.msk.bf16.mxu1 %vm35_vm1, %v636_v5  ;;  %621 = vmatprep.subr.msk.bf16.mxu0 %vm42_vm0, %v99_v1  ;;  %v640_v9 = vld [vmem:[%s855_s0 + $0x20] sm:$0xff]   ;;  %s645_s0 = smov 64  }
   0x6   :  { %622 = vmatprep.subr.msk.bf16.mxu1 %vm42_vm0, %v99_v1  ;;  %592 = vmatmul.mubr.msk.bf16.vlgmr.msra.gmra.mrb[0].mxu0 %vm35_vm1, %v637_v6 }
   0x7   :  { %598 = vmatmul.mubr.msk.bf16.vlgmr.msra.gmra.mrb[0].mxu1 %vm35_vm1, %v638_v7  ;;  %602 = vmatpush3.bf16.msra.mxu0 %v117_v3 }
   0x8   :  { %608 = vmatpush3.bf16.msra.mxu1 %v117_v3  ;;  %603 = vmatprep.mubr.msk.bf16.mxu0 %vm35_vm1, %v639_v8 }
   0x9   :  { %609 = vmatprep.mubr.msk.bf16.mxu1 %vm35_vm1, %v640_v9  ;;  %623 = vmatprep.subr.msk.bf16.mxu0 %vm42_vm0, %v99_v1 }
   0xe   :  { %604 = vmatmul.mubr.msk.bf16.vlgmr.msra.gmra.mrb[4].mxu0 %vm35_vm1, %v641_v10 }
   0xf   :  { %610 = vmatmul.mubr.msk.bf16.vlgmr.msra.gmra.mrb[4].mxu1 %vm35_vm1, %v642_v11  ;;  %614 = vmatpush3.bf16.msra.mxu0 %v117_v3 }
  0x10   :  { %615 = vmatprep.mubr.msk.bf16.mxu0 %vm35_vm1, %v643_v12 }
  0x16   :  { %616 = vmatmul.mubr.msk.bf16.vlgmr.msra.gmra.mrb[8].mxu0 %vm35_vm1, %v644_v13 }
  0xd9   :  { %v729_v14 = vpop.f32.mrb[0].mxu0 }
  0xda   :  { %v599_v15 = vpop.f32.mrb[0].mxu1  ;;  %v80_v16 = vpop.f32.mrb[1].mxu0 }
  0xdb   :  { %v732_v17 = vadd.f32 %v599_v15, %v729_v14  ;;  %v153_v18 = vpop.f32.mrb[1].mxu1  ;;  %v594_v19 = vpop.f32.mrb[2].mxu0 }
  0xdc   :  { %v734_v20 = vadd.f32 %v153_v18, %v80_v16  ;;  %v600_v21 = vpop.f32.mrb[2].mxu1  ;;  %v83_v22 = vpop.f32.mrb[3].mxu0 }
  0xdd   :  { %v736_v23 = vadd.f32 %v600_v21, %v594_v19  ;;  %v156_v24 = vpop.f32.mrb[3].mxu1  ;;  %v170_v27 = vmul.f32 %v732_v17, %v732_v17 }
  0xde   :  { %v738_v25 = vadd.f32 %v156_v24, %v83_v22  ;;  %v168_v28 = vmul.f32 %v734_v20, %v734_v20 }
  0xdf   :  { %v171_v32 = vmul.f32 %v736_v23, %v736_v23 }
  0xe0   :  { %v169_v33 = vmul.f32 %v738_v25, %v738_v25 }
  0xe1   :  { %v605_v26 = vpop.f32.mrb[4].mxu0 }
  0xe2   :  { %v745_v29 = vadd.f32 %v605_v26, %v729_v14  ;;  %v611_v30 = vpop.f32.mrb[4].mxu1  ;;  %v227_v31 = vpop.f32.mrb[5].mxu0 }
  0xe3   :  { %v752_v34 = vadd.f32 %v611_v30, %v729_v14  ;;  %v754_v35 = vadd.f32 %v227_v31, %v80_v16  ;;  %v317_v36 = vpop.f32.mrb[5].mxu1  ;;  %v606_v37 = vpop.f32.mrb[6].mxu0 }
  0xe4   :  { %v244_v38 = vmax.f32 %v732_v17, %v745_v29  ;;  %v248_v39 = vmin.f32 %v732_v17, %v745_v29  ;;  %v252_v40 = vadd.f32 %v745_v29, %v732_v17  ;;  %v256_v41 = vmul.f32 %v745_v29, %v745_v29  ;;  %v612_v42 = vpop.f32.mrb[6].mxu1  ;;  %v230_v43 = vpop.f32.mrb[7].mxu0 }
  0xe5   :  { %v346_v44 = vmul.f32 %v752_v34, %v752_v34  ;;  %v242_v45 = vmax.f32 %v734_v20, %v754_v35  ;;  %v250_v46 = vadd.f32 %v754_v35, %v734_v20  ;;  %v254_v47 = vmul.f32 %v754_v35, %v754_v35  ;;  %v320_v48 = vpop.f32.mrb[7].mxu1 }
  0xe6   :  { %v260_v49 = vadd.f32 %v256_v41, %v170_v27  ;;  %v773_v50 = vmax.f32 %v244_v38, %v752_v34  ;;  %v342_v51 = vadd.f32 %v752_v34, %v252_v40  ;;  %v318_v52 = vadd.f32 %v317_v36, %v80_v16 }
  0xe7   :  { %v258_v53 = vadd.f32 %v254_v47, %v168_v28  ;;  %v239_v54 = vadd.f32 %v606_v37, %v594_v19  ;;  %v329_v55 = vadd.f32 %v612_v42, %v594_v19  ;;  %v231_v56 = vadd.f32 %v230_v43, %v83_v22 }
  0xe8   :  { %v350_v57 = vadd.f32 %v346_v44, %v260_v49  ;;  %v776_v58 = vmax.f32 %v242_v45, %v318_v52  ;;  %v340_v59 = vadd.f32 %v318_v52, %v250_v46  ;;  %v344_v60 = vmul.f32 %v318_v52, %v318_v52 }
  0xe9   :  { %v245_v61 = vmax.f32 %v736_v23, %v239_v54  ;;  %v249_v62 = vmin.f32 %v736_v23, %v239_v54  ;;  %v253_v63 = vadd.f32 %v239_v54, %v736_v23  ;;  %v257_v0 = vmul.f32 %v239_v54, %v239_v54  ;;  %v617_v1 = vpop.f32.mrb[8].mxu0 }
  0xea   :  { %v348_v2 = vadd.f32 %v344_v60, %v258_v53  ;;  %v347_v3 = vmul.f32 %v329_v55, %v329_v55  ;;  %v243_v4 = vmax.f32 %v738_v25, %v231_v56  ;;  %v251_v5 = vadd.f32 %v231_v56, %v738_v25  ;;  %v407_v6 = vpop.f32.mrb[9].mxu0 }
  0xeb   :  { %v261_v7 = vadd.f32 %v257_v0, %v171_v32  ;;  %v783_v8 = vmax.f32 %v245_v61, %v329_v55  ;;  %v343_v9 = vadd.f32 %v329_v55, %v253_v63  ;;  %v255_v10 = vmul.f32 %v231_v56, %v231_v56  ;;  %v618_v11 = vpop.f32.mrb[10].mxu0 }
  0xec   :  { %v321_v12 = vadd.f32 %v320_v48, %v83_v22  ;;  %v786_v13 = vadd.f32 %v617_v1, %v729_v14  ;;  %v788_v15 = vadd.f32 %v407_v6, %v80_v16  ;;  %v790_v18 = vadd.f32 %v618_v11, %v594_v19  ;;  %v410_v21 = vpop.f32.mrb[11].mxu0 }
  0xed   :  { %v351_v23 = vadd.f32 %v347_v3, %v261_v7  ;;  %v259_v24 = vadd.f32 %v255_v10, %v169_v33  ;;  %v792_v26 = vadd.f32 %v410_v21, %v83_v22  ;;  %v246_v27 = vmin.f32 %v734_v20, %v754_v35 }
  0xee   :  { %v796_v28 = vmax.f32 %v243_v4, %v321_v12  ;;  %v341_v30 = vadd.f32 %v321_v12, %v251_v5  ;;  %v345_v31 = vmul.f32 %v321_v12, %v321_v12  ;;  %v424_v14 = vmax.f32 %v773_v50, %v786_v13 }
  0xef   :  { %v432_v16 = vadd.f32 %v786_v13, %v342_v51  ;;  %v436_v19 = vmul.f32 %v786_v13, %v786_v13  ;;  %v422_v32 = vmax.f32 %v776_v58, %v788_v15  ;;  %v430_v22 = vadd.f32 %v788_v15, %v340_v59 }
  0xf0   :  { %v349_v33 = vadd.f32 %v345_v31, %v259_v24  ;;  %v434_v20 = vmul.f32 %v788_v15, %v788_v15  ;;  %v425_v35 = vmax.f32 %v783_v8, %v790_v18  ;;  %v433_v36 = vadd.f32 %v790_v18, %v343_v9 }
  0xf1   :  { %v440_v37 = vadd.f32 %v436_v19, %v350_v57  ;;  %v437_v38 = vmul.f32 %v790_v18, %v790_v18  ;;  %v423_v41 = vmax.f32 %v796_v28, %v792_v26  ;;  %v431_v42 = vadd.f32 %v792_v26, %v341_v30 }
  0xf2   :  { %v438_v40 = vadd.f32 %v434_v20, %v348_v2  ;;  %v435_v43 = vmul.f32 %v792_v26, %v792_v26  ;;  %v247_v44 = vmin.f32 %v738_v25, %v231_v56  ;;  %v336_v45 = vmin.f32 %v246_v27, %v318_v52 }
  0xf3   :  { %v338_v46 = vmin.f32 %v248_v39, %v752_v34  ;;  %v483_v47 = vsel %vm458_vm2, %v430_v22, 0.0  ;;  %v484_v48 = vsel %vm458_vm2, %v431_v42, 0.0  ;;  %v339_v49 = vmin.f32 %v249_v62, %v329_v55 }
  0xf4   :  { %v441_v51 = vadd.f32 %v437_v38, %v351_v23  ;;  %v439_v53 = vadd.f32 %v435_v43, %v349_v33  ;;  %v485_v54 = vadd.f32 %v484_v48, %v483_v47  ;;  %v337_v57 = vmin.f32 %v247_v44, %v321_v12 }
  0xf5   :  { %v426_v58 = vmin.f32 %v336_v45, %v788_v15  ;;  %v486_v59 = vsel %vm458_vm2, %v432_v16, 0.0  ;;  %v428_v25 = vmin.f32 %v338_v46, %v786_v13  ;;  %v429_v52 = vmin.f32 %v339_v49, %v790_v18 }
  0xf6   :  { %v487_v56 = vadd.f32 %v486_v59, %v485_v54  ;;  %v427_v17 = vmin.f32 %v337_v57, %v792_v26  ;;  %v496_v29 = vsel %vm458_vm2, %v438_v40, 0.0  ;;  %v497_v34 = vsel %vm458_vm2, %v439_v53, 0.0 }
  0xf7   :  { %v488_v39 = vsel %vm458_vm2, %v433_v36, 0.0  ;;  %v630_v55 = vpack.i.bf16 %v429_v52, %v428_v25  ;;  %v498_v60 = vadd.f32 %v497_v34, %v496_v29  ;;  %v499_v62 = vsel %vm458_vm2, %v440_v37, 0.0 }
  0xf8   :  { %v625_v61 = vpack.i.bf16 %v427_v17, %v426_v58  ;;  %v489_v63 = vadd.f32 %v488_v39, %v487_v56  ;;  %v501_v1 = vsel %vm458_vm2, %v441_v51, 0.0 }
  0xf9   :  { %v500_v0 = vadd.f32 %v499_v62, %v498_v60 }
  0xfa   :  { %626 = vrot.lane.b32.xlu0 %v625_v61, %s645_s0  ;;  %v490_v9 = vrot.slane %v489_v63, 4 }
  0xfb   :  { %v502_v2 = vadd.f32 %v501_v1, %v500_v0 }
  0xfc   :  { %v491_v10 = vadd.f32 %v490_v9, %v489_v63 }
  0xfd   :  { %v503_v3 = vrot.slane %v502_v2, 4 }
  0xfe   :  { %631 = vrot.lane.b32.xlu0 %v630_v55, %s645_s0  ;;  %v492_v18 = vrot.slane %v491_v10, 2 }
  0xff   :  { %v504_v4 = vadd.f32 %v503_v3, %v502_v2 }
 0x100   :  { %v493_v30 = vadd.f32 %v492_v18, %v491_v10 }
 0x101   :  { %v505_v5 = vrot.slane %v504_v4, 2 }
 0x103   :  { %v506_v6 = vadd.f32 %v505_v5, %v504_v4 }
 0x105   :  { %v507_v7 = vrot.slane %v506_v6, 1 }
 0x107   :  { %v508_v8 = vadd.f32 %v507_v7, %v506_v6 }
 0x109   :  { %510 = vrot.lane.b32.xlu1 %v508_v8, %s645_s0 }
 0x16c   :  { %v627_v11 = vpop.permute.xlu0 %626 }
 0x16d   :  { %v629_v12 = vunpack.i.h.bf16 %v627_v11  ;;  %v628_v15 = vunpack.i.l.bf16 %v627_v11 }
 0x16f   :  { %v460_v21 = vsel %vm458_vm2, %v423_v41, %v629_v12  ;;  %v459_v23 = vsel %vm458_vm2, %v422_v32, %v628_v15  ;;  %v494_v32 = vrot.slane %v493_v30, 1 }
 0x170   :  { %v566_v24 = vpack.c.bf16 %v460_v21, %v459_v23  ;;  %v632_v26 = vpop.permute.xlu0 %631 }
 0x171   :  { %v634_v27 = vunpack.i.h.bf16 %v632_v26  ;;  %v633_v28 = vunpack.i.l.bf16 %v632_v26  ;;  %v495_v22 = vadd.f32 %v494_v32, %v493_v30 }
 0x172   :  { %567 = vst [vmem:[%s856_s4] sm:$0xff] %v566_v24  }
 0x173   :  { %v462_v31 = vsel %vm458_vm2, %v425_v35, %v634_v27  ;;  %v461_v16 = vsel %vm458_vm2, %v424_v14, %v633_v28 }
 0x174   :  { %v571_v19 = vpack.c.bf16 %v462_v31, %v461_v16 }
 0x176   :  { %573 = vst [vmem:[%s856_s4 + $0x8] sm:$0xff] %v571_v19  }
 0x17b   :  { %v511_v33 = vpop.permute.xlu1 %510 }
 0x17c   :  { %v513_v20 = vsel %vm458_vm2, %v495_v22, %v511_v33 }
 0x17d   :  { %514 = vst [vmem:[%s857_s5] sm:$0x1] %v513_v20 }

// kernel: dgcnn_forward.15
= control target key start
LH: loop header
LB: loop body
LE: loop exit
PB: predicated region body
PF: predicated region fallthrough
CT: control target
= control target key end

     0   :  { %v25_v0 = vlaneseq  ;;  %v117_v3 = vmov 0   ;;  %s174_s1 = inlined_call_operand.vmem [shape: f32[1,128], index: 1, kind: input, shape index: {}]   ;;  %s175_s0 = inlined_call_operand.vmem [shape: bf16[32,256], index: 0, kind: input, shape index: {}]   ;;  %s176_s2 = inlined_call_operand.vmem [shape: f32[1,128], index: 2, kind: input, shape index: {}]   ;;  %s177_s3 = inlined_call_operand.vmem [shape: bf16[32,128], index: 3, kind: output, shape index: {}]  }
   0x1   :  { %v14_v1 = vld [vmem:[%s174_s1] sm:$0x1]  ;;  %v17_v7 = vld [vmem:[%s175_s0 + $0x8] sm:$0xf]  ;;  %v20_v8 = vld [vmem:[%s175_s0 + $0x4] sm:$0xf] }
   0x2   :  { %vm15_vm0 = vcmp.ge.f32.partialorder %v14_v1, 0.0  ;;  %v26_v2 = vshrl.u32 %v25_v0, 7  ;;  %v16_v6 = vld [vmem:[%s175_s0] sm:$0xf]  ;;  %v21_v9 = vld [vmem:[%s175_s0 + $0xc] sm:$0xf] }
   0x3   :  { %v24_v4 = vsel %vm15_vm0, 1, %v117_v3  ;;  %v18_v11 = vld [vmem:[%s175_s0 + $0x10] sm:$0xf]  ;;  %v19_v12 = vld [vmem:[%s175_s0 + $0x18] sm:$0xf] }
   0x4   :  { %v27_v5 = vsub.s32 0, %v26_v2  ;;  %v22_v13 = vld [vmem:[%s175_s0 + $0x14] sm:$0xf]  ;;  %v23_v14 = vld [vmem:[%s175_s0 + $0x1c] sm:$0xf] }
   0x5   :  { %v96_v24 = vld [vmem:[%s176_s2] ss:$0 sm:$0xff] }
   0x6   :  { %v28_v10 = vrot.slane %v24_v4, %v27_v5  ;;  %v43_v15 = vrot.slane %v14_v1, %v27_v5 }
   0x8   :  { %vm29_vm1 = vcmp.eq.s32.totalorder %v28_v10, 1 }
   0x9   :  { %vm30_vm2 = vmpackc.low %vm29_vm1, %vm29_vm1 }
   0xa   :  { %v31_v16 = vsel %vm30_vm2, %v16_v6, %v20_v8  ;;  %v32_v17 = vsel %vm30_vm2, %v17_v7, %v21_v9  ;;  %v33_v18 = vsel %vm30_vm2, %v18_v11, %v22_v13  ;;  %v34_v19 = vsel %vm30_vm2, %v19_v12, %v23_v14 }
   0xb   :  { %v35_v20 = vunpack.c.l.bf16 %v31_v16  ;;  %v36_v21 = vunpack.c.l.bf16 %v32_v17  ;;  %v37_v22 = vunpack.c.l.bf16 %v33_v18  ;;  %v38_v23 = vunpack.c.l.bf16 %v34_v19 }
   0xd   :  { %v45_v25 = vmul.f32 %v43_v15, %v35_v20  ;;  %v46_v26 = vmul.f32 %v43_v15, %v36_v21  ;;  %v47_v27 = vmul.f32 %v43_v15, %v37_v22  ;;  %v48_v28 = vmul.f32 %v43_v15, %v38_v23 }
   0xf   :  { %v56_v29 = vadd.f32 %v96_v24, %v45_v25  ;;  %v57_v30 = vadd.f32 %v96_v24, %v46_v26  ;;  %v58_v31 = vadd.f32 %v96_v24, %v47_v27  ;;  %v59_v32 = vadd.f32 %v96_v24, %v48_v28 }
  0x11   :  { %vm60_vm3 = vcmp.ge.f32.partialorder %v56_v29, 0.0  ;;  %vm61_vm4 = vcmp.ge.f32.partialorder %v57_v30, 0.0  ;;  %v64_v33 = vmul.f32 0.2, %v56_v29  ;;  %v65_v34 = vmul.f32 0.2, %v57_v30 }
  0x12   :  { %vm62_vm5 = vcmp.ge.f32.partialorder %v58_v31, 0.0  ;;  %vm63_vm6 = vcmp.ge.f32.partialorder %v59_v32, 0.0  ;;  %v66_v35 = vmul.f32 0.2, %v58_v31  ;;  %v67_v36 = vmul.f32 0.2, %v59_v32 }
  0x13   :  { %v68_v37 = vsel %vm60_vm3, %v56_v29, %v64_v33  ;;  %v69_v38 = vsel %vm61_vm4, %v57_v30, %v65_v34 }
  0x14   :  { %v108_v39 = vpack.c.bf16 %v69_v38, %v68_v37  ;;  %v70_v40 = vsel %vm62_vm5, %v58_v31, %v66_v35  ;;  %v71_v41 = vsel %vm63_vm6, %v59_v32, %v67_v36 }
  0x15   :  { %v113_v42 = vpack.c.bf16 %v71_v41, %v70_v40 }
  0x16   :  { %109 = vst [vmem:[%s177_s3] sm:$0xff] %v108_v39  }
  0x17   :  { %115 = vst [vmem:[%s177_s3 + $0x8] sm:$0xff] %v113_v42  }

// kernel: dgcnn_forward.14
= control target key start
LH: loop header
LB: loop body
LE: loop exit
PB: predicated region body
PF: predicated region fallthrough
CT: control target
= control target key end

     0   :  { %vm66_vm0 = vcmask 523264   ;;  %s865_s3 = inlined_call_operand.vmem [shape: bf16[64,128], index: 3, kind: input, shape index: {}]   ;;  %s866_s2 = inlined_call_operand.vmem [shape: bf16[64,128], index: 2, kind: input, shape index: {}]   ;;  %s867_s1 = inlined_call_operand.vmem [shape: bf16[32,64], index: 1, kind: input, shape index: {}]   ;;  %s868_s0 = inlined_call_operand.vmem [shape: bf16[4,32,64], index: 0, kind: input, shape index: {}]   ;;  %s869_s4 = inlined_call_operand.vmem [shape: bf16[32,256], index: 4, kind: output, shape index: {0}]   ;;  %s870_s5 = inlined_call_operand.vmem [shape: f32[1,1,256], index: 5, kind: output, shape index: {1}]  }
   0x1   :  { %v713_v0 = vld [vmem:[%s865_s3] sm:$0xff]   ;;  %v715_v2 = vld [vmem:[%s865_s3 + $0x8] sm:$0xff]   ;;  %v717_v4 = vld [vmem:[%s865_s3 + $0x10] sm:$0xff]  }
   0x2   :  { %v714_v1 = vld [vmem:[%s866_s2] sm:$0xff]   ;;  %652 = vmatprep.subr.bf16.mxu0 %v713_v0  ;;  %v716_v3 = vld [vmem:[%s866_s2 + $0x8] sm:$0xff]   ;;  %v718_v5 = vld [vmem:[%s866_s2 + $0x10] sm:$0xff]  }
   0x3   :  { %664 = vmatprep.subr.bf16.mxu1 %v714_v1  ;;  %653 = vmatpush3.bf16.msra.mxu0 %v713_v0  ;;  %v719_v6 = vld [vmem:[%s865_s3 + $0x18] sm:$0xff]   ;;  %v721_v8 = vld [vmem:[%s867_s1] sm:$0xff]   ;;  %v723_v10 = vld [vmem:[%s867_s1 + $0x8] sm:$0xff]  }
   0x4   :  { %665 = vmatpush3.bf16.msra.mxu1 %v714_v1  ;;  %654 = vmatprep.subr.bf16.mxu0 %v715_v2  ;;  %v720_v7 = vld [vmem:[%s866_s2 + $0x18] sm:$0xff]   ;;  %v722_v9 = vld [vmem:[%s868_s0] sm:$0xff]   ;;  %v724_v11 = vld [vmem:[%s868_s0 + $0x8] sm:$0xff]  }
   0x5   :  { %666 = vmatprep.subr.bf16.mxu1 %v716_v3  ;;  %660 = vmatprep.mubr.msk.bf16.mxu0 %vm66_vm0, %v721_v8  ;;  %v725_v12 = vld [vmem:[%s868_s0 + $0x10] sm:$0xff]   ;;  %v726_v13 = vld [vmem:[%s868_s0 + $0x20] sm:$0xff]   ;;  %v727_v14 = vld [vmem:[%s868_s0 + $0x18] sm:$0xff]  }
   0x6   :  { %672 = vmatprep.mubr.msk.bf16.mxu1 %vm66_vm0, %v722_v9  ;;  %v728_v15 = vld [vmem:[%s868_s0 + $0x28] sm:$0xff]   ;;  %v729_v16 = vld [vmem:[%s868_s0 + $0x30] sm:$0xff]   ;;  %v730_v17 = vld [vmem:[%s868_s0 + $0x38] sm:$0xff]  }
   0x7   :  { %655 = vmatpush3.bf16.msra.mxu0 %v715_v2 }
   0x8   :  { %667 = vmatpush3.bf16.msra.mxu1 %v716_v3  ;;  %656 = vmatprep.subr.bf16.mxu0 %v717_v4 }
   0x9   :  { %668 = vmatprep.subr.bf16.mxu1 %v718_v5 }
   0xb   :  { %657 = vmatpush3.bf16.msra.mxu0 %v717_v4 }
   0xc   :  { %669 = vmatpush3.bf16.msra.mxu1 %v718_v5  ;;  %658 = vmatprep.subr.bf16.mxu0 %v719_v6 }
   0xd   :  { %670 = vmatprep.subr.bf16.mxu1 %v720_v7 }
   0xf   :  { %659 = vmatpush3.bf16.msra.mxu0 %v719_v6 }
  0x10   :  { %671 = vmatpush3.bf16.msra.mxu1 %v720_v7  ;;  %676 = vmatprep.subr.bf16.mxu0 %v714_v1 }
  0x11   :  { %688 = vmatprep.subr.bf16.mxu1 %v714_v1 }
  0x12   :  { %661 = vmatmul.mubr.msk.bf16.vlgmr.msra.gmra.mrb[0].mxu0 %vm66_vm0, %v723_v10 }
  0x13   :  { %673 = vmatmul.mubr.msk.bf16.vlgmr.msra.gmra.mrb[0].mxu1 %vm66_vm0, %v724_v11  ;;  %677 = vmatpush3.bf16.msra.mxu0 %v714_v1 }
  0x14   :  { %689 = vmatpush3.bf16.msra.mxu1 %v714_v1  ;;  %678 = vmatprep.subr.bf16.mxu0 %v716_v3 }
  0x15   :  { %690 = vmatprep.subr.bf16.mxu1 %v716_v3  ;;  %684 = vmatprep.mubr.msk.bf16.mxu0 %vm66_vm0, %v725_v12 }
  0x16   :  { %696 = vmatprep.mubr.msk.bf16.mxu1 %vm66_vm0, %v726_v13 }
  0x17   :  { %679 = vmatpush3.bf16.msra.mxu0 %v716_v3 }
  0x18   :  { %691 = vmatpush3.bf16.msra.mxu1 %v716_v3  ;;  %680 = vmatprep.subr.bf16.mxu0 %v718_v5 }
  0x19   :  { %692 = vmatprep.subr.bf16.mxu1 %v718_v5 }
  0x1b   :  { %681 = vmatpush3.bf16.msra.mxu0 %v718_v5 }
  0x1c   :  { %693 = vmatpush3.bf16.msra.mxu1 %v718_v5  ;;  %682 = vmatprep.subr.bf16.mxu0 %v720_v7 }
  0x1d   :  { %694 = vmatprep.subr.bf16.mxu1 %v720_v7 }
  0x1f   :  { %683 = vmatpush3.bf16.msra.mxu0 %v720_v7 }
  0x20   :  { %695 = vmatpush3.bf16.msra.mxu1 %v720_v7  ;;  %700 = vmatprep.subr.bf16.mxu0 %v714_v1 }
  0x22   :  { %685 = vmatmul.mubr.msk.bf16.vlgmr.msra.gmra.mrb[4].mxu0 %vm66_vm0, %v727_v14 }
  0x23   :  { %697 = vmatmul.mubr.msk.bf16.vlgmr.msra.gmra.mrb[4].mxu1 %vm66_vm0, %v728_v15  ;;  %701 = vmatpush3.bf16.msra.mxu0 %v714_v1 }
  0x24   :  { %702 = vmatprep.subr.bf16.mxu0 %v716_v3  ;;  %708 = vmatprep.mubr.msk.bf16.mxu0 %vm66_vm0, %v729_v16 }
  0x27   :  { %703 = vmatpush3.bf16.msra.mxu0 %v716_v3 }
  0x28   :  { %704 = vmatprep.subr.bf16.mxu0 %v718_v5 }
  0x2b   :  { %705 = vmatpush3.bf16.msra.mxu0 %v718_v5 }
  0x2c   :  { %706 = vmatprep.subr.bf16.mxu0 %v720_v7 }
  0x2f   :  { %707 = vmatpush3.bf16.msra.mxu0 %v720_v7 }
  0x32   :  { %709 = vmatmul.mubr.msk.bf16.vlgmr.msra.gmra.mrb[8].mxu0 %vm66_vm0, %v730_v17 }
  0xe5   :  { %v826_v18 = vpop.f32.mrb[0].mxu0 }
  0xe6   :  { %v674_v19 = vpop.f32.mrb[0].mxu1  ;;  %v828_v20 = vpop.f32.mrb[1].mxu0 }
  0xe7   :  { %v217_v21 = vadd.f32 %v674_v19, %v826_v18  ;;  %v208_v22 = vpop.f32.mrb[1].mxu1  ;;  %v831_v23 = vpop.f32.mrb[2].mxu0 }
  0xe8   :  { %v209_v24 = vadd.f32 %v208_v22, %v828_v20  ;;  %v675_v25 = vpop.f32.mrb[2].mxu1  ;;  %v834_v26 = vpop.f32.mrb[3].mxu0 }
  0xe9   :  { %v220_v27 = vadd.f32 %v675_v25, %v831_v23  ;;  %v211_v28 = vpop.f32.mrb[3].mxu1  ;;  %v225_v31 = vmul.f32 %v217_v21, %v217_v21 }
  0xea   :  { %v212_v29 = vadd.f32 %v211_v28, %v834_v26  ;;  %v223_v35 = vmul.f32 %v209_v24, %v209_v24 }
  0xeb   :  { %v226_v36 = vmul.f32 %v220_v27, %v220_v27 }
  0xec   :  { %v224_v60 = vmul.f32 %v212_v29, %v212_v29 }
  0xf5   :  { %v686_v30 = vpop.f32.mrb[4].mxu0 }
  0xf6   :  { %v291_v32 = vadd.f32 %v686_v30, %v826_v18  ;;  %v698_v33 = vpop.f32.mrb[4].mxu1  ;;  %v282_v34 = vpop.f32.mrb[5].mxu0 }
  0xf7   :  { %v381_v37 = vadd.f32 %v698_v33, %v826_v18  ;;  %v283_v38 = vadd.f32 %v282_v34, %v828_v20  ;;  %v372_v39 = vpop.f32.mrb[5].mxu1  ;;  %v687_v40 = vpop.f32.mrb[6].mxu0 }
  0xf8   :  { %v299_v41 = vmax.f32 %v217_v21, %v291_v32  ;;  %v303_v42 = vmin.f32 %v217_v21, %v291_v32  ;;  %v307_v43 = vadd.f32 %v291_v32, %v217_v21  ;;  %v311_v44 = vmul.f32 %v291_v32, %v291_v32  ;;  %v699_v45 = vpop.f32.mrb[6].mxu1  ;;  %v285_v46 = vpop.f32.mrb[7].mxu0 }
  0xf9   :  { %v401_v47 = vmul.f32 %v381_v37, %v381_v37  ;;  %v297_v48 = vmax.f32 %v209_v24, %v283_v38  ;;  %v301_v49 = vmin.f32 %v209_v24, %v283_v38  ;;  %v305_v50 = vadd.f32 %v283_v38, %v209_v24  ;;  %v375_v51 = vpop.f32.mrb[7].mxu1 }
  0xfa   :  { %v315_v52 = vadd.f32 %v311_v44, %v225_v31  ;;  %v389_v53 = vmax.f32 %v299_v41, %v381_v37  ;;  %v393_v54 = vmin.f32 %v303_v42, %v381_v37  ;;  %v397_v55 = vadd.f32 %v381_v37, %v307_v43 }
  0xfb   :  { %v309_v56 = vmul.f32 %v283_v38, %v283_v38  ;;  %v373_v57 = vadd.f32 %v372_v39, %v828_v20  ;;  %v294_v58 = vadd.f32 %v687_v40, %v831_v23  ;;  %v384_v59 = vadd.f32 %v699_v45, %v831_v23 }
  0xfc   :  { %v405_v61 = vadd.f32 %v401_v47, %v315_v52  ;;  %v286_v62 = vadd.f32 %v285_v46, %v834_v26  ;;  %v376_v63 = vadd.f32 %v375_v51, %v834_v26 }
  0xfd   :  { %v313_v0 = vadd.f32 %v309_v56, %v223_v35  ;;  %v387_v1 = vmax.f32 %v297_v48, %v373_v57  ;;  %v391_v2 = vmin.f32 %v301_v49, %v373_v57  ;;  %v395_v3 = vadd.f32 %v373_v57, %v305_v50 }
  0xfe   :  { %v399_v4 = vmul.f32 %v373_v57, %v373_v57  ;;  %v300_v5 = vmax.f32 %v220_v27, %v294_v58  ;;  %v304_v6 = vmin.f32 %v220_v27, %v294_v58  ;;  %v308_v7 = vadd.f32 %v294_v58, %v220_v27 }
  0xff   :  { %v312_v8 = vmul.f32 %v294_v58, %v294_v58  ;;  %v402_v9 = vmul.f32 %v384_v59, %v384_v59  ;;  %v298_v10 = vmax.f32 %v212_v29, %v286_v62  ;;  %v302_v11 = vmin.f32 %v212_v29, %v286_v62 }
 0x100   :  { %v403_v12 = vadd.f32 %v399_v4, %v313_v0  ;;  %v390_v13 = vmax.f32 %v300_v5, %v384_v59  ;;  %v394_v14 = vmin.f32 %v304_v6, %v384_v59  ;;  %v398_v15 = vadd.f32 %v384_v59, %v308_v7 }
 0x101   :  { %v316_v16 = vadd.f32 %v312_v8, %v226_v36  ;;  %v306_v17 = vadd.f32 %v286_v62, %v212_v29  ;;  %v310_v19 = vmul.f32 %v286_v62, %v286_v62  ;;  %v388_v21 = vmax.f32 %v298_v10, %v376_v63 }
 0x102   :  { %v392_v22 = vmin.f32 %v302_v11, %v376_v63  ;;  %v400_v30 = vmul.f32 %v376_v63, %v376_v63  ;;  %v731_v5 = vmov 1966171168   ;;  %v549_v7 = vlaneseq }
 0x103   :  { %v406_v24 = vadd.f32 %v402_v9, %v316_v16  ;;  %v314_v25 = vadd.f32 %v310_v19, %v224_v60  ;;  %v396_v28 = vadd.f32 %v376_v63, %v306_v17  ;;  %v547_v6 = vunpack.c.l.s4 %v731_v5 }
 0x104   :  { %vm563_vm1 = vcmp.lt.s32.totalorder %v549_v7, 256 }
 0x105   :  { %v404_v31 = vadd.f32 %v400_v30, %v314_v25  ;;  %v710_v32 = vpop.f32.mrb[8].mxu0 }
 0x106   :  { %v471_v27 = vadd.f32 %v710_v32, %v826_v18  ;;  %v462_v33 = vpop.f32.mrb[9].mxu0 }
 0x107   :  { %v463_v34 = vadd.f32 %v462_v33, %v828_v20  ;;  %v711_v35 = vpop.f32.mrb[10].mxu0 }
 0x108   :  { %v479_v37 = vmax.f32 %v389_v53, %v471_v27  ;;  %v483_v38 = vmin.f32 %v393_v54, %v471_v27  ;;  %v487_v39 = vadd.f32 %v471_v27, %v397_v55  ;;  %v491_v36 = vmul.f32 %v471_v27, %v471_v27  ;;  %v465_v29 = vpop.f32.mrb[11].mxu0 }
 0x109   :  { %v477_v40 = vmax.f32 %v387_v1, %v463_v34  ;;  %v481_v41 = vmin.f32 %v391_v2, %v463_v34  ;;  %v485_v42 = vadd.f32 %v463_v34, %v395_v3  ;;  %v489_v43 = vmul.f32 %v463_v34, %v463_v34 }
 0x10a   :  { %v495_v44 = vadd.f32 %v491_v36, %v405_v61  ;;  %v620_v45 = vpack.c.bf16 %v483_v38, %v479_v37  ;;  %v474_v46 = vadd.f32 %v711_v35, %v831_v23  ;;  %v466_v47 = vadd.f32 %v465_v29, %v834_v26 }
 0x10b   :  { %v493_v18 = vadd.f32 %v489_v43, %v403_v12  ;;  %v618_v48 = vpack.c.bf16 %v481_v41, %v477_v40  ;;  %v548_v12 = vunpack.c.0.s8 %v547_v6 }
 0x10c   :  { %523 = vst [vmem:[%s869_s4 + $0x10] sm:$0xff] %v620_v45  ;;  %v480_v20 = vmax.f32 %v390_v13, %v474_v46  ;;  %v484_v49 = vmin.f32 %v394_v14, %v474_v46  ;;  %v488_v50 = vadd.f32 %v474_v46, %v398_v15  ;;  %v492_v51 = vmul.f32 %v474_v46, %v474_v46 }
 0x10d   :  { %521 = vst [vmem:[%s869_s4] sm:$0xff] %v618_v48  ;;  %v478_v52 = vmax.f32 %v388_v21, %v466_v47  ;;  %v482_v53 = vmin.f32 %v392_v22, %v466_v47  ;;  %v486_v54 = vadd.f32 %v466_v47, %v396_v28  ;;  %v490_v23 = vmul.f32 %v466_v47, %v466_v47 }
 0x10e   :  { %v496_v55 = vadd.f32 %v492_v51, %v406_v24  ;;  %v621_v26 = vpack.c.bf16 %v484_v49, %v480_v20  ;;  %v550_v13 = vshrl.u32 %v549_v7, 7 }
 0x10f   :  { %v494_v56 = vadd.f32 %v490_v23, %v404_v31  ;;  %v619_v57 = vpack.c.bf16 %v482_v53, %v478_v52  ;;  %v525_v58 = vadd.f32 %v486_v54, %v485_v42 }
 0x110   :  { %524 = vst [vmem:[%s869_s4 + $0x18] sm:$0xff] %v621_v26  ;;  %v551_v17 = vsub.s32 %v548_v12, %v550_v13 }
 0x111   :  { %522 = vst [vmem:[%s869_s4 + $0x8] sm:$0xff] %v619_v57  ;;  %v526_v59 = vadd.f32 %v525_v58, %v487_v39  ;;  %v534_v60 = vadd.f32 %v494_v56, %v493_v18 }
 0x113   :  { %v527_v61 = vadd.f32 %v526_v59, %v488_v50  ;;  %v535_v62 = vadd.f32 %v534_v60, %v495_v44 }
 0x115   :  { %v528_v63 = vrot.slane %v527_v61, 4  ;;  %v536_v0 = vadd.f32 %v535_v62, %v496_v55 }
 0x117   :  { %v529_v1 = vadd.f32 %v528_v63, %v527_v61  ;;  %v537_v2 = vrot.slane %v536_v0, 4 }
 0x119   :  { %v530_v3 = vrot.slane %v529_v1, 2  ;;  %v538_v4 = vadd.f32 %v537_v2, %v536_v0 }
 0x11b   :  { %v531_v8 = vadd.f32 %v530_v3, %v529_v1  ;;  %v539_v9 = vrot.slane %v538_v4, 2 }
 0x11d   :  { %v532_v10 = vrot.slane %v531_v8, 1  ;;  %v540_v11 = vadd.f32 %v539_v9, %v538_v4 }
 0x11f   :  { %v541_v14 = vrot.slane %v540_v11, 1  ;;  %v533_v15 = vadd.f32 %v532_v10, %v531_v8 }
 0x121   :  { %v542_v16 = vadd.f32 %v541_v14, %v540_v11 }
 0x123   :  { %v545_v19 = vcombine.low %v533_v15, %v542_v16 }
 0x125   :  { %v552_v21 = vrot.slane %v545_v19, %v551_v17 }
 0x127   :  { %v559_v22 = vrot.slane %v552_v21, %v551_v17 }
 0x129   :  { %565 = vst.msk [vmem:[%s870_s5] sm:$0x3] %vm563_vm1, %v559_v22 }

// kernel: dgcnn_forward.12
= control target key start
LH: loop header
LB: loop body
LE: loop exit
PB: predicated region body
PF: predicated region fallthrough
CT: control target
= control target key end

     0   :  { %vm66_vm0 = vcmask 523264   ;;  %s925_s3 = inlined_call_operand.vmem [shape: bf16[64,64], index: 3, kind: input, shape index: {}]   ;;  %s926_s2 = inlined_call_operand.vmem [shape: bf16[64,64], index: 2, kind: input, shape index: {}]   ;;  %s927_s1 = inlined_call_operand.vmem [shape: bf16[32,64], index: 1, kind: input, shape index: {}]   ;;  %s928_s0 = inlined_call_operand.vmem [shape: bf16[4,32,64], index: 0, kind: input, shape index: {}]   ;;  %s929_s4 = inlined_call_operand.vmem [shape: bf16[32,128], index: 4, kind: output, shape index: {0}]   ;;  %s930_s5 = inlined_call_operand.vmem [shape: f32[1,1,128], index: 5, kind: output, shape index: {1}]  }
   0x1   :  { %v737_v0 = vld [vmem:[%s925_s3] sm:$0xff]   ;;  %v739_v2 = vld [vmem:[%s925_s3 + $0x8] sm:$0xff]   ;;  %v741_v4 = vld [vmem:[%s925_s3 + $0x10] sm:$0xff]  }
   0x2   :  { %v738_v1 = vld [vmem:[%s926_s2] sm:$0xff]   ;;  %666 = vmatprep.subr.bf16.mxu0 %v737_v0  ;;  %v740_v3 = vld [vmem:[%s926_s2 + $0x8] sm:$0xff]   ;;  %v742_v5 = vld [vmem:[%s926_s2 + $0x10] sm:$0xff]  }
   0x3   :  { %678 = vmatprep.subr.bf16.mxu1 %v738_v1  ;;  %667 = vmatpush3.bf16.msra.mxu0 %v737_v0  ;;  %v743_v6 = vld [vmem:[%s925_s3 + $0x18] sm:$0xff]   ;;  %v745_v8 = vld [vmem:[%s927_s1] sm:$0xff]   ;;  %v747_v10 = vld [vmem:[%s927_s1 + $0x8] sm:$0xff]  }
   0x4   :  { %679 = vmatpush3.bf16.msra.mxu1 %v738_v1  ;;  %668 = vmatprep.subr.bf16.mxu0 %v739_v2  ;;  %v744_v7 = vld [vmem:[%s926_s2 + $0x18] sm:$0xff]   ;;  %v746_v9 = vld [vmem:[%s928_s0] sm:$0xff]   ;;  %v748_v11 = vld [vmem:[%s928_s0 + $0x8] sm:$0xff]  }
   0x5   :  { %680 = vmatprep.subr.bf16.mxu1 %v740_v3  ;;  %674 = vmatprep.mubr.msk.bf16.mxu0 %vm66_vm0, %v745_v8  ;;  %v749_v12 = vld [vmem:[%s928_s0 + $0x10] sm:$0xff]   ;;  %v750_v13 = vld [vmem:[%s928_s0 + $0x20] sm:$0xff]   ;;  %v751_v14 = vld [vmem:[%s928_s0 + $0x18] sm:$0xff]  }
   0x6   :  { %686 = vmatprep.mubr.msk.bf16.mxu1 %vm66_vm0, %v746_v9  ;;  %v752_v15 = vld [vmem:[%s928_s0 + $0x28] sm:$0xff]   ;;  %v753_v16 = vld [vmem:[%s928_s0 + $0x30] sm:$0xff]   ;;  %v754_v17 = vld [vmem:[%s928_s0 + $0x38] sm:$0xff]   ;;  %s755_s0 = smov 64  }
   0x7   :  { %669 = vmatpush3.bf16.msra.mxu0 %v739_v2 }
   0x8   :  { %681 = vmatpush3.bf16.msra.mxu1 %v740_v3  ;;  %670 = vmatprep.subr.bf16.mxu0 %v741_v4 }
   0x9   :  { %682 = vmatprep.subr.bf16.mxu1 %v742_v5 }
   0xb   :  { %671 = vmatpush3.bf16.msra.mxu0 %v741_v4 }
   0xc   :  { %683 = vmatpush3.bf16.msra.mxu1 %v742_v5  ;;  %672 = vmatprep.subr.bf16.mxu0 %v743_v6 }
   0xd   :  { %684 = vmatprep.subr.bf16.mxu1 %v744_v7 }
   0xf   :  { %673 = vmatpush3.bf16.msra.mxu0 %v743_v6 }
  0x10   :  { %685 = vmatpush3.bf16.msra.mxu1 %v744_v7  ;;  %690 = vmatprep.subr.bf16.mxu0 %v738_v1 }
  0x11   :  { %702 = vmatprep.subr.bf16.mxu1 %v738_v1 }
  0x12   :  { %675 = vmatmul.mubr.msk.bf16.vlgmr.msra.gmra.mrb[0].mxu0 %vm66_vm0, %v747_v10 }
  0x13   :  { %687 = vmatmul.mubr.msk.bf16.vlgmr.msra.gmra.mrb[0].mxu1 %vm66_vm0, %v748_v11  ;;  %691 = vmatpush3.bf16.msra.mxu0 %v738_v1 }
  0x14   :  { %703 = vmatpush3.bf16.msra.mxu1 %v738_v1  ;;  %692 = vmatprep.subr.bf16.mxu0 %v740_v3 }
  0x15   :  { %704 = vmatprep.subr.bf16.mxu1 %v740_v3  ;;  %698 = vmatprep.mubr.msk.bf16.mxu0 %vm66_vm0, %v749_v12 }
  0x16   :  { %710 = vmatprep.mubr.msk.bf16.mxu1 %vm66_vm0, %v750_v13 }
  0x17   :  { %693 = vmatpush3.bf16.msra.mxu0 %v740_v3 }
  0x18   :  { %705 = vmatpush3.bf16.msra.mxu1 %v740_v3  ;;  %694 = vmatprep.subr.bf16.mxu0 %v742_v5 }
  0x19   :  { %706 = vmatprep.subr.bf16.mxu1 %v742_v5 }
  0x1b   :  { %695 = vmatpush3.bf16.msra.mxu0 %v742_v5 }
  0x1c   :  { %707 = vmatpush3.bf16.msra.mxu1 %v742_v5  ;;  %696 = vmatprep.subr.bf16.mxu0 %v744_v7 }
  0x1d   :  { %708 = vmatprep.subr.bf16.mxu1 %v744_v7 }
  0x1f   :  { %697 = vmatpush3.bf16.msra.mxu0 %v744_v7 }
  0x20   :  { %709 = vmatpush3.bf16.msra.mxu1 %v744_v7  ;;  %714 = vmatprep.subr.bf16.mxu0 %v738_v1 }
  0x22   :  { %699 = vmatmul.mubr.msk.bf16.vlgmr.msra.gmra.mrb[4].mxu0 %vm66_vm0, %v751_v14 }
  0x23   :  { %711 = vmatmul.mubr.msk.bf16.vlgmr.msra.gmra.mrb[4].mxu1 %vm66_vm0, %v752_v15  ;;  %715 = vmatpush3.bf16.msra.mxu0 %v738_v1 }
  0x24   :  { %716 = vmatprep.subr.bf16.mxu0 %v740_v3  ;;  %722 = vmatprep.mubr.msk.bf16.mxu0 %vm66_vm0, %v753_v16 }
  0x27   :  { %717 = vmatpush3.bf16.msra.mxu0 %v740_v3 }
  0x28   :  { %718 = vmatprep.subr.bf16.mxu0 %v742_v5 }
  0x2b   :  { %719 = vmatpush3.bf16.msra.mxu0 %v742_v5 }
  0x2c   :  { %720 = vmatprep.subr.bf16.mxu0 %v744_v7 }
  0x2f   :  { %721 = vmatpush3.bf16.msra.mxu0 %v744_v7 }
  0x32   :  { %723 = vmatmul.mubr.msk.bf16.vlgmr.msra.gmra.mrb[8].mxu0 %vm66_vm0, %v754_v17 }
  0xe5   :  { %v850_v18 = vpop.f32.mrb[0].mxu0 }
  0xe6   :  { %v688_v19 = vpop.f32.mrb[0].mxu1  ;;  %v852_v20 = vpop.f32.mrb[1].mxu0 }
  0xe7   :  { %v217_v21 = vadd.f32 %v688_v19, %v850_v18  ;;  %v208_v22 = vpop.f32.mrb[1].mxu1  ;;  %v855_v23 = vpop.f32.mrb[2].mxu0 }
  0xe8   :  { %v858_v24 = vadd.f32 %v208_v22, %v852_v20  ;;  %v689_v25 = vpop.f32.mrb[2].mxu1  ;;  %v860_v26 = vpop.f32.mrb[3].mxu0 }
  0xe9   :  { %v220_v27 = vadd.f32 %v689_v25, %v855_v23  ;;  %v211_v28 = vpop.f32.mrb[3].mxu1  ;;  %v225_v31 = vmul.f32 %v217_v21, %v217_v21 }
  0xea   :  { %v212_v29 = vadd.f32 %v211_v28, %v860_v26  ;;  %v223_v32 = vmul.f32 %v858_v24, %v858_v24 }
  0xeb   :  { %v226_v36 = vmul.f32 %v220_v27, %v220_v27 }
  0xec   :  { %v224_v37 = vmul.f32 %v212_v29, %v212_v29 }
  0xf5   :  { %v700_v30 = vpop.f32.mrb[4].mxu0 }
  0xf6   :  { %v291_v33 = vadd.f32 %v700_v30, %v850_v18  ;;  %v712_v34 = vpop.f32.mrb[4].mxu1  ;;  %v282_v35 = vpop.f32.mrb[5].mxu0 }
  0xf7   :  { %v381_v38 = vadd.f32 %v712_v34, %v850_v18  ;;  %v283_v39 = vadd.f32 %v282_v35, %v852_v20  ;;  %v372_v40 = vpop.f32.mrb[5].mxu1  ;;  %v701_v41 = vpop.f32.mrb[6].mxu0 }
  0xf8   :  { %v299_v42 = vmax.f32 %v217_v21, %v291_v33  ;;  %v303_v43 = vmin.f32 %v217_v21, %v291_v33  ;;  %v307_v44 = vadd.f32 %v291_v33, %v217_v21  ;;  %v311_v45 = vmul.f32 %v291_v33, %v291_v33  ;;  %v713_v46 = vpop.f32.mrb[6].mxu1  ;;  %v285_v47 = vpop.f32.mrb[7].mxu0 }
  0xf9   :  { %v401_v48 = vmul.f32 %v381_v38, %v381_v38  ;;  %v297_v49 = vmax.f32 %v858_v24, %v283_v39  ;;  %v305_v50 = vadd.f32 %v283_v39, %v858_v24  ;;  %v309_v51 = vmul.f32 %v283_v39, %v283_v39  ;;  %v375_v52 = vpop.f32.mrb[7].mxu1 }
  0xfa   :  { %v315_v53 = vadd.f32 %v311_v45, %v225_v31  ;;  %v871_v54 = vmax.f32 %v299_v42, %v381_v38  ;;  %v397_v55 = vadd.f32 %v381_v38, %v307_v44  ;;  %v373_v56 = vadd.f32 %v372_v40, %v852_v20 }
  0xfb   :  { %v313_v57 = vadd.f32 %v309_v51, %v223_v32  ;;  %v294_v58 = vadd.f32 %v701_v41, %v855_v23  ;;  %v384_v59 = vadd.f32 %v713_v46, %v855_v23  ;;  %v286_v60 = vadd.f32 %v285_v47, %v860_v26 }
  0xfc   :  { %v405_v61 = vadd.f32 %v401_v48, %v315_v53  ;;  %v877_v62 = vmax.f32 %v297_v49, %v373_v56  ;;  %v395_v63 = vadd.f32 %v373_v56, %v305_v50  ;;  %v399_v0 = vmul.f32 %v373_v56, %v373_v56 }
  0xfd   :  { %v300_v1 = vmax.f32 %v220_v27, %v294_v58  ;;  %v304_v2 = vmin.f32 %v220_v27, %v294_v58  ;;  %v308_v3 = vadd.f32 %v294_v58, %v220_v27  ;;  %v312_v4 = vmul.f32 %v294_v58, %v294_v58 }
  0xfe   :  { %v403_v5 = vadd.f32 %v399_v0, %v313_v57  ;;  %v402_v6 = vmul.f32 %v384_v59, %v384_v59  ;;  %v298_v7 = vmax.f32 %v212_v29, %v286_v60  ;;  %v306_v8 = vadd.f32 %v286_v60, %v212_v29 }
  0xff   :  { %v316_v9 = vadd.f32 %v312_v4, %v226_v36  ;;  %v879_v10 = vmax.f32 %v300_v1, %v384_v59  ;;  %v398_v11 = vadd.f32 %v384_v59, %v308_v3  ;;  %v310_v12 = vmul.f32 %v286_v60, %v286_v60 }
 0x100   :  { %v376_v13 = vadd.f32 %v375_v52, %v860_v26  ;;  %v301_v14 = vmin.f32 %v858_v24, %v283_v39  ;;  %v302_v15 = vmin.f32 %v212_v29, %v286_v60  ;;  %v393_v16 = vmin.f32 %v303_v43, %v381_v38 }
 0x101   :  { %v406_v17 = vadd.f32 %v402_v6, %v316_v9  ;;  %v314_v19 = vadd.f32 %v310_v12, %v224_v37  ;;  %v394_v21 = vmin.f32 %v304_v2, %v384_v59 }
 0x102   :  { %v883_v22 = vmax.f32 %v298_v7, %v376_v13  ;;  %v396_v25 = vadd.f32 %v376_v13, %v306_v8  ;;  %v400_v27 = vmul.f32 %v376_v13, %v376_v13  ;;  %v391_v28 = vmin.f32 %v301_v14, %v373_v56 }
 0x103   :  { %v392_v30 = vmin.f32 %v302_v15, %v376_v13 }
 0x104   :  { %v404_v31 = vadd.f32 %v400_v27, %v314_v19 }
 0x105   :  { %v724_v32 = vpop.f32.mrb[8].mxu0 }
 0x106   :  { %v886_v33 = vadd.f32 %v724_v32, %v850_v18  ;;  %v462_v34 = vpop.f32.mrb[9].mxu0 }
 0x107   :  { %v463_v35 = vadd.f32 %v462_v34, %v852_v20  ;;  %v725_v24 = vpop.f32.mrb[10].mxu0 }
 0x108   :  { %v479_v29 = vmax.f32 %v871_v54, %v886_v33  ;;  %v487_v36 = vadd.f32 %v886_v33, %v397_v55  ;;  %v491_v37 = vmul.f32 %v886_v33, %v886_v33  ;;  %v474_v38 = vadd.f32 %v725_v24, %v855_v23  ;;  %v465_v39 = vpop.f32.mrb[11].mxu0 }
 0x109   :  { %v477_v40 = vmax.f32 %v877_v62, %v463_v35  ;;  %v485_v41 = vadd.f32 %v463_v35, %v395_v63  ;;  %v489_v18 = vmul.f32 %v463_v35, %v463_v35  ;;  %v466_v42 = vadd.f32 %v465_v39, %v860_v26 }
 0x10a   :  { %v495_v43 = vadd.f32 %v491_v37, %v405_v61  ;;  %v480_v20 = vmax.f32 %v879_v10, %v474_v38  ;;  %v488_v44 = vadd.f32 %v474_v38, %v398_v11  ;;  %v492_v46 = vmul.f32 %v474_v38, %v474_v38 }
 0x10b   :  { %v493_v45 = vadd.f32 %v489_v18, %v403_v5  ;;  %v478_v47 = vmax.f32 %v883_v22, %v466_v42  ;;  %v486_v48 = vadd.f32 %v466_v42, %v396_v25  ;;  %v490_v49 = vmul.f32 %v466_v42, %v466_v42 }
 0x10c   :  { %v481_v50 = vmin.f32 %v391_v28, %v463_v35  ;;  %v482_v51 = vmin.f32 %v392_v30, %v466_v42  ;;  %v483_v23 = vmin.f32 %v393_v16, %v886_v33  ;;  %v484_v52 = vmin.f32 %v394_v21, %v474_v38 }
 0x10d   :  { %v496_v53 = vadd.f32 %v492_v46, %v406_v17  ;;  %v537_v55 = vsel %vm66_vm0, %v485_v41, 0.0  ;;  %v494_v56 = vadd.f32 %v490_v49, %v404_v31  ;;  %v538_v26 = vsel %vm66_vm0, %v486_v48, 0.0 }
 0x10e   :  { %v539_v57 = vadd.f32 %v538_v26, %v537_v55  ;;  %v727_v58 = vpack.i.bf16 %v482_v51, %v481_v50  ;;  %v732_v59 = vpack.i.bf16 %v484_v52, %v483_v23  ;;  %v540_v60 = vsel %vm66_vm0, %v487_v36, 0.0 }
 0x10f   :  { %v550_v61 = vsel %vm66_vm0, %v493_v45, 0.0  ;;  %v551_v62 = vsel %vm66_vm0, %v494_v56, 0.0  ;;  %v542_v1 = vsel %vm66_vm0, %v488_v44, 0.0  ;;  %v553_v2 = vsel %vm66_vm0, %v495_v43, 0.0 }
 0x110   :  { %v541_v63 = vadd.f32 %v540_v60, %v539_v57  ;;  %728 = vrot.lane.b32.xlu0 %v727_v58, %s755_s0  ;;  %v552_v0 = vadd.f32 %v551_v62, %v550_v61  ;;  %v555_v5 = vsel %vm66_vm0, %v496_v53, 0.0 }
 0x112   :  { %v554_v3 = vadd.f32 %v553_v2, %v552_v0  ;;  %v543_v4 = vadd.f32 %v542_v1, %v541_v63 }
 0x114   :  { %733 = vrot.lane.b32.xlu0 %v732_v59, %s755_s0  ;;  %v556_v6 = vadd.f32 %v555_v5, %v554_v3  ;;  %v544_v13 = vrot.slane %v543_v4, 4 }
 0x116   :  { %v557_v7 = vrot.slane %v556_v6, 4  ;;  %v545_v17 = vadd.f32 %v544_v13, %v543_v4 }
 0x118   :  { %v558_v8 = vadd.f32 %v557_v7, %v556_v6  ;;  %v546_v30 = vrot.slane %v545_v17, 2 }
 0x11a   :  { %v559_v9 = vrot.slane %v558_v8, 2  ;;  %v547_v35 = vadd.f32 %v546_v30, %v545_v17 }
 0x11c   :  { %v560_v10 = vadd.f32 %v559_v9, %v558_v8  ;;  %v548_v24 = vrot.slane %v547_v35, 1 }
 0x11e   :  { %v561_v11 = vrot.slane %v560_v10, 1  ;;  %v549_v36 = vadd.f32 %v548_v24, %v547_v35 }
 0x120   :  { %v562_v12 = vadd.f32 %v561_v11, %v560_v10 }
 0x122   :  { %564 = vrot.lane.b32.xlu1 %v562_v12, %s755_s0 }
 0x182   :  { %v729_v14 = vpop.permute.xlu0 %728 }
 0x183   :  { %v731_v15 = vunpack.i.h.bf16 %v729_v14  ;;  %v730_v16 = vunpack.i.l.bf16 %v729_v14 }
 0x185   :  { %v514_v19 = vsel %vm66_vm0, %v478_v47, %v731_v15  ;;  %v513_v21 = vsel %vm66_vm0, %v477_v40, %v730_v16 }
 0x186   :  { %v628_v22 = vpack.c.bf16 %v514_v19, %v513_v21  ;;  %v734_v25 = vpop.permute.xlu0 %733 }
 0x187   :  { %v736_v27 = vunpack.i.h.bf16 %v734_v25  ;;  %v735_v28 = vunpack.i.l.bf16 %v734_v25 }
 0x188   :  { %629 = vst [vmem:[%s929_s4] sm:$0xff] %v628_v22  }
 0x189   :  { %v516_v31 = vsel %vm66_vm0, %v480_v20, %v736_v27  ;;  %v515_v32 = vsel %vm66_vm0, %v479_v29, %v735_v28 }
 0x18a   :  { %v633_v34 = vpack.c.bf16 %v516_v31, %v515_v32 }
 0x18c   :  { %635 = vst [vmem:[%s929_s4 + $0x8] sm:$0xff] %v633_v34  }
 0x194   :  { %v565_v37 = vpop.permute.xlu1 %564 }
 0x195   :  { %v567_v38 = vsel %vm66_vm0, %v549_v36, %v565_v37 }
 0x196   :  { %568 = vst [vmem:[%s930_s5] sm:$0x1] %v567_v38 }

// kernel: dgcnn_forward.17
= control target key start
LH: loop header
LB: loop body
LE: loop exit
PB: predicated region body
PF: predicated region fallthrough
CT: control target
= control target key end

     0   :  { %v25_v0 = vlaneseq  ;;  %v152_v3 = vmov 0   ;;  %s215_s1 = inlined_call_operand.vmem [shape: f32[1,256], index: 1, kind: input, shape index: {}]   ;;  %s216_s0 = inlined_call_operand.vmem [shape: bf16[32,512], index: 0, kind: input, shape index: {}]   ;;  %s217_s2 = inlined_call_operand.vmem [shape: f32[1,256], index: 2, kind: input, shape index: {}]   ;;  %s218_s3 = inlined_call_operand.vmem [shape: bf16[32,256], index: 3, kind: output, shape index: {}]  }
   0x1   :  { %v14_v1 = vld [vmem:[%s215_s1] sm:$0x3]  ;;  %v20_v8 = vld [vmem:[%s216_s0 + $0x8] sm:$0xff]  ;;  %v17_v12 = vld [vmem:[%s216_s0 + $0x10] sm:$0xff] }
   0x2   :  { %vm15_vm0 = vcmp.ge.f32.partialorder %v14_v1, 0.0  ;;  %v26_v2 = vshrl.u32 %v25_v0, 7  ;;  %v16_v7 = vld [vmem:[%s216_s0] sm:$0xff]  ;;  %v21_v13 = vld [vmem:[%s216_s0 + $0x18] sm:$0xff]  ;;  %v22_v15 = vld [vmem:[%s216_s0 + $0x28] sm:$0xff] }
   0x3   :  { %v24_v4 = vsel %vm15_vm0, 1, %v152_v3  ;;  %v67_v9 = vld [vmem:[%s217_s2] sm:$0x3]  ;;  %v19_v16 = vld [vmem:[%s216_s0 + $0x30] sm:$0xff]  ;;  %v23_v17 = vld [vmem:[%s216_s0 + $0x38] sm:$0xff] }
   0x4   :  { %v27_v5 = vsub.s32 0, %v26_v2  ;;  %v31_v6 = vsub.s32 1, %v26_v2  ;;  %v18_v14 = vld [vmem:[%s216_s0 + $0x20] sm:$0xff] }
   0x6   :  { %v28_v10 = vrot.slane %v24_v4, %v27_v5  ;;  %v32_v11 = vrot.slane %v24_v4, %v31_v6  ;;  %v52_v18 = vrot.slane %v14_v1, %v27_v5  ;;  %v56_v19 = vrot.slane %v14_v1, %v31_v6 }
   0x7   :  { %v72_v20 = vrot.slane %v67_v9, %v27_v5  ;;  %v76_v21 = vrot.slane %v67_v9, %v31_v6 }
   0x8   :  { %vm33_vm1 = vcmp.eq.s32.totalorder %v28_v10, 1  ;;  %vm34_vm2 = vcmp.eq.s32.totalorder %v32_v11, 1 }
   0x9   :  { %vm35_vm3 = vmpackc.low %vm34_vm2, %vm33_vm1 }
   0xa   :  { %v36_v22 = vsel %vm35_vm3, %v16_v7, %v20_v8  ;;  %v37_v23 = vsel %vm35_vm3, %v17_v12, %v21_v13  ;;  %v38_v24 = vsel %vm35_vm3, %v18_v14, %v22_v15  ;;  %v39_v25 = vsel %vm35_vm3, %v19_v16, %v23_v17 }
   0xb   :  { %v40_v26 = vunpack.c.l.bf16 %v36_v22  ;;  %v41_v27 = vunpack.c.h.bf16 %v36_v22  ;;  %v42_v28 = vunpack.c.l.bf16 %v37_v23  ;;  %v43_v29 = vunpack.c.h.bf16 %v37_v23 }
   0xc   :  { %v44_v30 = vunpack.c.l.bf16 %v38_v24  ;;  %v45_v31 = vunpack.c.h.bf16 %v38_v24  ;;  %v46_v32 = vunpack.c.l.bf16 %v39_v25  ;;  %v47_v33 = vunpack.c.h.bf16 %v39_v25 }
   0xd   :  { %v59_v34 = vmul.f32 %v52_v18, %v40_v26  ;;  %v60_v35 = vmul.f32 %v56_v19, %v41_v27  ;;  %v61_v36 = vmul.f32 %v52_v18, %v42_v28  ;;  %v62_v37 = vmul.f32 %v56_v19, %v43_v29 }
   0xe   :  { %v63_v38 = vmul.f32 %v52_v18, %v44_v30  ;;  %v64_v39 = vmul.f32 %v56_v19, %v45_v31  ;;  %v65_v40 = vmul.f32 %v52_v18, %v46_v32  ;;  %v66_v41 = vmul.f32 %v56_v19, %v47_v33 }
   0xf   :  { %v79_v42 = vadd.f32 %v72_v20, %v59_v34  ;;  %v80_v43 = vadd.f32 %v76_v21, %v60_v35  ;;  %v81_v44 = vadd.f32 %v72_v20, %v61_v36  ;;  %v82_v45 = vadd.f32 %v76_v21, %v62_v37 }
  0x10   :  { %v83_v46 = vadd.f32 %v72_v20, %v63_v38  ;;  %v84_v47 = vadd.f32 %v76_v21, %v64_v39  ;;  %v85_v48 = vadd.f32 %v72_v20, %v65_v40  ;;  %v86_v49 = vadd.f32 %v76_v21, %v66_v41 }
  0x11   :  { %vm87_vm4 = vcmp.ge.f32.partialorder %v79_v42, 0.0  ;;  %vm88_vm5 = vcmp.ge.f32.partialorder %v80_v43, 0.0  ;;  %v95_v50 = vmul.f32 0.2, %v79_v42  ;;  %v96_v51 = vmul.f32 0.2, %v80_v43 }
  0x12   :  { %vm89_vm6 = vcmp.ge.f32.partialorder %v81_v44, 0.0  ;;  %vm90_vm7 = vcmp.ge.f32.partialorder %v82_v45, 0.0  ;;  %v97_v52 = vmul.f32 0.2, %v81_v44  ;;  %v98_v53 = vmul.f32 0.2, %v82_v45 }
  0x13   :  { %v103_v54 = vsel %vm87_vm4, %v79_v42, %v95_v50  ;;  %v104_v55 = vsel %vm88_vm5, %v80_v43, %v96_v51  ;;  %vm91_vm8 = vcmp.ge.f32.partialorder %v83_v46, 0.0  ;;  %vm92_vm9 = vcmp.ge.f32.partialorder %v84_v47, 0.0 }
  0x14   :  { %v147_v56 = vpack.c.bf16 %v104_v55, %v103_v54  ;;  %v105_v57 = vsel %vm89_vm6, %v81_v44, %v97_v52  ;;  %v106_v58 = vsel %vm90_vm7, %v82_v45, %v98_v53  ;;  %v99_v59 = vmul.f32 0.2, %v83_v46 }
  0x15   :  { %v148_v60 = vpack.c.bf16 %v106_v58, %v105_v57  ;;  %v100_v61 = vmul.f32 0.2, %v84_v47  ;;  %vm93_vm10 = vcmp.ge.f32.partialorder %v85_v48, 0.0  ;;  %vm94_vm11 = vcmp.ge.f32.partialorder %v86_v49, 0.0 }
  0x16   :  { %135 = vst [vmem:[%s218_s3] sm:$0xff] %v147_v56  ;;  %v107_v62 = vsel %vm91_vm8, %v83_v46, %v99_v59  ;;  %v101_v63 = vmul.f32 0.2, %v85_v48  ;;  %v102_v0 = vmul.f32 0.2, %v86_v49 }
  0x17   :  { %136 = vst [vmem:[%s218_s3 + $0x8] sm:$0xff] %v148_v60  ;;  %v108_v1 = vsel %vm92_vm9, %v84_v47, %v100_v61 }
  0x18   :  { %v149_v2 = vpack.c.bf16 %v108_v1, %v107_v62  ;;  %v109_v3 = vsel %vm93_vm10, %v85_v48, %v101_v63  ;;  %v110_v4 = vsel %vm94_vm11, %v86_v49, %v102_v0 }
  0x19   :  { %v150_v5 = vpack.c.bf16 %v110_v4, %v109_v3 }
  0x1a   :  { %137 = vst [vmem:[%s218_s3 + $0x10] sm:$0xff] %v149_v2 }
  0x1b   :  { %138 = vst [vmem:[%s218_s3 + $0x18] sm:$0xff] %v150_v5 }

// kernel: dgcnn_forward.16
= control target key start
LH: loop header
LB: loop body
LE: loop exit
PB: predicated region body
PF: predicated region fallthrough
CT: control target
= control target key end

     0   :  { %v968_v1 = vmov 0   ;;  %s1458_s3 = inlined_call_operand.vmem [shape: bf16[128,256], index: 3, kind: input, shape index: {}]   ;;  %s1459_s2 = inlined_call_operand.vmem [shape: bf16[128,256], index: 2, kind: input, shape index: {}]   ;;  %s1460_s1 = inlined_call_operand.vmem [shape: bf16[32,128], index: 1, kind: input, shape index: {}]   ;;  %s1461_s0 = inlined_call_operand.vmem [shape: bf16[4,32,128], index: 0, kind: input, shape index: {}]   ;;  %s1462_s4 = inlined_call_operand.vmem [shape: bf16[32,512], index: 4, kind: output, shape index: {0}]   ;;  %s1463_s5 = inlined_call_operand.vmem [shape: f32[1,1,512], index: 5, kind: output, shape index: {1}]  }
   0x1   :  { %v910_v0 = vld [vmem:[%s1458_s3 + $0x4] ss:$8 sps:$4 sm:$0xff]   ;;  %164 = vmatprep.mubr.bf16.mxu0 %v968_v1  ;;  %329 = vmatprep.mubr.bf16.mxu1 %v968_v1  ;;  %v914_v3 = vld [vmem:[%s1458_s3] ss:$8 sps:$4 sm:$0xff]   ;;  %v916_v5 = vld [vmem:[%s1458_s3 + $0x14] ss:$8 sps:$4 sm:$0xff]  }
   0x2   :  { %v1008_v2 = vld [vmem:[%s1459_s2 + $0x4] ss:$8 sps:$4 sm:$0xff]   ;;  %132 = vmatprep.subr.bf16.mxu0 %v910_v0  ;;  %v1016_v4 = vld [vmem:[%s1459_s2] ss:$8 sps:$4 sm:$0xff]   ;;  %v1026_v6 = vld [vmem:[%s1459_s2 + $0x14] ss:$8 sps:$4 sm:$0xff]  }
   0x3   :  { %297 = vmatprep.subr.bf16.mxu1 %v1008_v2  ;;  %133 = vmatpush1.bf16.msra.mxu0 %v914_v3  ;;  %v920_v7 = vld [vmem:[%s1458_s3 + $0x10] ss:$8 sps:$4 sm:$0xff]   ;;  %v922_v9 = vld [vmem:[%s1458_s3 + $0x24] ss:$8 sps:$4 sm:$0xff]   ;;  %v926_v11 = vld [vmem:[%s1458_s3 + $0x20] ss:$8 sps:$4 sm:$0xff]  }
   0x4   :  { %298 = vmatpush1.bf16.msra.mxu1 %v1016_v4  ;;  %134 = vmatprep.subr.bf16.mxu0 %v916_v5  ;;  %v1034_v8 = vld [vmem:[%s1459_s2 + $0x10] ss:$8 sps:$4 sm:$0xff]   ;;  %v1043_v10 = vld [vmem:[%s1459_s2 + $0x24] ss:$8 sps:$4 sm:$0xff]   ;;  %v1051_v12 = vld [vmem:[%s1459_s2 + $0x20] ss:$8 sps:$4 sm:$0xff]  }
   0x5   :  { %299 = vmatprep.subr.bf16.mxu1 %v1026_v6  ;;  %v928_v13 = vld [vmem:[%s1458_s3 + $0x34] ss:$8 sps:$4 sm:$0xff]   ;;  %v932_v15 = vld [vmem:[%s1458_s3 + $0x30] ss:$8 sps:$4 sm:$0xff]   ;;  %v934_v17 = vld [vmem:[%s1458_s3 + $0x44] ss:$8 sps:$4 sm:$0xff]  }
   0x6   :  { %v1061_v14 = vld [vmem:[%s1459_s2 + $0x34] ss:$8 sps:$4 sm:$0xff]   ;;  %v1070_v16 = vld [vmem:[%s1459_s2 + $0x30] ss:$8 sps:$4 sm:$0xff]   ;;  %v1079_v18 = vld [vmem:[%s1459_s2 + $0x44] ss:$8 sps:$4 sm:$0xff]  }
   0x7   :  { %135 = vmatpush1.bf16.msra.mxu0 %v920_v7  ;;  %v938_v19 = vld [vmem:[%s1458_s3 + $0x40] ss:$8 sps:$4 sm:$0xff]   ;;  %v940_v21 = vld [vmem:[%s1458_s3 + $0x54] ss:$8 sps:$4 sm:$0xff]   ;;  %v944_v23 = vld [vmem:[%s1458_s3 + $0x50] ss:$8 sps:$4 sm:$0xff]  }
   0x8   :  { %300 = vmatpush1.bf16.msra.mxu1 %v1034_v8  ;;  %136 = vmatprep.subr.bf16.mxu0 %v922_v9  ;;  %v1087_v20 = vld [vmem:[%s1459_s2 + $0x40] ss:$8 sps:$4 sm:$0xff]   ;;  %v1097_v22 = vld [vmem:[%s1459_s2 + $0x54] ss:$8 sps:$4 sm:$0xff]   ;;  %v1106_v24 = vld [vmem:[%s1459_s2 + $0x50] ss:$8 sps:$4 sm:$0xff]  }
   0x9   :  { %301 = vmatprep.subr.bf16.mxu1 %v1043_v10  ;;  %v946_v25 = vld [vmem:[%s1458_s3 + $0x64] ss:$8 sps:$4 sm:$0xff]   ;;  %v950_v27 = vld [vmem:[%s1458_s3 + $0x60] ss:$8 sps:$4 sm:$0xff]   ;;  %v952_v29 = vld [vmem:[%s1458_s3 + $0x74] ss:$8 sps:$4 sm:$0xff]  }
   0xa   :  { %v1115_v26 = vld [vmem:[%s1459_s2 + $0x64] ss:$8 sps:$4 sm:$0xff]   ;;  %v1123_v28 = vld [vmem:[%s1459_s2 + $0x60] ss:$8 sps:$4 sm:$0xff]   ;;  %v1133_v30 = vld [vmem:[%s1459_s2 + $0x74] ss:$8 sps:$4 sm:$0xff]  }
   0xb   :  { %137 = vmatpush1.bf16.msra.mxu0 %v926_v11  ;;  %v956_v31 = vld [vmem:[%s1458_s3 + $0x70] ss:$8 sps:$4 sm:$0xff]   ;;  %v958_v33 = vld [vmem:[%s1460_s1] sm:$0xff]   ;;  %v960_v35 = vld [vmem:[%s1460_s1 + $0x8] sm:$0xff]  }
   0xc   :  { %302 = vmatpush1.bf16.msra.mxu1 %v1051_v12  ;;  %138 = vmatprep.subr.bf16.mxu0 %v928_v13  ;;  %v1142_v32 = vld [vmem:[%s1459_s2 + $0x70] ss:$8 sps:$4 sm:$0xff]   ;;  %v959_v34 = vld [vmem:[%s1461_s0] sm:$0xff]   ;;  %v961_v36 = vld [vmem:[%s1461_s0 + $0x8] sm:$0xff]  }
   0xd   :  { %303 = vmatprep.subr.bf16.mxu1 %v1061_v14  ;;  %v962_v37 = vld [vmem:[%s1461_s0 + $0x10] sm:$0xff]   ;;  %v963_v38 = vld [vmem:[%s1461_s0 + $0x20] sm:$0xff]   ;;  %v964_v39 = vld [vmem:[%s1461_s0 + $0x18] sm:$0xff]  }
   0xe   :  { %v965_v40 = vld [vmem:[%s1461_s0 + $0x28] sm:$0xff]   ;;  %v966_v41 = vld [vmem:[%s1461_s0 + $0x30] sm:$0xff]   ;;  %v967_v42 = vld [vmem:[%s1461_s0 + $0x38] sm:$0xff]  }
   0xf   :  { %139 = vmatpush1.bf16.msra.mxu0 %v932_v15 }
  0x10   :  { %304 = vmatpush1.bf16.msra.mxu1 %v1070_v16  ;;  %140 = vmatprep.subr.bf16.mxu0 %v934_v17 }
  0x11   :  { %305 = vmatprep.subr.bf16.mxu1 %v1079_v18 }
  0x13   :  { %141 = vmatpush1.bf16.msra.mxu0 %v938_v19 }
  0x14   :  { %306 = vmatpush1.bf16.msra.mxu1 %v1087_v20  ;;  %142 = vmatprep.subr.bf16.mxu0 %v940_v21 }
  0x15   :  { %307 = vmatprep.subr.bf16.mxu1 %v1097_v22 }
  0x17   :  { %143 = vmatpush1.bf16.msra.mxu0 %v944_v23 }
  0x18   :  { %308 = vmatpush1.bf16.msra.mxu1 %v1106_v24  ;;  %144 = vmatprep.subr.bf16.mxu0 %v946_v25 }
  0x19   :  { %309 = vmatprep.subr.bf16.mxu1 %v1115_v26 }
  0x1b   :  { %145 = vmatpush1.bf16.msra.mxu0 %v950_v27 }
  0x1c   :  { %310 = vmatpush1.bf16.msra.mxu1 %v1123_v28  ;;  %146 = vmatprep.subr.bf16.mxu0 %v952_v29 }
  0x1d   :  { %311 = vmatprep.subr.bf16.mxu1 %v1133_v30 }
  0x1f   :  { %147 = vmatpush1.bf16.msra.mxu0 %v956_v31 }
  0x20   :  { %312 = vmatpush1.bf16.msra.mxu1 %v1142_v32  ;;  %375 = vmatprep.subr.bf16.mxu0 %v1008_v2 }
  0x21   :  { %485 = vmatprep.subr.bf16.mxu1 %v1008_v2 }
  0x22   :  { %165 = vmatmul.mubr.bf16.vlgmr.msra.gmra.mrb[0].mxu0 %v958_v33 }
  0x23   :  { %330 = vmatmul.mubr.bf16.vlgmr.msra.gmra.mrb[0].mxu1 %v959_v34  ;;  %376 = vmatpush1.bf16.msra.mxu0 %v1016_v4 }
  0x24   :  { %486 = vmatpush1.bf16.msra.mxu1 %v1016_v4  ;;  %377 = vmatprep.subr.bf16.mxu0 %v1026_v6 }
  0x25   :  { %487 = vmatprep.subr.bf16.mxu1 %v1026_v6  ;;  %174 = vmatprep.mubr.bf16.mxu0 %v968_v1 }
  0x26   :  { %339 = vmatprep.mubr.bf16.mxu1 %v968_v1 }
  0x27   :  { %378 = vmatpush1.bf16.msra.mxu0 %v1034_v8 }
  0x28   :  { %488 = vmatpush1.bf16.msra.mxu1 %v1034_v8  ;;  %379 = vmatprep.subr.bf16.mxu0 %v1043_v10 }
  0x29   :  { %489 = vmatprep.subr.bf16.mxu1 %v1043_v10 }
  0x2a   :  { %175 = vmatmul.mubr.bf16.gmra.mrb[4].mxu0 %v960_v35 }
  0x2b   :  { %340 = vmatmul.mubr.bf16.gmra.mrb[4].mxu1 %v961_v36  ;;  %380 = vmatpush1.bf16.msra.mxu0 %v1051_v12 }
  0x2c   :  { %490 = vmatpush1.bf16.msra.mxu1 %v1051_v12  ;;  %381 = vmatprep.subr.bf16.mxu0 %v1061_v14 }
  0x2d   :  { %491 = vmatprep.subr.bf16.mxu1 %v1061_v14  ;;  %407 = vmatprep.mubr.bf16.mxu0 %v968_v1 }
  0x2e   :  { %517 = vmatprep.mubr.bf16.mxu1 %v968_v1 }
  0x2f   :  { %382 = vmatpush1.bf16.msra.mxu0 %v1070_v16 }
  0x30   :  { %492 = vmatpush1.bf16.msra.mxu1 %v1070_v16  ;;  %383 = vmatprep.subr.bf16.mxu0 %v1079_v18 }
  0x31   :  { %493 = vmatprep.subr.bf16.mxu1 %v1079_v18 }
  0x33   :  { %384 = vmatpush1.bf16.msra.mxu0 %v1087_v20 }
  0x34   :  { %494 = vmatpush1.bf16.msra.mxu1 %v1087_v20  ;;  %385 = vmatprep.subr.bf16.mxu0 %v1097_v22 }
  0x35   :  { %495 = vmatprep.subr.bf16.mxu1 %v1097_v22 }
  0x37   :  { %386 = vmatpush1.bf16.msra.mxu0 %v1106_v24 }
  0x38   :  { %496 = vmatpush1.bf16.msra.mxu1 %v1106_v24  ;;  %387 = vmatprep.subr.bf16.mxu0 %v1115_v26 }
  0x39   :  { %497 = vmatprep.subr.bf16.mxu1 %v1115_v26 }
  0x3b   :  { %388 = vmatpush1.bf16.msra.mxu0 %v1123_v28 }
  0x3c   :  { %498 = vmatpush1.bf16.msra.mxu1 %v1123_v28  ;;  %389 = vmatprep.subr.bf16.mxu0 %v1133_v30 }
  0x3d   :  { %499 = vmatprep.subr.bf16.mxu1 %v1133_v30 }
  0x3f   :  { %390 = vmatpush1.bf16.msra.mxu0 %v1142_v32 }
  0x40   :  { %500 = vmatpush1.bf16.msra.mxu1 %v1142_v32  ;;  %595 = vmatprep.subr.bf16.mxu0 %v1008_v2 }
  0x41   :  { %892 = vmatprep.subr.bf16.mxu1 %v1008_v2 }
  0x42   :  { %408 = vmatmul.mubr.bf16.vlgmr.msra.gmra.mrb[8].mxu0 %v962_v37 }
  0x43   :  { %518 = vmatmul.mubr.bf16.vlgmr.msra.gmra.mrb[8].mxu1 %v963_v38  ;;  %596 = vmatpush1.bf16.msra.mxu0 %v1016_v4 }
  0x44   :  { %900 = vmatpush1.bf16.msra.mxu1 %v1016_v4  ;;  %597 = vmatprep.subr.bf16.mxu0 %v1026_v6 }
  0x45   :  { %893 = vmatprep.subr.bf16.mxu1 %v1026_v6  ;;  %417 = vmatprep.mubr.bf16.mxu0 %v968_v1 }
  0x46   :  { %527 = vmatprep.mubr.bf16.mxu1 %v968_v1 }
  0x47   :  { %598 = vmatpush1.bf16.msra.mxu0 %v1034_v8 }
  0x48   :  { %901 = vmatpush1.bf16.msra.mxu1 %v1034_v8  ;;  %599 = vmatprep.subr.bf16.mxu0 %v1043_v10 }
  0x49   :  { %894 = vmatprep.subr.bf16.mxu1 %v1043_v10 }
  0x4a   :  { %418 = vmatmul.mubr.bf16.gmra.mrb[12].mxu0 %v964_v39 }
  0x4b   :  { %528 = vmatmul.mubr.bf16.gmra.mrb[12].mxu1 %v965_v40  ;;  %600 = vmatpush1.bf16.msra.mxu0 %v1051_v12 }
  0x4c   :  { %902 = vmatpush1.bf16.msra.mxu1 %v1051_v12  ;;  %601 = vmatprep.subr.bf16.mxu0 %v1061_v14 }
  0x4d   :  { %895 = vmatprep.subr.bf16.mxu1 %v1061_v14  ;;  %627 = vmatprep.mubr.bf16.mxu0 %v968_v1 }
  0x4e   :  { %637 = vmatprep.mubr.bf16.mxu1 %v968_v1 }
  0x4f   :  { %602 = vmatpush1.bf16.msra.mxu0 %v1070_v16 }
  0x50   :  { %903 = vmatpush1.bf16.msra.mxu1 %v1070_v16  ;;  %603 = vmatprep.subr.bf16.mxu0 %v1079_v18 }
  0x51   :  { %896 = vmatprep.subr.bf16.mxu1 %v1079_v18 }
  0x53   :  { %604 = vmatpush1.bf16.msra.mxu0 %v1087_v20 }
  0x54   :  { %904 = vmatpush1.bf16.msra.mxu1 %v1087_v20  ;;  %605 = vmatprep.subr.bf16.mxu0 %v1097_v22 }
  0x55   :  { %897 = vmatprep.subr.bf16.mxu1 %v1097_v22 }
  0x57   :  { %606 = vmatpush1.bf16.msra.mxu0 %v1106_v24 }
  0x58   :  { %905 = vmatpush1.bf16.msra.mxu1 %v1106_v24  ;;  %607 = vmatprep.subr.bf16.mxu0 %v1115_v26 }
  0x59   :  { %898 = vmatprep.subr.bf16.mxu1 %v1115_v26 }
  0x5b   :  { %608 = vmatpush1.bf16.msra.mxu0 %v1123_v28 }
  0x5c   :  { %906 = vmatpush1.bf16.msra.mxu1 %v1123_v28  ;;  %609 = vmatprep.subr.bf16.mxu0 %v1133_v30 }
  0x5d   :  { %899 = vmatprep.subr.bf16.mxu1 %v1133_v30 }
  0x5f   :  { %610 = vmatpush1.bf16.msra.mxu0 %v1142_v32 }
  0x60   :  { %907 = vmatpush1.bf16.msra.mxu1 %v1142_v32 }
  0x62   :  { %628 = vmatmul.mubr.bf16.vlgmr.msra.gmra.mrb[16].mxu0 %v966_v41 }
  0x63   :  { %638 = vmatmul.mubr.bf16.vlgmr.msra.gmra.mrb[16].mxu1 %v967_v42 }
  0xf5   :  { %v1248_v43 = vpop.f32.mrb[0].mxu0 }
  0xf6   :  { %v331_v44 = vpop.f32.mrb[0].mxu1  ;;  %v1251_v46 = vpop.f32.mrb[1].mxu0 }
  0xf7   :  { %v332_v45 = vadd.f32 %v331_v44, %v1248_v43  ;;  %v333_v47 = vpop.f32.mrb[1].mxu1  ;;  %v1254_v49 = vpop.f32.mrb[2].mxu0 }
  0xf8   :  { %v334_v48 = vadd.f32 %v333_v47, %v1251_v46  ;;  %v335_v50 = vpop.f32.mrb[2].mxu1  ;;  %v1259_v52 = vpop.f32.mrb[3].mxu0 }
  0xf9   :  { %v1257_v51 = vadd.f32 %v335_v50, %v1254_v49  ;;  %v337_v53 = vpop.f32.mrb[3].mxu1  ;;  %v350_v3 = vmul.f32 %v332_v45, %v332_v45 }
  0xfa   :  { %v1262_v54 = vadd.f32 %v337_v53, %v1259_v52  ;;  %v351_v4 = vmul.f32 %v334_v48, %v334_v48 }
  0xfb   :  { %v352_v5 = vmul.f32 %v1257_v51, %v1257_v51 }
  0xfc   :  { %v1288_v8 = vmul.f32 %v1262_v54, %v1262_v54 }
  0xfd   :  { %v1264_v55 = vpop.f32.mrb[4].mxu0 }
  0xfe   :  { %v341_v56 = vpop.f32.mrb[4].mxu1  ;;  %v1269_v58 = vpop.f32.mrb[5].mxu0 }
  0xff   :  { %v1267_v57 = vadd.f32 %v341_v56, %v1264_v55  ;;  %v343_v59 = vpop.f32.mrb[5].mxu1  ;;  %v1274_v61 = vpop.f32.mrb[6].mxu0 }
 0x100   :  { %v1272_v60 = vadd.f32 %v343_v59, %v1269_v58  ;;  %v345_v62 = vpop.f32.mrb[6].mxu1  ;;  %v1279_v0 = vpop.f32.mrb[7].mxu0 }
 0x101   :  { %v1277_v63 = vadd.f32 %v345_v62, %v1274_v61  ;;  %v347_v1 = vpop.f32.mrb[7].mxu1  ;;  %v1292_v9 = vmul.f32 %v1267_v57, %v1267_v57 }
 0x102   :  { %v1282_v2 = vadd.f32 %v347_v1, %v1279_v0  ;;  %v1298_v14 = vmul.f32 %v1272_v60, %v1272_v60 }
 0x103   :  { %v1302_v15 = vmul.f32 %v1277_v63, %v1277_v63 }
 0x104   :  { %v1320_v38 = vmul.f32 %v1282_v2, %v1282_v2 }
 0x115   :  { %v409_v6 = vpop.f32.mrb[8].mxu0 }
 0x116   :  { %v519_v7 = vpop.f32.mrb[8].mxu1  ;;  %v410_v10 = vadd.f32 %v409_v6, %v1248_v43  ;;  %v411_v12 = vpop.f32.mrb[9].mxu0 }
 0x117   :  { %v520_v11 = vadd.f32 %v519_v7, %v1248_v43  ;;  %v521_v13 = vpop.f32.mrb[9].mxu1  ;;  %v412_v16 = vadd.f32 %v411_v12, %v1251_v46  ;;  %v413_v18 = vpop.f32.mrb[10].mxu0 }
 0x118   :  { %v522_v17 = vadd.f32 %v521_v13, %v1251_v46  ;;  %v523_v19 = vpop.f32.mrb[10].mxu1  ;;  %v428_v20 = vmax.f32 %v332_v45, %v410_v10  ;;  %v436_v21 = vmin.f32 %v332_v45, %v410_v10  ;;  %v444_v22 = vadd.f32 %v410_v10, %v332_v45  ;;  %v415_v24 = vpop.f32.mrb[11].mxu0 }
 0x119   :  { %v452_v23 = vmul.f32 %v410_v10, %v410_v10  ;;  %v525_v25 = vpop.f32.mrb[11].mxu1  ;;  %v562_v26 = vmul.f32 %v520_v11, %v520_v11  ;;  %v429_v27 = vmax.f32 %v334_v48, %v412_v16  ;;  %v437_v28 = vmin.f32 %v334_v48, %v412_v16 }
 0x11a   :  { %v445_v29 = vadd.f32 %v412_v16, %v334_v48  ;;  %v1306_v31 = vmax.f32 %v428_v20, %v520_v11  ;;  %v1308_v32 = vmin.f32 %v436_v21, %v520_v11  ;;  %v1310_v33 = vadd.f32 %v520_v11, %v444_v22 }
 0x11b   :  { %v460_v30 = vadd.f32 %v452_v23, %v350_v3  ;;  %v453_v34 = vmul.f32 %v412_v16, %v412_v16  ;;  %v1312_v35 = vmax.f32 %v429_v27, %v522_v17  ;;  %v1314_v36 = vmin.f32 %v437_v28, %v522_v17 }
 0x11c   :  { %v1316_v37 = vadd.f32 %v522_v17, %v445_v29  ;;  %v414_v40 = vadd.f32 %v413_v18, %v1254_v49  ;;  %v524_v41 = vadd.f32 %v523_v19, %v1254_v49  ;;  %v563_v44 = vmul.f32 %v522_v17, %v522_v17 }
 0x11d   :  { %v1322_v39 = vadd.f32 %v562_v26, %v460_v30  ;;  %v461_v42 = vadd.f32 %v453_v34, %v351_v4  ;;  %v416_v45 = vadd.f32 %v415_v24, %v1259_v52  ;;  %v526_v47 = vadd.f32 %v525_v25, %v1259_v52  ;;  %v419_v48 = vpop.f32.mrb[12].mxu0 }
 0x11e   :  { %v529_v50 = vpop.f32.mrb[12].mxu1  ;;  %v430_v53 = vmax.f32 %v1257_v51, %v414_v40  ;;  %v438_v56 = vmin.f32 %v1257_v51, %v414_v40  ;;  %v446_v59 = vadd.f32 %v414_v40, %v1257_v51  ;;  %v454_v62 = vmul.f32 %v414_v40, %v414_v40  ;;  %v421_v1 = vpop.f32.mrb[13].mxu0 }
 0x11f   :  { %v531_v3 = vpop.f32.mrb[13].mxu1  ;;  %v1331_v6 = vadd.f32 %v563_v44, %v461_v42  ;;  %v564_v7 = vmul.f32 %v524_v41, %v524_v41  ;;  %v431_v4 = vmax.f32 %v1262_v54, %v416_v45  ;;  %v439_v10 = vmin.f32 %v1262_v54, %v416_v45  ;;  %v423_v11 = vpop.f32.mrb[14].mxu0 }
 0x120   :  { %v533_v12 = vpop.f32.mrb[14].mxu1  ;;  %v462_v13 = vadd.f32 %v454_v62, %v352_v5  ;;  %v1335_v16 = vmax.f32 %v430_v53, %v524_v41  ;;  %v1337_v17 = vmin.f32 %v438_v56, %v524_v41  ;;  %v1339_v18 = vadd.f32 %v524_v41, %v446_v59  ;;  %v425_v51 = vpop.f32.mrb[15].mxu0 }
 0x121   :  { %v535_v19 = vpop.f32.mrb[15].mxu1  ;;  %v447_v20 = vadd.f32 %v416_v45, %v1262_v54  ;;  %v455_v21 = vmul.f32 %v416_v45, %v416_v45  ;;  %v1342_v22 = vmax.f32 %v431_v4, %v526_v47  ;;  %v1344_v23 = vmin.f32 %v439_v10, %v526_v47 }
 0x122   :  { %v1346_v24 = vadd.f32 %v564_v7, %v462_v13  ;;  %v565_v25 = vmul.f32 %v526_v47, %v526_v47  ;;  %v420_v5 = vadd.f32 %v419_v48, %v1264_v55  ;;  %v530_v26 = vadd.f32 %v529_v50, %v1264_v55 }
 0x123   :  { %v463_v27 = vadd.f32 %v455_v21, %v1288_v8  ;;  %v1351_v28 = vadd.f32 %v526_v47, %v447_v20  ;;  %v422_v29 = vadd.f32 %v421_v1, %v1269_v58  ;;  %v532_v54 = vadd.f32 %v531_v3, %v1269_v58 }
 0x124   :  { %v432_v30 = vmax.f32 %v1267_v57, %v420_v5  ;;  %v440_v34 = vmin.f32 %v1267_v57, %v420_v5  ;;  %v448_v40 = vadd.f32 %v420_v5, %v1267_v57  ;;  %v456_v41 = vmul.f32 %v420_v5, %v420_v5 }
 0x125   :  { %v1358_v42 = vadd.f32 %v565_v25, %v463_v27  ;;  %v566_v44 = vmul.f32 %v530_v26, %v530_v26  ;;  %v433_v45 = vmax.f32 %v1272_v60, %v422_v29  ;;  %v441_v8 = vmin.f32 %v1272_v60, %v422_v29 }
 0x126   :  { %v464_v47 = vadd.f32 %v456_v41, %v1292_v9  ;;  %v1363_v48 = vmax.f32 %v432_v30, %v530_v26  ;;  %v1365_v50 = vmin.f32 %v440_v34, %v530_v26  ;;  %v558_v53 = vadd.f32 %v530_v26, %v448_v40 }
 0x127   :  { %v449_v56 = vadd.f32 %v422_v29, %v1272_v60  ;;  %v457_v59 = vmul.f32 %v422_v29, %v422_v29  ;;  %v1368_v62 = vmax.f32 %v433_v45, %v532_v54  ;;  %v1370_v57 = vmin.f32 %v441_v8, %v532_v54 }
 0x128   :  { %v574_v1 = vadd.f32 %v566_v44, %v464_v47  ;;  %v567_v3 = vmul.f32 %v532_v54, %v532_v54  ;;  %v424_v7 = vadd.f32 %v423_v11, %v1274_v61  ;;  %v534_v4 = vadd.f32 %v533_v12, %v1274_v61 }
 0x129   :  { %v465_v9 = vadd.f32 %v457_v59, %v1298_v14  ;;  %v559_v10 = vadd.f32 %v532_v54, %v449_v56  ;;  %v426_v13 = vadd.f32 %v425_v51, %v1279_v0  ;;  %v536_v20 = vadd.f32 %v535_v19, %v1279_v0 }
 0x12a   :  { %v434_v60 = vmax.f32 %v1277_v63, %v424_v7  ;;  %v442_v21 = vmin.f32 %v1277_v63, %v424_v7  ;;  %v450_v25 = vadd.f32 %v424_v7, %v1277_v63  ;;  %v458_v5 = vmul.f32 %v424_v7, %v424_v7 }
 0x12b   :  { %v575_v26 = vadd.f32 %v567_v3, %v465_v9  ;;  %v568_v27 = vmul.f32 %v534_v4, %v534_v4  ;;  %v435_v11 = vmax.f32 %v1282_v2, %v426_v13  ;;  %v443_v12 = vmin.f32 %v1282_v2, %v426_v13 }
 0x12c   :  { %v466_v14 = vadd.f32 %v458_v5, %v1302_v15  ;;  %v1383_v29 = vmax.f32 %v434_v60, %v534_v4  ;;  %v1385_v51 = vmin.f32 %v442_v21, %v534_v4  ;;  %v560_v19 = vadd.f32 %v534_v4, %v450_v25 }
 0x12d   :  { %v451_v54 = vadd.f32 %v426_v13, %v1282_v2  ;;  %v459_v30 = vmul.f32 %v426_v13, %v426_v13  ;;  %v1388_v34 = vmax.f32 %v435_v11, %v536_v20  ;;  %v1390_v63 = vmin.f32 %v443_v12, %v536_v20 }
 0x12e   :  { %v576_v40 = vadd.f32 %v568_v27, %v466_v14  ;;  %v569_v45 = vmul.f32 %v536_v20, %v536_v20 }
 0x12f   :  { %v467_v41 = vadd.f32 %v459_v30, %v1320_v38  ;;  %v1393_v44 = vadd.f32 %v536_v20, %v451_v54 }
 0x131   :  { %v1395_v8 = vadd.f32 %v569_v45, %v467_v41 }
 0x135   :  { %v629_v15 = vpop.f32.mrb[16].mxu0 }
 0x136   :  { %v639_v47 = vpop.f32.mrb[16].mxu1  ;;  %v630_v56 = vadd.f32 %v629_v15, %v1248_v43  ;;  %v631_v2 = vpop.f32.mrb[17].mxu0 }
 0x137   :  { %v640_v59 = vadd.f32 %v639_v47, %v1264_v55  ;;  %v641_v3 = vpop.f32.mrb[17].mxu1  ;;  %v632_v7 = vadd.f32 %v631_v2, %v1251_v46  ;;  %v633_v9 = vpop.f32.mrb[18].mxu0 }
 0x138   :  { %v642_v4 = vadd.f32 %v641_v3, %v1269_v58  ;;  %v643_v13 = vpop.f32.mrb[18].mxu1  ;;  %v648_v38 = vmax.f32 %v1306_v31, %v630_v56  ;;  %v656_v20 = vmin.f32 %v1308_v32, %v630_v56  ;;  %v664_v60 = vadd.f32 %v630_v56, %v1310_v33  ;;  %v635_v25 = vpop.f32.mrb[19].mxu0 }
 0x139   :  { %v672_v21 = vmul.f32 %v630_v56, %v630_v56  ;;  %v645_v5 = vpop.f32.mrb[19].mxu1  ;;  %v652_v43 = vmax.f32 %v1363_v48, %v640_v59  ;;  %v660_v55 = vmin.f32 %v1365_v50, %v640_v59  ;;  %v668_v27 = vadd.f32 %v640_v59, %v558_v53 }
 0x13a   :  { %v676_v11 = vmul.f32 %v640_v59, %v640_v59  ;;  %v649_v58 = vmax.f32 %v1312_v35, %v632_v7  ;;  %v657_v12 = vmin.f32 %v1314_v36, %v632_v7  ;;  %v665_v31 = vadd.f32 %v632_v7, %v1316_v37 }
 0x13b   :  { %v680_v46 = vadd.f32 %v672_v21, %v1322_v39  ;;  %v673_v14 = vmul.f32 %v632_v7, %v632_v7  ;;  %v653_v33 = vmax.f32 %v1368_v62, %v642_v4  ;;  %v661_v54 = vmin.f32 %v1370_v57, %v642_v4 }
 0x13c   :  { %v684_v32 = vadd.f32 %v676_v11, %v574_v1  ;;  %v884_v30 = vpack.c.bf16 %v649_v58, %v648_v38  ;;  %v885_v48 = vpack.c.bf16 %v657_v12, %v656_v20  ;;  %v669_v41 = vadd.f32 %v642_v4, %v559_v10 }
 0x13d   :  { %v677_v50 = vmul.f32 %v642_v4, %v642_v4  ;;  %v681_v53 = vadd.f32 %v673_v14, %v1331_v6  ;;  %v888_v45 = vpack.c.bf16 %v653_v33, %v652_v43  ;;  %v889_v39 = vpack.c.bf16 %v661_v54, %v660_v55 }
 0x13e   :  { %v634_v35 = vadd.f32 %v633_v9, %v1254_v49  ;;  %736 = vst [vmem:[%s1462_s4] sm:$0xff] %v884_v30  ;;  %737 = vst [vmem:[%s1462_s4 + $0x8] sm:$0xff] %v885_v48  ;;  %v644_v37 = vadd.f32 %v643_v13, %v1274_v61  ;;  %v636_v62 = vadd.f32 %v635_v25, %v1259_v52  ;;  %v969_v12 = vmov 1966171168  }
 0x13f   :  { %v685_v36 = vadd.f32 %v677_v50, %v575_v26  ;;  %v646_v57 = vadd.f32 %v645_v5, %v1279_v0  ;;  %740 = vst [vmem:[%s1462_s4 + $0x20] sm:$0xff] %v888_v45  ;;  %741 = vst [vmem:[%s1462_s4 + $0x28] sm:$0xff] %v889_v39  ;;  %v789_v33 = vlaneseq }
 0x140   :  { %v650_v49 = vmax.f32 %v1335_v16, %v634_v35  ;;  %v658_v6 = vmin.f32 %v1337_v17, %v634_v35  ;;  %v666_v1 = vadd.f32 %v634_v35, %v1339_v18  ;;  %v674_v10 = vmul.f32 %v634_v35, %v634_v35 }
 0x141   :  { %v654_v61 = vmax.f32 %v1383_v29, %v644_v37  ;;  %v662_v52 = vmin.f32 %v1385_v51, %v644_v37  ;;  %v670_v0 = vadd.f32 %v644_v37, %v560_v19  ;;  %v678_v26 = vmul.f32 %v644_v37, %v644_v37 }
 0x142   :  { %v682_v15 = vadd.f32 %v674_v10, %v1346_v24  ;;  %v744_v47 = vadd.f32 %v666_v1, %v664_v60  ;;  %v651_v56 = vmax.f32 %v1342_v22, %v636_v62  ;;  %v659_v59 = vmin.f32 %v1344_v23, %v636_v62 }
 0x143   :  { %v686_v2 = vadd.f32 %v678_v26, %v576_v40  ;;  %v667_v16 = vadd.f32 %v636_v62, %v1351_v28  ;;  %v675_v17 = vmul.f32 %v636_v62, %v636_v62  ;;  %v655_v18 = vmax.f32 %v1388_v34, %v646_v57 }
 0x144   :  { %v762_v3 = vadd.f32 %v682_v15, %v680_v46  ;;  %v745_v7 = vadd.f32 %v744_v47, %v668_v27  ;;  %v886_v29 = vpack.c.bf16 %v651_v56, %v650_v49  ;;  %v887_v4 = vpack.c.bf16 %v659_v59, %v658_v6 }
 0x145   :  { %v683_v51 = vadd.f32 %v675_v17, %v1358_v42  ;;  %v753_v19 = vadd.f32 %v667_v16, %v665_v31  ;;  %v663_v24 = vmin.f32 %v1390_v63, %v646_v57  ;;  %v671_v9 = vadd.f32 %v646_v57, %v1393_v44 }
 0x146   :  { %v746_v22 = vadd.f32 %v745_v7, %v670_v0  ;;  %v763_v13 = vadd.f32 %v762_v3, %v684_v32  ;;  %738 = vst [vmem:[%s1462_s4 + $0x10] sm:$0xff] %v886_v29  ;;  %739 = vst [vmem:[%s1462_s4 + $0x18] sm:$0xff] %v887_v4  ;;  %v679_v23 = vmul.f32 %v646_v57, %v646_v57  ;;  %v787_v31 = vunpack.c.l.s4 %v969_v12 }
 0x147   :  { %v890_v28 = vpack.c.bf16 %v655_v18, %v654_v61  ;;  %v771_v34 = vadd.f32 %v683_v51, %v681_v53  ;;  %v891_v40 = vpack.c.bf16 %v663_v24, %v662_v52  ;;  %v754_v42 = vadd.f32 %v753_v19, %v669_v41 }
 0x148   :  { %v747_v38 = vrot.slane %v746_v22, 4  ;;  %v764_v20 = vadd.f32 %v763_v13, %v686_v2  ;;  %v687_v63 = vadd.f32 %v679_v23, %v1395_v8  ;;  %v788_v53 = vunpack.c.0.s8 %v787_v31 }
 0x149   :  { %742 = vst [vmem:[%s1462_s4 + $0x30] sm:$0xff] %v890_v28  ;;  %743 = vst [vmem:[%s1462_s4 + $0x38] sm:$0xff] %v891_v40  ;;  %v755_v44 = vadd.f32 %v754_v42, %v671_v9  ;;  %v772_v60 = vadd.f32 %v771_v34, %v685_v36  ;;  %v790_v36 = vshrl.u32 %v789_v33, 7  ;;  %vm811_vm0 = vcmp.lt.s32.totalorder %v789_v33, 512 }
 0x14a   :  { %v748_v21 = vadd.f32 %v747_v38, %v746_v22  ;;  %v765_v25 = vrot.slane %v764_v20, 4 }
 0x14b   :  { %v756_v5 = vrot.slane %v755_v44, 4  ;;  %v773_v43 = vadd.f32 %v772_v60, %v687_v63  ;;  %v791_v1 = vsub.s32 %v788_v53, %v790_v36 }
 0x14c   :  { %v749_v55 = vrot.slane %v748_v21, 2  ;;  %v766_v27 = vadd.f32 %v765_v25, %v764_v20 }
 0x14d   :  { %v757_v11 = vadd.f32 %v756_v5, %v755_v44  ;;  %v774_v46 = vrot.slane %v773_v43, 4 }
 0x14e   :  { %v750_v58 = vadd.f32 %v749_v55, %v748_v21  ;;  %v767_v8 = vrot.slane %v766_v27, 2 }
 0x14f   :  { %v758_v32 = vrot.slane %v757_v11, 2  ;;  %v775_v14 = vadd.f32 %v774_v46, %v773_v43 }
 0x150   :  { %v751_v54 = vrot.slane %v750_v58, 1  ;;  %v768_v30 = vadd.f32 %v767_v8, %v766_v27 }
 0x151   :  { %v759_v48 = vadd.f32 %v758_v32, %v757_v11  ;;  %v776_v41 = vrot.slane %v775_v14, 2 }
 0x152   :  { %v769_v50 = vrot.slane %v768_v30, 1  ;;  %v752_v45 = vadd.f32 %v751_v54, %v750_v58 }
 0x153   :  { %v760_v39 = vrot.slane %v759_v48, 1  ;;  %v777_v35 = vadd.f32 %v776_v41, %v775_v14 }
 0x154   :  { %v770_v37 = vadd.f32 %v769_v50, %v768_v30 }
 0x155   :  { %v761_v62 = vadd.f32 %v760_v39, %v759_v48  ;;  %v778_v57 = vrot.slane %v777_v35, 1 }
 0x157   :  { %v779_v49 = vadd.f32 %v778_v57, %v777_v35  ;;  %v784_v6 = vcombine.low %v752_v45, %v761_v62 }
 0x159   :  { %v785_v10 = vcombine.low %v770_v37, %v779_v49  ;;  %v792_v61 = vrot.slane %v784_v6, %v791_v1 }
 0x15b   :  { %v799_v52 = vrot.slane %v785_v10, %v791_v1 }
 0x15d   :  { %v800_v0 = vcombine.low %v792_v61, %v799_v52 }
 0x15f   :  { %v807_v26 = vrot.slane %v800_v0, %v791_v1 }
 0x161   :  { %813 = vst.msk [vmem:[%s1463_s5] sm:$0xf] %vm811_vm0, %v807_v26 }

// kernel: dgcnn_forward.19
= control target key start
LH: loop header
LB: loop body
LE: loop exit
PB: predicated region body
PF: predicated region fallthrough
CT: control target
= control target key end

     0   :  { %s91_s14 = smov 96   ;;  %s135_s0 = inlined_call_operand.vmem [shape: f32[2,64], index: 0, kind: input, shape index: {}]   ;;  %s136_s1 = inlined_call_operand.vmem [shape: f32[1,32], index: 1, kind: input, shape index: {}]   ;;  %s137_s2 = inlined_call_operand.vmem [shape: f32[1,32], index: 2, kind: input, shape index: {}]   ;;  %s138_s3 = inlined_call_operand.hbm [shape: f32[2,32], index: 3, kind: output, shape index: {}]  }
   0x1   :  { %v17_v0 = vld [vmem:[%s135_s0] sm:$0x3] }
   0x2   :  { %25 = vrot.lane.b32.xlu0 %v17_v0, %s91_s14 }
   0x3   :  { %8 = vsyncpa [#allocation3], 0  ;;  %v19_v1 = vlaneseq  ;;  %v15_v2 = vld [vmem:[%s136_s1] sm:$0x1]  ;;  %v92_v5 = vmov 0   ;;  %s93_s18 = smov [#allocation2]  }
   0x4   :  { %vm16_vm0 = vcmp.ge.f32.partialorder %v15_v2, 0.0  ;;  %v63_v11 = vld [vmem:[%s137_s2] ss:$0 sm:$0xff]  ;;  %s55_s19 = sshll.u32 %s93_s18, 4  ;;  %vm47_vm3 = vcmask 254976   ;;  %s56_s19 = int_to_ptr.vmem [resolvable:$true] %s55_s19 }
   0x5   :  { %v20_v3 = vshrl.u32 %v19_v1, 7  ;;  %v18_v6 = vsel %vm16_vm0, 1, %v92_v5  ;;  %s67_s1 = scalar_lea.vmem %s56_s19, 32  ;;  %p72_p1 = scmp.lt.s32.totalorder %s56_s19, %s56_s19 }
   0x6   :  { %p68_p0 = scmp.ne.s32.totalorder %s56_s19, %s67_s1  ;;  %p73_p2 = scmp.lt.s32.totalorder %s67_s1, %s67_s1 }
   0x7   :  { %v21_v4 = vsub.s32 0, %v20_v3 }
   0x8   :  { %p74_p3 = por %p73_p2, %p72_p1 }
   0x9   :  { %v22_v7 = vrot.slane %v18_v6, %v21_v4  ;;  %v33_v8 = vrot.slane %v15_v2, %v21_v4 }
   0xa   :  { %p75_p4 = pnand %p74_p3, %p68_p0 }
   0xb   :  { %vm23_vm1 = vcmp.eq.s32.totalorder %v22_v7, 1 }
  0x74   :  { %v26_v9 = vpop.permute.xlu0 %25 }
  0x75   :  { %v28_v10 = vsel %vm23_vm1, %v17_v0, %v26_v9 }
  0x76   :  { %v35_v12 = vmul.f32 %v33_v8, %v28_v10 }
  0x78   :  { %v43_v13 = vadd.f32 %v63_v11, %v35_v12 }
  0x7a   :  { %vm44_vm2 = vcmp.ge.f32.partialorder %v43_v13, 0.0  ;;  %v45_v14 = vmul.f32 0.2, %v43_v13 }
  0x7c   :  { %v46_v15 = vsel %vm44_vm2, %v43_v13, %v45_v14 }
  0x7d   :  { %48 = vst.msk [vmem:[#allocation2] sm:$0x3] %vm47_vm3, %v46_v15 }
  0x7e   :  { %78 = shalt.err (!%p75_p4)
}
  0x7f   :  { %s79_s2 = scalar_lea.hbm %s138_s3, 32 }
  0x80   :  { %p80_p5 = scmp.ne.s32.totalorder %s138_s3, %s79_s2  ;;  %p83_p6 = scmp.lt.u32.totalorder %s79_s2, %s138_s3 }
  0x82   :  { %p85_p7 = pnand %p83_p6, %p80_p5 }
  0x84   :  { %88 = shalt.err (!%p85_p7)
}
  0x85   :  { %58 = dma.vmem_to_hbm [thread:$0]  %s56_s19, 32, %s138_s3, [#allocation3]  }
  0x86   :  { %89 = dma.done.wait [#allocation3], 32  }
  0x87   :  { %90 = vsyncadd [#allocation3], 4294967264 }
  0x88   :  { %62 = vsyncpa [#allocation3], 1 }

// kernel: dgcnn_forward.18
= control target key start
LH: loop header
LB: loop body
LE: loop exit
PB: predicated region body
PF: predicated region fallthrough
CT: control target
= control target key end

     0   :  { %s778_s9 = smov 0   ;;  %s905_s0 = inlined_call_operand.vmem [shape: bf16[32,512], index: 0, kind: input, shape index: {}]   ;;  %s906_s1 = inlined_call_operand.vmem [shape: bf16[512,32], index: 1, kind: input, shape index: {}]   ;;  %s907_s2 = inlined_call_operand.vmem [shape: f32[2,1,128], index: 2, kind: output, shape index: {}]  }
   0x1 LB: > { %s784_s10 = sadd.s32 4294967295, %s758_s9   ;;  %p616_p0 = scmp.ge.s32.totalorder %s758_s9, 1  ;;  %s758_s9 = sphi %s778_s9, %s12_s9  }
   0x2   : > { %p114_p1 = scmp.lt.s32.totalorder %s758_s9, 3 }
   0x4   : > { %p115_p2 = pnand %p616_p0, %p114_p1 }
   0x5   : > { %v714_v0 = vld [vmem:[%s906_s1 + $0x40] sm:$0xff] (!%p115_p2)   ;;  %v718_v4 = vld [vmem:[%s906_s1 + $0x48] sm:$0xff] (!%p115_p2)   ;;  %v722_v8 = vld [vmem:[%s906_s1 + $0x50] sm:$0xff] (!%p115_p2)   ;;  %s617_s17 = sshll.u32 (!%p115_p2), %s784_s10, 1  ;;  %vm508_vm0 = vcmask (!%p115_p2), 261120   ;;  %s760_s28 = smov (!%p115_p2), 32  }
   0x6   : > { %118 = sbr.rel (%p115_p2) target bundleno = 396 (0x18c), region = 28  ;;  %v715_v1 = vld [vmem:[%s906_s1 + $0xc0] sm:$0xff] (!%p115_p2)   ;;  %659 = vmatprep.subr.bf16.mxu0 (!%p115_p2), %v714_v0  ;;  %v719_v5 = vld [vmem:[%s906_s1 + $0xc8] sm:$0xff] (!%p115_p2)   ;;  %v723_v9 = vld [vmem:[%s906_s1 + $0xd0] sm:$0xff] (!%p115_p2)   ;;  %p136_p3 = scmp.lt.s32.totalorder (!%p115_p2), %s617_s17, 3  ;;  %vm560_vm1 = vcmask (!%p115_p2), 523264  }
   0x7   : > { %v716_v2 = vld [vmem:[%s906_s1] sm:$0xff] (!%p115_p2)   ;;  %681 = vmatprep.subr.bf16.mxu1 (!%p115_p2), %v715_v1  ;;  %v720_v6 = vld [vmem:[%s906_s1 + $0x8] sm:$0xff] (!%p115_p2)   ;;  %v724_v10 = vld [vmem:[%s906_s1 + $0x10] sm:$0xff] (!%p115_p2)   ;;  %s761_s29 = smov (!%p115_p2), 96   ;;  %s762_s30 = smov (!%p115_p2), 64   ;;  %vm562_vm2 = vcmask (!%p115_p2), 785408  }
   0x8   : > { %v717_v3 = vld [vmem:[%s906_s1 + $0x80] sm:$0xff] (!%p115_p2)   ;;  %660 = vmatpush3.bf16.msra.mxu0 (!%p115_p2), %v716_v2  ;;  %v721_v7 = vld [vmem:[%s906_s1 + $0x88] sm:$0xff] (!%p115_p2)   ;;  %v725_v11 = vld [vmem:[%s906_s1 + $0x90] sm:$0xff] (!%p115_p2)   ;;  %p142_p4 = scmp.lt.s32.totalorder (!%p115_p2), %s784_s10, 1 }
   0x9   : > { %682 = vmatpush3.bf16.msra.mxu1 (!%p115_p2), %v717_v3  ;;  %661 = vmatprep.subr.bf16.mxu0 (!%p115_p2), %v718_v4  ;;  %v726_v12 = vld [vmem:[%s906_s1 + $0x58] sm:$0xff] (!%p115_p2)   ;;  %v730_v16 = vld [vmem:[%s906_s1 + $0x60] sm:$0xff] (!%p115_p2)   ;;  %v734_v20 = vld [vmem:[%s906_s1 + $0x68] sm:$0xff] (!%p115_p2)  }
   0xa   : > { %683 = vmatprep.subr.bf16.mxu1 (!%p115_p2), %v719_v5  ;;  %v727_v13 = vld [vmem:[%s906_s1 + $0xd8] sm:$0xff] (!%p115_p2)   ;;  %v731_v17 = vld [vmem:[%s906_s1 + $0xe0] sm:$0xff] (!%p115_p2)   ;;  %v735_v21 = vld [vmem:[%s906_s1 + $0xe8] sm:$0xff] (!%p115_p2)  }
   0xb   : > { %v728_v14 = vld [vmem:[%s906_s1 + $0x18] sm:$0xff] (!%p115_p2)   ;;  %v732_v18 = vld [vmem:[%s906_s1 + $0x20] sm:$0xff] (!%p115_p2)   ;;  %v736_v22 = vld [vmem:[%s906_s1 + $0x28] sm:$0xff] (!%p115_p2)  }
   0xc   : > { %662 = vmatpush3.bf16.msra.mxu0 (!%p115_p2), %v720_v6  ;;  %v729_v15 = vld [vmem:[%s906_s1 + $0x98] sm:$0xff] (!%p115_p2)   ;;  %v733_v19 = vld [vmem:[%s906_s1 + $0xa0] sm:$0xff] (!%p115_p2)   ;;  %v737_v23 = vld [vmem:[%s906_s1 + $0xa8] sm:$0xff] (!%p115_p2)  }
   0xd   : > { %684 = vmatpush3.bf16.msra.mxu1 %v721_v7  ;;  %663 = vmatprep.subr.bf16.mxu0 %v722_v8  ;;  %s909_s17 = smov (!%p136_p3, %s617_s17), 3  ;;  %v738_v24 = vld [vmem:[%s906_s1 + $0x70] sm:$0xff]   ;;  %v742_v28 = vld [vmem:[%s906_s1 + $0x78] sm:$0xff]   ;;  %s911_s10 = smov (!%p142_p4, %s784_s10), 1 }
   0xe   : > { %685 = vmatprep.subr.bf16.mxu1 %v723_v9  ;;  %v739_v25 = vld [vmem:[%s906_s1 + $0xf0] sm:$0xff]   ;;  %s658_s14 = sshll.u32 %s909_s17, 4  ;;  %v743_v29 = vld [vmem:[%s906_s1 + $0xf8] sm:$0xff]   ;;  %s144_s5 = scalar_lea.vmem %s907_s2, %s911_s10 }
   0xf   : > { %v740_v26 = vld [vmem:[%s906_s1 + $0x30] sm:$0xff]   ;;  %s140_s24 = scalar_lea.vmem %s905_s0, %s658_s14  ;;  %v744_v30 = vld [vmem:[%s906_s1 + $0x38] sm:$0xff]  }
  0x10   : > { %664 = vmatpush3.bf16.msra.mxu0 %v724_v10  ;;  %v741_v27 = vld [vmem:[%s906_s1 + $0xb0] sm:$0xff]   ;;  %v745_v31 = vld [vmem:[%s906_s1 + $0xb8] sm:$0xff]  }
  0x11   : > { %686 = vmatpush3.bf16.msra.mxu1 %v725_v11  ;;  %665 = vmatprep.subr.bf16.mxu0 %v726_v12  ;;  %v746_v32 = vld [vmem:[%s140_s24] ss:$16 sps:$4 sm:$0xff]   ;;  %v748_v33 = vld [vmem:[%s140_s24 + $0x4] ss:$16 sps:$4 sm:$0xff]   ;;  %v749_v34 = vld [vmem:[%s140_s24 + $0x8] ss:$16 sps:$4 sm:$0xff]  }
  0x12   : > { %687 = vmatprep.subr.bf16.mxu1 %v727_v13  ;;  %v751_v35 = vld [vmem:[%s140_s24 + $0xc] ss:$16 sps:$4 sm:$0xff]   ;;  %458 = vmatprep.mubr.bf16.mxu0 %v748_v33 }
  0x13   : > { %499 = vmatprep.mubr.bf16.mxu1 %v751_v35 }
  0x14   : > { %666 = vmatpush3.bf16.msra.mxu0 %v728_v14 }
  0x15   : > { %688 = vmatpush3.bf16.msra.mxu1 %v729_v15  ;;  %667 = vmatprep.subr.bf16.mxu0 %v730_v16 }
  0x16   : > { %689 = vmatprep.subr.bf16.mxu1 %v731_v17 }
  0x18   : > { %668 = vmatpush3.bf16.msra.mxu0 %v732_v18 }
  0x19   : > { %690 = vmatpush3.bf16.msra.mxu1 %v733_v19  ;;  %669 = vmatprep.subr.bf16.mxu0 %v734_v20 }
  0x1a   : > { %691 = vmatprep.subr.bf16.mxu1 %v735_v21 }
  0x1c   : > { %670 = vmatpush3.bf16.msra.mxu0 %v736_v22 }
  0x1d   : > { %692 = vmatpush3.bf16.msra.mxu1 %v737_v23  ;;  %671 = vmatprep.subr.bf16.mxu0 %v738_v24 }
  0x1e   : > { %693 = vmatprep.subr.bf16.mxu1 %v739_v25 }
  0x20   : > { %672 = vmatpush3.bf16.msra.mxu0 %v740_v26 }
  0x21   : > { %694 = vmatpush3.bf16.msra.mxu1 %v741_v27  ;;  %673 = vmatprep.subr.bf16.mxu0 %v742_v28 }
  0x22   : > { %695 = vmatprep.subr.bf16.mxu1 %v743_v29 }
  0x24   : > { %674 = vmatpush3.bf16.msra.mxu0 %v744_v30 }
  0x25   : > { %696 = vmatpush3.bf16.msra.mxu1 %v745_v31 }
  0x27   : > { %459 = vmatmul.mubr.bf16.vlgmr.msra.gmra.mrb[0].mxu0 %v746_v32 }
  0x28   : > { %500 = vmatmul.mubr.bf16.vlgmr.msra.gmra.mrb[0].mxu1 %v749_v34 }
  0xfa   : > { %v675_v36 = vpop.f32.mrb[0].mxu0 }
  0xfb   : > { %v697_v37 = vpop.f32.mrb[0].mxu1  ;;  %v676_v38 = vpop.f32.mrb[1].mxu0 }
  0xfc   : > { %v677_v39 = vadd.f32 %v676_v38, %v675_v36  ;;  %v698_v40 = vpop.f32.mrb[1].mxu1  ;;  %v678_v41 = vpop.f32.mrb[2].mxu0 }
  0xfd   : > { %v699_v42 = vadd.f32 %v698_v40, %v697_v37  ;;  %v700_v43 = vpop.f32.mrb[2].mxu1  ;;  %v679_v44 = vpop.f32.mrb[3].mxu0 }
  0xfe   : > { %v680_v45 = vadd.f32 %v679_v44, %v678_v41  ;;  %v701_v46 = vpop.f32.mrb[3].mxu1 }
  0xff   : > { %v502_v47 = vadd.f32 %v699_v42, %v677_v39  ;;  %v702_v48 = vadd.f32 %v701_v46, %v700_v43 }
 0x101   : > { %v505_v49 = vadd.f32 %v702_v48, %v680_v45  ;;  %v509_v50 = vsel %vm508_vm0, %v502_v47, -inf  ;;  %v527_v51 = vsel %vm508_vm0, %v502_v47, 0.0  ;;  %v518_v52 = vsel %vm508_vm0, %v502_v47, inf }
 0x102   : > { %v536_v53 = vmul.f32 %v502_v47, %v502_v47 }
 0x103   : > { %v510_v54 = vsel %vm508_vm0, %v505_v49, -inf  ;;  %v528_v55 = vsel %vm508_vm0, %v505_v49, 0.0  ;;  %v519_v56 = vsel %vm508_vm0, %v505_v49, inf  ;;  %v537_v57 = vmul.f32 %v505_v49, %v505_v49 }
 0x104   : > { %v511_v58 = vmax.f32 %v509_v50, %v510_v54  ;;  %v520_v59 = vmin.f32 %v518_v52, %v519_v56  ;;  %v529_v60 = vadd.f32 %v528_v55, %v527_v51  ;;  %v538_v61 = vsel %vm508_vm0, %v536_v53, 0.0 }
 0x105   : > { %v539_v62 = vsel %vm508_vm0, %v537_v57, 0.0 }
 0x106   : > { %v521_v63 = vrot.slane %v520_v59, 4  ;;  %v540_v0 = vadd.f32 %v539_v62, %v538_v61  ;;  %v530_v1 = vrot.slane %v529_v60, 4  ;;  %v512_v18 = vrot.slane %v511_v58, 4 }
 0x108   : > { %v522_v2 = vmin.f32 %v520_v59, %v521_v63  ;;  %v541_v3 = vrot.slane %v540_v0, 4  ;;  %v531_v4 = vadd.f32 %v530_v1, %v529_v60  ;;  %v513_v19 = vmax.f32 %v511_v58, %v512_v18 }
 0x10a   : > { %v523_v5 = vrot.slane %v522_v2, 2  ;;  %v542_v6 = vadd.f32 %v541_v3, %v540_v0  ;;  %v532_v7 = vrot.slane %v531_v4, 2  ;;  %v514_v20 = vrot.slane %v513_v19, 2 }
 0x10c   : > { %v524_v8 = vmin.f32 %v522_v2, %v523_v5  ;;  %v543_v9 = vrot.slane %v542_v6, 2  ;;  %v533_v10 = vadd.f32 %v532_v7, %v531_v4  ;;  %v515_v21 = vmax.f32 %v513_v19, %v514_v20 }
 0x10e   : > { %v525_v11 = vrot.slane %v524_v8, 1  ;;  %v544_v12 = vadd.f32 %v543_v9, %v542_v6  ;;  %v534_v15 = vrot.slane %v533_v10, 1  ;;  %v516_v22 = vrot.slane %v515_v21, 1 }
 0x110   : > { %v526_v13 = vmin.f32 %v524_v8, %v525_v11  ;;  %v545_v14 = vrot.slane %v544_v12, 1  ;;  %v535_v17 = vadd.f32 %v534_v15, %v533_v10  ;;  %v517_v24 = vmax.f32 %v515_v21, %v516_v22 }
 0x112   : > { %548 = vrot.lane.b32.xlu0 %v526_v13, %s760_s28  ;;  %v546_v16 = vadd.f32 %v545_v14, %v544_v12 }
 0x114   : > { %556 = vrot.lane.b32.xlu1 %v546_v16, %s761_s29 }
 0x116   : > { %552 = vrot.lane.b32.xlu0 %v535_v17, %s762_s30 }
 0x184   : > { %v549_v23 = vpop.permute.xlu0 %548 }
 0x185   : > { %v559_v25 = vsel %vm508_vm0, %v517_v24, %v549_v23 }
 0x186   : > { %v557_v27 = vpop.permute.xlu1 %556 }
 0x188   : > { %v553_v26 = vpop.permute.xlu0 %552 }
 0x189   : > { %v561_v28 = vsel %vm560_vm1, %v559_v25, %v553_v26 }
 0x18a   : > { %v563_v29 = vsel %vm562_vm2, %v561_v28, %v557_v27 }
 0x18b   : > { %564 = vst [vmem:[%s144_s5] sm:$0x1] %v563_v29 }
 0x18c PF: > { %s12_s9 = sadd.s32 1, %s758_s9  }
 0x18d   : > { %p9_p5 = scmp.ge.s32.totalorder %s12_s9, 4  }
 0x18f   :  { %11 = sbr.rel (!%p9_p5) target bundleno = 1 (0x1), region = 58 }

</bundles_post_ra>
